<compile_context>
chip_gen: v7x
topology: tpu7x:2x2x1
jax: 0.10.0
libtpu: 0.0.40
codegen_flags: <defaults>
</compile_context>

<pallas_src>
import jax
import jax.numpy as jnp
from jax import lax
from jax.experimental import pallas as pl
from jax.experimental.pallas import tpu as pltpu


# ----------------------------------------------------------------------------
# Fused multi-layer bidirectional LSTM kernel (single launch, no grid)
# ----------------------------------------------------------------------------
def _make_bilstm_kernel(num_layers):
    """Ref layout (all VMEM):
      inputs : gx0 (T,B,8H), whh0 (2H,8H), then per layer l>=1: w_l (2H,8H),
               b_l (1,8H), whh_l (2H,8H)
      outputs: out (B,2H)   -- max over time of the last layer's [fwd|bwd] output
      scratch: gx_scr (T,B,8H), hid_scr (T,B,2H)    (only when num_layers > 1)
    Gate-column layout everywhere: [i_f, i_b, f_f, f_b, g_f, g_b, o_f, o_b] (each H
    wide); hidden-state lane layout: [h_fwd (H) | h_bwd (H)].
    """

    def kernel(*refs):
        gx0_ref = refs[0]
        whh0_ref = refs[1]
        upper = []
        idx = 2
        for _ in range(num_layers - 1):
            upper.append((refs[idx], refs[idx + 1], refs[idx + 2]))
            idx += 3
        out_ref = refs[idx]
        if num_layers > 1:
            gx_scr, hid_scr = refs[idx + 1], refs[idx + 2]
        else:
            gx_scr = hid_scr = None

        T, B, G8 = gx0_ref.shape
        H2 = G8 // 4          # 2 * hidden_dim (both directions)
        H = H2 // 2           # hidden_dim

        # Lane masks, hoisted once for the whole kernel.
        lane = lax.broadcasted_iota(jnp.int32, (B, G8), 1)
        is_fwd = (lane % H2) < H                      # forward-direction columns
        is_g = (lane >= 2 * H2) & (lane < 3 * H2)     # candidate-gate block -> tanh

        def activate(x):
            # sigmoid(x) = 0.5 * (tanh(x/2) + 1): one tanh pass over all 8H lanes.
            pre = jnp.where(is_g, x, x * 0.5)
            th = jnp.tanh(pre)
            return jnp.where(is_g, th, 0.5 * th + 0.5)

        def run_layer(gx_ref, whh, hid_out_ref):
            """Fused fwd+bwd recurrence over the whole sequence.  Returns the per-lane
            running max of h over all steps (== per-direction max over time)."""

            def body(t, carry):
                h, c, m = carry
                s = T - 1 - t                 # backward direction walks in reverse
                # fwd gate lanes take gx[t], bwd gate lanes take gx[s]: one select.
                gates = jnp.where(is_fwd, gx_ref[t], gx_ref[s])
                # Single block-diagonal recurrent matmul for both directions.
                gates = gates + jnp.dot(h, whh, preferred_element_type=jnp.float32)
                act = activate(gates)
                i_g = act[:, 0:H2]
                f_g = act[:, H2:2 * H2]
                g_g = act[:, 2 * H2:3 * H2]
                o_g = act[:, 3 * H2:4 * H2]
                c = f_g * c + i_g * g_g
                h = o_g * jnp.tanh(c)
                if hid_out_ref is not None:   # VMEM scratch, consumed by next layer
                    hid_out_ref[t, :, :H] = h[:, :H]      # forward state at time t
                    hid_out_ref[s, :, H:] = h[:, H:]      # backward state at time s
                return (h, c, jnp.maximum(m, h))

            z = jnp.zeros((B, H2), jnp.float32)
            neg = jnp.full((B, H2), -jnp.inf, jnp.float32)
            _, _, m = lax.fori_loop(0, T, body, (z, z, neg), unroll=True)
            return m

        # ---- layer 0: input projection already hoisted to one XLA GEMM (gx0) -------
        m = run_layer(gx0_ref, whh0_ref[...], hid_scr)

        # ---- layers 1..L-1: hoisted in-kernel projection + fused recurrence --------
        for li, (w_r, b_r, whh_r) in enumerate(upper):
            w = w_r[...]
            b = jnp.broadcast_to(b_r[...], (B, G8))     # hoisted out of the loop
            whh = whh_r[...]

            # Hoisted input projection: independent per-t matmuls, pipeline on MXU,
            # reading the VMEM-resident previous-layer output (no HBM round trip).
            def project(t, _):
                gx_scr[t] = jnp.dot(hid_scr[t], w,
                                    preferred_element_type=jnp.float32) + b
                return 0

            lax.fori_loop(0, T, project, 0, unroll=True)

            last = li == len(upper) - 1
            m = run_layer(gx_scr, whh, None if last else hid_scr)

        out_ref[...] = m                                # single (B, 2H) HBM writeback

    return kernel


# ----------------------------------------------------------------------------
# Parameter construction (PyTorch nn.LSTM layout / init) + fused kernel layout
# ----------------------------------------------------------------------------
def init_bilstm_params(key, hidden_dim, num_layers, embed_dim):
    H = hidden_dim
    bound = 1.0 / float(H) ** 0.5
    params = []
    for layer in range(num_layers):
        in_dim = embed_dim if layer == 0 else 2 * H
        dirs = []
        for _direction in range(2):               # 0 = forward, 1 = backward
            key, k1, k2, k3, k4 = jax.random.split(key, 5)
            w_ih = jax.random.uniform(k1, (4 * H, in_dim), jnp.float32, -bound, bound)
            w_hh = jax.random.uniform(k2, (4 * H, H), jnp.float32, -bound, bound)
            b_ih = jax.random.uniform(k3, (4 * H,), jnp.float32, -bound, bound)
            b_hh = jax.random.uniform(k4, (4 * H,), jnp.float32, -bound, bound)
            dirs.append(dict(
                w_ih_t=w_ih.T,                    # (in_dim, 4H), gate order i,f,g,o
                w_hh_t=w_hh.T,                    # (H, 4H)
                b=b_ih + b_hh,                    # (4H,) folded into the projection
            ))
        params.append(dirs)
    return params


def _interleave_gate_cols(w_f, w_b, hidden):
    """(R, 4H)+(R, 4H) -> (R, 8H) with columns [i_f,i_b,f_f,f_b,g_f,g_b,o_f,o_b]."""
    r = w_f.shape[0]
    return jnp.stack(
        [w_f.reshape(r, 4, hidden), w_b.reshape(r, 4, hidden)], axis=2
    ).reshape(r, 8 * hidden)


def fuse_bilstm_params(params, hidden):
    """Per-direction PyTorch-layout params -> fused kernel layout."""
    fused = []
    for p_f, p_b in params:
        w = _interleave_gate_cols(p_f["w_ih_t"], p_b["w_ih_t"], hidden)       # (in,8H)
        b = _interleave_gate_cols(p_f["b"][None, :], p_b["b"][None, :], hidden)  # (1,8H)
        zf = jnp.zeros_like(p_f["w_hh_t"])
        whh = jnp.concatenate(
            [_interleave_gate_cols(p_f["w_hh_t"], zf, hidden),   # rows for h_fwd
             _interleave_gate_cols(zf, p_b["w_hh_t"], hidden)],  # rows for h_bwd
            axis=0)                                              # (2H, 8H) block-diag
        fused.append(dict(w=w, b=b, whh=whh))
    return fused


# ----------------------------------------------------------------------------
# Forward pass
# ----------------------------------------------------------------------------
@jax.jit
def bilstm_forward(x, fused_params):
    """x: (B, C, T, F) == [bs, n_channels, n_second, de_features] -> (B, 2*hidden_dim)."""
    # permute(0,2,1,3) + avg_pool2d(kernel=(1,F)) + view  ==  mean over F; time-major.
    feat = jnp.mean(x, axis=-1)                  # (B, C, T)
    seq = jnp.transpose(feat, (2, 0, 1))         # (T, B, E=C)
    T, B, E = seq.shape
    p0 = fused_params[0]
    H2, G8 = p0["whh"].shape                     # (2H, 8H)
    num_layers = len(fused_params)

    # Layer-0 input projection for ALL timesteps and BOTH directions: one MXU-friendly
    # XLA GEMM (bias folded in) feeding the single fused kernel launch.
    gx0 = (jnp.dot(seq.reshape(T * B, E), p0["w"],
                   preferred_element_type=jnp.float32) + p0["b"]).reshape(T, B, G8)

    inputs = [gx0, p0["whh"]]
    for p in fused_params[1:]:
        inputs += [p["w"], p["b"], p["whh"]]

    vmem = pl.BlockSpec(memory_space=pltpu.MemorySpace.VMEM)
    scratch = ([pltpu.VMEM((T, B, G8), jnp.float32),   # gx of the current layer
                pltpu.VMEM((T, B, H2), jnp.float32)]   # previous layer's output
               if num_layers > 1 else [])

    out = pl.pallas_call(
        _make_bilstm_kernel(num_layers),
        out_shape=jax.ShapeDtypeStruct((B, H2), jnp.float32),
        in_specs=[vmem] * len(inputs),
        out_specs=vmem,
        scratch_shapes=scratch,
    )(*inputs)
    # Dropout is identity at inference (eval mode).
    # TODO(synk): training-mode dropout (Bernoulli mask on the pooled output) not applied.
    return out


# ----------------------------------------------------------------------------
# Pure-JAX (XLA) reference for correctness checking
# ----------------------------------------------------------------------------
def _lstm_direction_ref(x_seq, w_ih_t, w_hh_t, b):
    T, B, _ = x_seq.shape
    H = w_hh_t.shape[0]

    def step(carry, x_t):
        h, c = carry
        gates = x_t @ w_ih_t + h @ w_hh_t + b
        i = jax.nn.sigmoid(gates[:, 0:H])
        f = jax.nn.sigmoid(gates[:, H:2 * H])
        g = jnp.tanh(gates[:, 2 * H:3 * H])
        o = jax.nn.sigmoid(gates[:, 3 * H:])
        c = f * c + i * g
        h = o * jnp.tanh(c)
        return (h, c), h

    init = (jnp.zeros((B, H), jnp.float32), jnp.zeros((B, H), jnp.float32))
    _, hs = lax.scan(step, init, x_seq)
    return hs                                      # (T, B, H)


@jax.jit
def bilstm_reference(x, params):
    feat = jnp.mean(x, axis=-1)
    seq = jnp.transpose(feat, (2, 0, 1))
    layer_in = seq
    for p_f, p_b in params:
        fwd = _lstm_direction_ref(layer_in, p_f["w_ih_t"], p_f["w_hh_t"], p_f["b"])
        bwd = _lstm_direction_ref(layer_in[::-1], p_b["w_ih_t"], p_b["w_hh_t"], p_b["b"])[::-1]
        layer_in = jnp.concatenate([fwd, bwd], axis=-1)
    return jnp.max(layer_in, axis=0)


if __name__ == "__main__":
    bs, n_channels, n_second, de_features = 2, 4, 16, 16
    hidden_dim, num_layers, embed_dim, dropout = 32, 2, n_channels, 0.5

    key = jax.random.PRNGKey(0)
    key, kx = jax.random.split(key)
    x = jax.random.normal(kx, (bs, n_channels, n_second, de_features), jnp.float32)
    params = init_bilstm_params(key, hidden_dim, num_layers, embed_dim)
    fused = fuse_bilstm_params(params, hidden_dim)

    out = jax.block_until_ready(bilstm_forward(x, fused))
    assert out.shape == (bs, 2 * hidden_dim), out.shape
    assert bool(jnp.all(jnp.isfinite(out)))

    # Cross-check against a pure-JAX (XLA) reference.  Tolerance stays loose because
    # BOTH paths use default-precision f32 matmuls (bf16 MXU passes) with different
    # accumulation shapes/order; element-wise math (tanh-based sigmoid) is exact to
    # ~1e-7.  Tightening would require precision=HIGHEST in both kernel and reference.
    ref = jax.block_until_ready(bilstm_reference(x, params))
    err = float(jnp.max(jnp.abs(out - ref)))
    assert jnp.allclose(out, ref, rtol=3e-2, atol=3e-2), err

    print("KERNEL_OK")
</pallas_src>

<mosaic_0001>
module attributes {stable_mosaic.version = 11 : i64} {
  func.func @kernel(%arg0: memref<16x2x256xf32, #tpu.memory_space<vmem>>, %arg1: memref<64x256xf32, #tpu.memory_space<vmem>>, %arg2: memref<64x256xf32, #tpu.memory_space<vmem>>, %arg3: memref<1x256xf32, #tpu.memory_space<vmem>>, %arg4: memref<64x256xf32, #tpu.memory_space<vmem>>, %arg5: memref<2x64xf32, #tpu.memory_space<vmem>>, %arg6: memref<16x2x256xf32, #tpu.memory_space<vmem>>, %arg7: memref<16x2x64xf32, #tpu.memory_space<vmem>>) attributes {dimension_semantics = [], scalar_prefetch = 0 : i64, scratch_operands = 2 : i64, tpu.core_type = #tpu.core_type<tc>} {
    %0 = tpu.iota {dimensions = array<i32: 1>} : vector<2x256xi32>
    %c64_i32 = arith.constant 64 : i32
    %c0_i32 = arith.constant 0 : i32
    %1 = arith.cmpi eq, %c64_i32, %c0_i32 : i32
    %c1_i32 = arith.constant 1 : i32
    %2 = arith.select %1, %c1_i32, %c64_i32 : i32
    %3 = vector.broadcast %2 : i32 to vector<2x256xi32>
    %4 = arith.remsi %0, %3 : vector<2x256xi32>
    %c0_i32_0 = arith.constant 0 : i32
    %5 = vector.broadcast %c0_i32_0 : i32 to vector<2x256xi32>
    %6 = arith.cmpi ne, %4, %5 : vector<2x256xi32>
    %c0_i32_1 = arith.constant 0 : i32
    %7 = vector.broadcast %c0_i32_1 : i32 to vector<2x256xi32>
    %8 = arith.cmpi slt, %4, %7 : vector<2x256xi32>
    %c0_i32_2 = arith.constant 0 : i32
    %9 = arith.cmpi slt, %2, %c0_i32_2 : i32
    %10 = vector.broadcast %9 : i1 to vector<2x256xi1>
    %11 = vector.broadcast %10 : vector<2x256xi1> to vector<2x256xi1>
    %12 = arith.xori %8, %11 : vector<2x256xi1>
    %13 = arith.andi %12, %6 : vector<2x256xi1>
    %14 = vector.broadcast %2 : i32 to vector<2x256xi32>
    %15 = arith.addi %4, %14 : vector<2x256xi32>
    %16 = arith.select %13, %15, %4 : vector<2x256xi1>, vector<2x256xi32>
    %c32_i32 = arith.constant 32 : i32
    %17 = vector.broadcast %c32_i32 : i32 to vector<2x256xi32>
    %18 = arith.cmpi slt, %16, %17 : vector<2x256xi32>
    %c128_i32 = arith.constant 128 : i32
    %19 = vector.broadcast %c128_i32 : i32 to vector<2x256xi32>
    %20 = arith.cmpi sge, %0, %19 : vector<2x256xi32>
    %c192_i32 = arith.constant 192 : i32
    %21 = vector.broadcast %c192_i32 : i32 to vector<2x256xi32>
    %22 = arith.cmpi slt, %0, %21 : vector<2x256xi32>
    %23 = arith.andi %20, %22 : vector<2x256xi1>
    %c0 = arith.constant 0 : index
    %c0_3 = arith.constant 0 : index
    %24 = vector.load %arg1[%c0, %c0_3] : memref<64x256xf32, #tpu.memory_space<vmem>>, vector<64x256xf32>
    %cst = arith.constant 0.000000e+00 : f32
    %25 = vector.broadcast %cst : f32 to vector<2x64xf32>
    %c0_i32_4 = arith.constant 0 : i32
    %c15_i32 = arith.constant 15 : i32
    %26 = arith.subi %c15_i32, %c0_i32_4 : i32
    %27 = arith.index_cast %c0_i32_4 : i32 to index
    %c0_5 = arith.constant 0 : index
    %c0_6 = arith.constant 0 : index
    %28 = vector.load %arg0[%27, %c0_5, %c0_6] : memref<16x2x256xf32, #tpu.memory_space<vmem>>, vector<1x2x256xf32>
    %29 = vector.shape_cast %28 : vector<1x2x256xf32> to vector<2x256xf32>
    %30 = arith.index_cast %26 : i32 to index
    %c0_7 = arith.constant 0 : index
    %c0_8 = arith.constant 0 : index
    %31 = vector.load %arg0[%30, %c0_7, %c0_8] : memref<16x2x256xf32, #tpu.memory_space<vmem>>, vector<1x2x256xf32>
    %32 = vector.shape_cast %31 : vector<1x2x256xf32> to vector<2x256xf32>
    %33 = arith.select %18, %29, %32 : vector<2x256xi1>, vector<2x256xf32>
    %cst_9 = arith.constant dense<0.000000e+00> : vector<2x256xf32>
    %34 = tpu.matmul %25, %24, %cst_9 {dimension_numbers = #tpu.dot_dimension_numbers<[1], [0], [0], [1], [0, 0, 1, 1], [], []>} : vector<2x64xf32>, vector<64x256xf32>, vector<2x256xf32> -> vector<2x256xf32>
    %35 = arith.addf %33, %34 : vector<2x256xf32>
    %cst_10 = arith.constant 5.000000e-01 : f32
    %36 = vector.broadcast %cst_10 : f32 to vector<2x256xf32>
    %37 = arith.mulf %35, %36 : vector<2x256xf32>
    %38 = arith.select %23, %35, %37 : vector<2x256xi1>, vector<2x256xf32>
    %39 = math.tanh %38 : vector<2x256xf32>
    %cst_11 = arith.constant 5.000000e-01 : f32
    %40 = vector.broadcast %cst_11 : f32 to vector<2x256xf32>
    %41 = arith.mulf %40, %39 : vector<2x256xf32>
    %cst_12 = arith.constant 5.000000e-01 : f32
    %42 = vector.broadcast %cst_12 : f32 to vector<2x256xf32>
    %43 = arith.addf %41, %42 : vector<2x256xf32>
    %44 = arith.select %23, %39, %43 : vector<2x256xi1>, vector<2x256xf32>
    %45 = vector.extract_strided_slice %44 {offsets = [0, 0], sizes = [2, 64], strides = [1, 1]} : vector<2x256xf32> to vector<2x64xf32>
    %46 = vector.extract_strided_slice %44 {offsets = [0, 64], sizes = [2, 64], strides = [1, 1]} : vector<2x256xf32> to vector<2x64xf32>
    %47 = vector.extract_strided_slice %44 {offsets = [0, 128], sizes = [2, 64], strides = [1, 1]} : vector<2x256xf32> to vector<2x64xf32>
    %48 = vector.extract_strided_slice %44 {offsets = [0, 192], sizes = [2, 64], strides = [1, 1]} : vector<2x256xf32> to vector<2x64xf32>
    %49 = arith.mulf %46, %25 : vector<2x64xf32>
    %50 = arith.mulf %45, %47 : vector<2x64xf32>
    %51 = arith.addf %49, %50 : vector<2x64xf32>
    %52 = math.tanh %51 : vector<2x64xf32>
    %53 = arith.mulf %48, %52 : vector<2x64xf32>
    %54 = vector.extract_strided_slice %53 {offsets = [0, 0], sizes = [2, 32], strides = [1, 1]} : vector<2x64xf32> to vector<2x32xf32>
    %55 = arith.index_cast %c0_i32_4 : i32 to index
    %c0_13 = arith.constant 0 : index
    %c0_14 = arith.constant 0 : index
    %56 = vector.load %arg7[%55, %c0_13, %c0_14] : memref<16x2x64xf32, #tpu.memory_space<vmem>>, vector<1x2x32xf32>
    %57 = vector.shape_cast %56 : vector<1x2x32xf32> to vector<2x32xf32>
    %58 = vector.shape_cast %54 : vector<2x32xf32> to vector<1x2x32xf32>
    tpu.vector_store %arg7[%55, %c0_13, %c0_14], %58 {strides = array<i32>} : memref<16x2x64xf32, #tpu.memory_space<vmem>>, vector<1x2x32xf32>,
    %59 = vector.extract_strided_slice %53 {offsets = [0, 32], sizes = [2, 32], strides = [1, 1]} : vector<2x64xf32> to vector<2x32xf32>
    %60 = arith.index_cast %26 : i32 to index
    %c0_15 = arith.constant 0 : index
    %c32 = arith.constant 32 : index
    %61 = vector.load %arg7[%60, %c0_15, %c32] : memref<16x2x64xf32, #tpu.memory_space<vmem>>, vector<1x2x32xf32>
    %62 = vector.shape_cast %61 : vector<1x2x32xf32> to vector<2x32xf32>
    %63 = vector.shape_cast %59 : vector<2x32xf32> to vector<1x2x32xf32>
    tpu.vector_store %arg7[%60, %c0_15, %c32], %63 {strides = array<i32>} : memref<16x2x64xf32, #tpu.memory_space<vmem>>, vector<1x2x32xf32>,
    %c1_i32_16 = arith.constant 1 : i32
    %c15_i32_17 = arith.constant 15 : i32
    %64 = arith.subi %c15_i32_17, %c1_i32_16 : i32
    %65 = arith.index_cast %c1_i32_16 : i32 to index
    %c0_18 = arith.constant 0 : index
    %c0_19 = arith.constant 0 : index
    %66 = vector.load %arg0[%65, %c0_18, %c0_19] : memref<16x2x256xf32, #tpu.memory_space<vmem>>, vector<1x2x256xf32>
    %67 = vector.shape_cast %66 : vector<1x2x256xf32> to vector<2x256xf32>
    %68 = arith.index_cast %64 : i32 to index
    %c0_20 = arith.constant 0 : index
    %c0_21 = arith.constant 0 : index
    %69 = vector.load %arg0[%68, %c0_20, %c0_21] : memref<16x2x256xf32, #tpu.memory_space<vmem>>, vector<1x2x256xf32>
    %70 = vector.shape_cast %69 : vector<1x2x256xf32> to vector<2x256xf32>
    %71 = arith.select %18, %67, %70 : vector<2x256xi1>, vector<2x256xf32>
    %cst_22 = arith.constant dense<0.000000e+00> : vector<2x256xf32>
    %72 = tpu.matmul %53, %24, %cst_22 {dimension_numbers = #tpu.dot_dimension_numbers<[1], [0], [0], [1], [0, 0, 1, 1], [], []>} : vector<2x64xf32>, vector<64x256xf32>, vector<2x256xf32> -> vector<2x256xf32>
    %73 = arith.addf %71, %72 : vector<2x256xf32>
    %cst_23 = arith.constant 5.000000e-01 : f32
    %74 = vector.broadcast %cst_23 : f32 to vector<2x256xf32>
    %75 = arith.mulf %73, %74 : vector<2x256xf32>
    %76 = arith.select %23, %73, %75 : vector<2x256xi1>, vector<2x256xf32>
    %77 = math.tanh %76 : vector<2x256xf32>
    %cst_24 = arith.constant 5.000000e-01 : f32
    %78 = vector.broadcast %cst_24 : f32 to vector<2x256xf32>
    %79 = arith.mulf %78, %77 : vector<2x256xf32>
    %cst_25 = arith.constant 5.000000e-01 : f32
    %80 = vector.broadcast %cst_25 : f32 to vector<2x256xf32>
    %81 = arith.addf %79, %80 : vector<2x256xf32>
    %82 = arith.select %23, %77, %81 : vector<2x256xi1>, vector<2x256xf32>
    %83 = vector.extract_strided_slice %82 {offsets = [0, 0], sizes = [2, 64], strides = [1, 1]} : vector<2x256xf32> to vector<2x64xf32>
    %84 = vector.extract_strided_slice %82 {offsets = [0, 64], sizes = [2, 64], strides = [1, 1]} : vector<2x256xf32> to vector<2x64xf32>
    %85 = vector.extract_strided_slice %82 {offsets = [0, 128], sizes = [2, 64], strides = [1, 1]} : vector<2x256xf32> to vector<2x64xf32>
    %86 = vector.extract_strided_slice %82 {offsets = [0, 192], sizes = [2, 64], strides = [1, 1]} : vector<2x256xf32> to vector<2x64xf32>
    %87 = arith.mulf %84, %51 : vector<2x64xf32>
    %88 = arith.mulf %83, %85 : vector<2x64xf32>
    %89 = arith.addf %87, %88 : vector<2x64xf32>
    %90 = math.tanh %89 : vector<2x64xf32>
    %91 = arith.mulf %86, %90 : vector<2x64xf32>
    %92 = vector.extract_strided_slice %91 {offsets = [0, 0], sizes = [2, 32], strides = [1, 1]} : vector<2x64xf32> to vector<2x32xf32>
    %93 = arith.index_cast %c1_i32_16 : i32 to index
    %c0_26 = arith.constant 0 : index
    %c0_27 = arith.constant 0 : index
    %94 = vector.load %arg7[%93, %c0_26, %c0_27] : memref<16x2x64xf32, #tpu.memory_space<vmem>>, vector<1x2x32xf32>
    %95 = vector.shape_cast %94 : vector<1x2x32xf32> to vector<2x32xf32>
    %96 = vector.shape_cast %92 : vector<2x32xf32> to vector<1x2x32xf32>
    tpu.vector_store %arg7[%93, %c0_26, %c0_27], %96 {strides = array<i32>} : memref<16x2x64xf32, #tpu.memory_space<vmem>>, vector<1x2x32xf32>,
    %97 = vector.extract_strided_slice %91 {offsets = [0, 32], sizes = [2, 32], strides = [1, 1]} : vector<2x64xf32> to vector<2x32xf32>
    %98 = arith.index_cast %64 : i32 to index
    %c0_28 = arith.constant 0 : index
    %c32_29 = arith.constant 32 : index
    %99 = vector.load %arg7[%98, %c0_28, %c32_29] : memref<16x2x64xf32, #tpu.memory_space<vmem>>, vector<1x2x32xf32>
    %100 = vector.shape_cast %99 : vector<1x2x32xf32> to vector<2x32xf32>
    %101 = vector.shape_cast %97 : vector<2x32xf32> to vector<1x2x32xf32>
    tpu.vector_store %arg7[%98, %c0_28, %c32_29], %101 {strides = array<i32>} : memref<16x2x64xf32, #tpu.memory_space<vmem>>, vector<1x2x32xf32>,
    %c2_i32 = arith.constant 2 : i32
    %c15_i32_30 = arith.constant 15 : i32
    %102 = arith.subi %c15_i32_30, %c2_i32 : i32
    %103 = arith.index_cast %c2_i32 : i32 to index
    %c0_31 = arith.constant 0 : index
    %c0_32 = arith.constant 0 : index
    %104 = vector.load %arg0[%103, %c0_31, %c0_32] : memref<16x2x256xf32, #tpu.memory_space<vmem>>, vector<1x2x256xf32>
    %105 = vector.shape_cast %104 : vector<1x2x256xf32> to vector<2x256xf32>
    %106 = arith.index_cast %102 : i32 to index
    %c0_33 = arith.constant 0 : index
    %c0_34 = arith.constant 0 : index
    %107 = vector.load %arg0[%106, %c0_33, %c0_34] : memref<16x2x256xf32, #tpu.memory_space<vmem>>, vector<1x2x256xf32>
    %108 = vector.shape_cast %107 : vector<1x2x256xf32> to vector<2x256xf32>
    %109 = arith.select %18, %105, %108 : vector<2x256xi1>, vector<2x256xf32>
    %cst_35 = arith.constant dense<0.000000e+00> : vector<2x256xf32>
    %110 = tpu.matmul %91, %24, %cst_35 {dimension_numbers = #tpu.dot_dimension_numbers<[1], [0], [0], [1], [0, 0, 1, 1], [], []>} : vector<2x64xf32>, vector<64x256xf32>, vector<2x256xf32> -> vector<2x256xf32>
    %111 = arith.addf %109, %110 : vector<2x256xf32>
    %cst_36 = arith.constant 5.000000e-01 : f32
    %112 = vector.broadcast %cst_36 : f32 to vector<2x256xf32>
    %113 = arith.mulf %111, %112 : vector<2x256xf32>
    %114 = arith.select %23, %111, %113 : vector<2x256xi1>, vector<2x256xf32>
    %115 = math.tanh %114 : vector<2x256xf32>
    %cst_37 = arith.constant 5.000000e-01 : f32
    %116 = vector.broadcast %cst_37 : f32 to vector<2x256xf32>
    %117 = arith.mulf %116, %115 : vector<2x256xf32>
    %cst_38 = arith.constant 5.000000e-01 : f32
    %118 = vector.broadcast %cst_38 : f32 to vector<2x256xf32>
    %119 = arith.addf %117, %118 : vector<2x256xf32>
    %120 = arith.select %23, %115, %119 : vector<2x256xi1>, vector<2x256xf32>
    %121 = vector.extract_strided_slice %120 {offsets = [0, 0], sizes = [2, 64], strides = [1, 1]} : vector<2x256xf32> to vector<2x64xf32>
    %122 = vector.extract_strided_slice %120 {offsets = [0, 64], sizes = [2, 64], strides = [1, 1]} : vector<2x256xf32> to vector<2x64xf32>
    %123 = vector.extract_strided_slice %120 {offsets = [0, 128], sizes = [2, 64], strides = [1, 1]} : vector<2x256xf32> to vector<2x64xf32>
    %124 = vector.extract_strided_slice %120 {offsets = [0, 192], sizes = [2, 64], strides = [1, 1]} : vector<2x256xf32> to vector<2x64xf32>
    %125 = arith.mulf %122, %89 : vector<2x64xf32>
    %126 = arith.mulf %121, %123 : vector<2x64xf32>
    %127 = arith.addf %125, %126 : vector<2x64xf32>
    %128 = math.tanh %127 : vector<2x64xf32>
    %129 = arith.mulf %124, %128 : vector<2x64xf32>
    %130 = vector.extract_strided_slice %129 {offsets = [0, 0], sizes = [2, 32], strides = [1, 1]} : vector<2x64xf32> to vector<2x32xf32>
    %131 = arith.index_cast %c2_i32 : i32 to index
    %c0_39 = arith.constant 0 : index
    %c0_40 = arith.constant 0 : index
    %132 = vector.load %arg7[%131, %c0_39, %c0_40] : memref<16x2x64xf32, #tpu.memory_space<vmem>>, vector<1x2x32xf32>
    %133 = vector.shape_cast %132 : vector<1x2x32xf32> to vector<2x32xf32>
    %134 = vector.shape_cast %130 : vector<2x32xf32> to vector<1x2x32xf32>
    tpu.vector_store %arg7[%131, %c0_39, %c0_40], %134 {strides = array<i32>} : memref<16x2x64xf32, #tpu.memory_space<vmem>>, vector<1x2x32xf32>,
    %135 = vector.extract_strided_slice %129 {offsets = [0, 32], sizes = [2, 32], strides = [1, 1]} : vector<2x64xf32> to vector<2x32xf32>
    %136 = arith.index_cast %102 : i32 to index
    %c0_41 = arith.constant 0 : index
    %c32_42 = arith.constant 32 : index
    %137 = vector.load %arg7[%136, %c0_41, %c32_42] : memref<16x2x64xf32, #tpu.memory_space<vmem>>, vector<1x2x32xf32>
    %138 = vector.shape_cast %137 : vector<1x2x32xf32> to vector<2x32xf32>
    %139 = vector.shape_cast %135 : vector<2x32xf32> to vector<1x2x32xf32>
    tpu.vector_store %arg7[%136, %c0_41, %c32_42], %139 {strides = array<i32>} : memref<16x2x64xf32, #tpu.memory_space<vmem>>, vector<1x2x32xf32>,
    %c3_i32 = arith.constant 3 : i32
    %c15_i32_43 = arith.constant 15 : i32
    %140 = arith.subi %c15_i32_43, %c3_i32 : i32
    %141 = arith.index_cast %c3_i32 : i32 to index
    %c0_44 = arith.constant 0 : index
    %c0_45 = arith.constant 0 : index
    %142 = vector.load %arg0[%141, %c0_44, %c0_45] : memref<16x2x256xf32, #tpu.memory_space<vmem>>, vector<1x2x256xf32>
    %143 = vector.shape_cast %142 : vector<1x2x256xf32> to vector<2x256xf32>
    %144 = arith.index_cast %140 : i32 to index
    %c0_46 = arith.constant 0 : index
    %c0_47 = arith.constant 0 : index
    %145 = vector.load %arg0[%144, %c0_46, %c0_47] : memref<16x2x256xf32, #tpu.memory_space<vmem>>, vector<1x2x256xf32>
    %146 = vector.shape_cast %145 : vector<1x2x256xf32> to vector<2x256xf32>
    %147 = arith.select %18, %143, %146 : vector<2x256xi1>, vector<2x256xf32>
    %cst_48 = arith.constant dense<0.000000e+00> : vector<2x256xf32>
    %148 = tpu.matmul %129, %24, %cst_48 {dimension_numbers = #tpu.dot_dimension_numbers<[1], [0], [0], [1], [0, 0, 1, 1], [], []>} : vector<2x64xf32>, vector<64x256xf32>, vector<2x256xf32> -> vector<2x256xf32>
    %149 = arith.addf %147, %148 : vector<2x256xf32>
    %cst_49 = arith.constant 5.000000e-01 : f32
    %150 = vector.broadcast %cst_49 : f32 to vector<2x256xf32>
    %151 = arith.mulf %149, %150 : vector<2x256xf32>
    %152 = arith.select %23, %149, %151 : vector<2x256xi1>, vector<2x256xf32>
    %153 = math.tanh %152 : vector<2x256xf32>
    %cst_50 = arith.constant 5.000000e-01 : f32
    %154 = vector.broadcast %cst_50 : f32 to vector<2x256xf32>
    %155 = arith.mulf %154, %153 : vector<2x256xf32>
    %cst_51 = arith.constant 5.000000e-01 : f32
    %156 = vector.broadcast %cst_51 : f32 to vector<2x256xf32>
    %157 = arith.addf %155, %156 : vector<2x256xf32>
    %158 = arith.select %23, %153, %157 : vector<2x256xi1>, vector<2x256xf32>
    %159 = vector.extract_strided_slice %158 {offsets = [0, 0], sizes = [2, 64], strides = [1, 1]} : vector<2x256xf32> to vector<2x64xf32>
    %160 = vector.extract_strided_slice %158 {offsets = [0, 64], sizes = [2, 64], strides = [1, 1]} : vector<2x256xf32> to vector<2x64xf32>
    %161 = vector.extract_strided_slice %158 {offsets = [0, 128], sizes = [2, 64], strides = [1, 1]} : vector<2x256xf32> to vector<2x64xf32>
    %162 = vector.extract_strided_slice %158 {offsets = [0, 192], sizes = [2, 64], strides = [1, 1]} : vector<2x256xf32> to vector<2x64xf32>
    %163 = arith.mulf %160, %127 : vector<2x64xf32>
    %164 = arith.mulf %159, %161 : vector<2x64xf32>
    %165 = arith.addf %163, %164 : vector<2x64xf32>
    %166 = math.tanh %165 : vector<2x64xf32>
    %167 = arith.mulf %162, %166 : vector<2x64xf32>
    %168 = vector.extract_strided_slice %167 {offsets = [0, 0], sizes = [2, 32], strides = [1, 1]} : vector<2x64xf32> to vector<2x32xf32>
    %169 = arith.index_cast %c3_i32 : i32 to index
    %c0_52 = arith.constant 0 : index
    %c0_53 = arith.constant 0 : index
    %170 = vector.load %arg7[%169, %c0_52, %c0_53] : memref<16x2x64xf32, #tpu.memory_space<vmem>>, vector<1x2x32xf32>
    %171 = vector.shape_cast %170 : vector<1x2x32xf32> to vector<2x32xf32>
    %172 = vector.shape_cast %168 : vector<2x32xf32> to vector<1x2x32xf32>
    tpu.vector_store %arg7[%169, %c0_52, %c0_53], %172 {strides = array<i32>} : memref<16x2x64xf32, #tpu.memory_space<vmem>>, vector<1x2x32xf32>,
    %173 = vector.extract_strided_slice %167 {offsets = [0, 32], sizes = [2, 32], strides = [1, 1]} : vector<2x64xf32> to vector<2x32xf32>
    %174 = arith.index_cast %140 : i32 to index
    %c0_54 = arith.constant 0 : index
    %c32_55 = arith.constant 32 : index
    %175 = vector.load %arg7[%174, %c0_54, %c32_55] : memref<16x2x64xf32, #tpu.memory_space<vmem>>, vector<1x2x32xf32>
    %176 = vector.shape_cast %175 : vector<1x2x32xf32> to vector<2x32xf32>
    %177 = vector.shape_cast %173 : vector<2x32xf32> to vector<1x2x32xf32>
    tpu.vector_store %arg7[%174, %c0_54, %c32_55], %177 {strides = array<i32>} : memref<16x2x64xf32, #tpu.memory_space<vmem>>, vector<1x2x32xf32>,
    %c4_i32 = arith.constant 4 : i32
    %c15_i32_56 = arith.constant 15 : i32
    %178 = arith.subi %c15_i32_56, %c4_i32 : i32
    %179 = arith.index_cast %c4_i32 : i32 to index
    %c0_57 = arith.constant 0 : index
    %c0_58 = arith.constant 0 : index
    %180 = vector.load %arg0[%179, %c0_57, %c0_58] : memref<16x2x256xf32, #tpu.memory_space<vmem>>, vector<1x2x256xf32>
    %181 = vector.shape_cast %180 : vector<1x2x256xf32> to vector<2x256xf32>
    %182 = arith.index_cast %178 : i32 to index
    %c0_59 = arith.constant 0 : index
    %c0_60 = arith.constant 0 : index
    %183 = vector.load %arg0[%182, %c0_59, %c0_60] : memref<16x2x256xf32, #tpu.memory_space<vmem>>, vector<1x2x256xf32>
    %184 = vector.shape_cast %183 : vector<1x2x256xf32> to vector<2x256xf32>
    %185 = arith.select %18, %181, %184 : vector<2x256xi1>, vector<2x256xf32>
    %cst_61 = arith.constant dense<0.000000e+00> : vector<2x256xf32>
    %186 = tpu.matmul %167, %24, %cst_61 {dimension_numbers = #tpu.dot_dimension_numbers<[1], [0], [0], [1], [0, 0, 1, 1], [], []>} : vector<2x64xf32>, vector<64x256xf32>, vector<2x256xf32> -> vector<2x256xf32>
    %187 = arith.addf %185, %186 : vector<2x256xf32>
    %cst_62 = arith.constant 5.000000e-01 : f32
    %188 = vector.broadcast %cst_62 : f32 to vector<2x256xf32>
    %189 = arith.mulf %187, %188 : vector<2x256xf32>
    %190 = arith.select %23, %187, %189 : vector<2x256xi1>, vector<2x256xf32>
    %191 = math.tanh %190 : vector<2x256xf32>
    %cst_63 = arith.constant 5.000000e-01 : f32
    %192 = vector.broadcast %cst_63 : f32 to vector<2x256xf32>
    %193 = arith.mulf %192, %191 : vector<2x256xf32>
    %cst_64 = arith.constant 5.000000e-01 : f32
    %194 = vector.broadcast %cst_64 : f32 to vector<2x256xf32>
    %195 = arith.addf %193, %194 : vector<2x256xf32>
    %196 = arith.select %23, %191, %195 : vector<2x256xi1>, vector<2x256xf32>
    %197 = vector.extract_strided_slice %196 {offsets = [0, 0], sizes = [2, 64], strides = [1, 1]} : vector<2x256xf32> to vector<2x64xf32>
    %198 = vector.extract_strided_slice %196 {offsets = [0, 64], sizes = [2, 64], strides = [1, 1]} : vector<2x256xf32> to vector<2x64xf32>
    %199 = vector.extract_strided_slice %196 {offsets = [0, 128], sizes = [2, 64], strides = [1, 1]} : vector<2x256xf32> to vector<2x64xf32>
    %200 = vector.extract_strided_slice %196 {offsets = [0, 192], sizes = [2, 64], strides = [1, 1]} : vector<2x256xf32> to vector<2x64xf32>
    %201 = arith.mulf %198, %165 : vector<2x64xf32>
    %202 = arith.mulf %197, %199 : vector<2x64xf32>
    %203 = arith.addf %201, %202 : vector<2x64xf32>
    %204 = math.tanh %203 : vector<2x64xf32>
    %205 = arith.mulf %200, %204 : vector<2x64xf32>
    %206 = vector.extract_strided_slice %205 {offsets = [0, 0], sizes = [2, 32], strides = [1, 1]} : vector<2x64xf32> to vector<2x32xf32>
    %207 = arith.index_cast %c4_i32 : i32 to index
    %c0_65 = arith.constant 0 : index
    %c0_66 = arith.constant 0 : index
    %208 = vector.load %arg7[%207, %c0_65, %c0_66] : memref<16x2x64xf32, #tpu.memory_space<vmem>>, vector<1x2x32xf32>
    %209 = vector.shape_cast %208 : vector<1x2x32xf32> to vector<2x32xf32>
    %210 = vector.shape_cast %206 : vector<2x32xf32> to vector<1x2x32xf32>
    tpu.vector_store %arg7[%207, %c0_65, %c0_66], %210 {strides = array<i32>} : memref<16x2x64xf32, #tpu.memory_space<vmem>>, vector<1x2x32xf32>,
    %211 = vector.extract_strided_slice %205 {offsets = [0, 32], sizes = [2, 32], strides = [1, 1]} : vector<2x64xf32> to vector<2x32xf32>
    %212 = arith.index_cast %178 : i32 to index
    %c0_67 = arith.constant 0 : index
    %c32_68 = arith.constant 32 : index
    %213 = vector.load %arg7[%212, %c0_67, %c32_68] : memref<16x2x64xf32, #tpu.memory_space<vmem>>, vector<1x2x32xf32>
    %214 = vector.shape_cast %213 : vector<1x2x32xf32> to vector<2x32xf32>
    %215 = vector.shape_cast %211 : vector<2x32xf32> to vector<1x2x32xf32>
    tpu.vector_store %arg7[%212, %c0_67, %c32_68], %215 {strides = array<i32>} : memref<16x2x64xf32, #tpu.memory_space<vmem>>, vector<1x2x32xf32>,
    %c5_i32 = arith.constant 5 : i32
    %c15_i32_69 = arith.constant 15 : i32
    %216 = arith.subi %c15_i32_69, %c5_i32 : i32
    %217 = arith.index_cast %c5_i32 : i32 to index
    %c0_70 = arith.constant 0 : index
    %c0_71 = arith.constant 0 : index
    %218 = vector.load %arg0[%217, %c0_70, %c0_71] : memref<16x2x256xf32, #tpu.memory_space<vmem>>, vector<1x2x256xf32>
    %219 = vector.shape_cast %218 : vector<1x2x256xf32> to vector<2x256xf32>
    %220 = arith.index_cast %216 : i32 to index
    %c0_72 = arith.constant 0 : index
    %c0_73 = arith.constant 0 : index
    %221 = vector.load %arg0[%220, %c0_72, %c0_73] : memref<16x2x256xf32, #tpu.memory_space<vmem>>, vector<1x2x256xf32>
    %222 = vector.shape_cast %221 : vector<1x2x256xf32> to vector<2x256xf32>
    %223 = arith.select %18, %219, %222 : vector<2x256xi1>, vector<2x256xf32>
    %cst_74 = arith.constant dense<0.000000e+00> : vector<2x256xf32>
    %224 = tpu.matmul %205, %24, %cst_74 {dimension_numbers = #tpu.dot_dimension_numbers<[1], [0], [0], [1], [0, 0, 1, 1], [], []>} : vector<2x64xf32>, vector<64x256xf32>, vector<2x256xf32> -> vector<2x256xf32>
    %225 = arith.addf %223, %224 : vector<2x256xf32>
    %cst_75 = arith.constant 5.000000e-01 : f32
    %226 = vector.broadcast %cst_75 : f32 to vector<2x256xf32>
    %227 = arith.mulf %225, %226 : vector<2x256xf32>
    %228 = arith.select %23, %225, %227 : vector<2x256xi1>, vector<2x256xf32>
    %229 = math.tanh %228 : vector<2x256xf32>
    %cst_76 = arith.constant 5.000000e-01 : f32
    %230 = vector.broadcast %cst_76 : f32 to vector<2x256xf32>
    %231 = arith.mulf %230, %229 : vector<2x256xf32>
    %cst_77 = arith.constant 5.000000e-01 : f32
    %232 = vector.broadcast %cst_77 : f32 to vector<2x256xf32>
    %233 = arith.addf %231, %232 : vector<2x256xf32>
    %234 = arith.select %23, %229, %233 : vector<2x256xi1>, vector<2x256xf32>
    %235 = vector.extract_strided_slice %234 {offsets = [0, 0], sizes = [2, 64], strides = [1, 1]} : vector<2x256xf32> to vector<2x64xf32>
    %236 = vector.extract_strided_slice %234 {offsets = [0, 64], sizes = [2, 64], strides = [1, 1]} : vector<2x256xf32> to vector<2x64xf32>
    %237 = vector.extract_strided_slice %234 {offsets = [0, 128], sizes = [2, 64], strides = [1, 1]} : vector<2x256xf32> to vector<2x64xf32>
    %238 = vector.extract_strided_slice %234 {offsets = [0, 192], sizes = [2, 64], strides = [1, 1]} : vector<2x256xf32> to vector<2x64xf32>
    %239 = arith.mulf %236, %203 : vector<2x64xf32>
    %240 = arith.mulf %235, %237 : vector<2x64xf32>
    %241 = arith.addf %239, %240 : vector<2x64xf32>
    %242 = math.tanh %241 : vector<2x64xf32>
    %243 = arith.mulf %238, %242 : vector<2x64xf32>
    %244 = vector.extract_strided_slice %243 {offsets = [0, 0], sizes = [2, 32], strides = [1, 1]} : vector<2x64xf32> to vector<2x32xf32>
    %245 = arith.index_cast %c5_i32 : i32 to index
    %c0_78 = arith.constant 0 : index
    %c0_79 = arith.constant 0 : index
    %246 = vector.load %arg7[%245, %c0_78, %c0_79] : memref<16x2x64xf32, #tpu.memory_space<vmem>>, vector<1x2x32xf32>
    %247 = vector.shape_cast %246 : vector<1x2x32xf32> to vector<2x32xf32>
    %248 = vector.shape_cast %244 : vector<2x32xf32> to vector<1x2x32xf32>
    tpu.vector_store %arg7[%245, %c0_78, %c0_79], %248 {strides = array<i32>} : memref<16x2x64xf32, #tpu.memory_space<vmem>>, vector<1x2x32xf32>,
    %249 = vector.extract_strided_slice %243 {offsets = [0, 32], sizes = [2, 32], strides = [1, 1]} : vector<2x64xf32> to vector<2x32xf32>
    %250 = arith.index_cast %216 : i32 to index
    %c0_80 = arith.constant 0 : index
    %c32_81 = arith.constant 32 : index
    %251 = vector.load %arg7[%250, %c0_80, %c32_81] : memref<16x2x64xf32, #tpu.memory_space<vmem>>, vector<1x2x32xf32>
    %252 = vector.shape_cast %251 : vector<1x2x32xf32> to vector<2x32xf32>
    %253 = vector.shape_cast %249 : vector<2x32xf32> to vector<1x2x32xf32>
    tpu.vector_store %arg7[%250, %c0_80, %c32_81], %253 {strides = array<i32>} : memref<16x2x64xf32, #tpu.memory_space<vmem>>, vector<1x2x32xf32>,
    %c6_i32 = arith.constant 6 : i32
    %c15_i32_82 = arith.constant 15 : i32
    %254 = arith.subi %c15_i32_82, %c6_i32 : i32
    %255 = arith.index_cast %c6_i32 : i32 to index
    %c0_83 = arith.constant 0 : index
    %c0_84 = arith.constant 0 : index
    %256 = vector.load %arg0[%255, %c0_83, %c0_84] : memref<16x2x256xf32, #tpu.memory_space<vmem>>, vector<1x2x256xf32>
    %257 = vector.shape_cast %256 : vector<1x2x256xf32> to vector<2x256xf32>
    %258 = arith.index_cast %254 : i32 to index
    %c0_85 = arith.constant 0 : index
    %c0_86 = arith.constant 0 : index
    %259 = vector.load %arg0[%258, %c0_85, %c0_86] : memref<16x2x256xf32, #tpu.memory_space<vmem>>, vector<1x2x256xf32>
    %260 = vector.shape_cast %259 : vector<1x2x256xf32> to vector<2x256xf32>
    %261 = arith.select %18, %257, %260 : vector<2x256xi1>, vector<2x256xf32>
    %cst_87 = arith.constant dense<0.000000e+00> : vector<2x256xf32>
    %262 = tpu.matmul %243, %24, %cst_87 {dimension_numbers = #tpu.dot_dimension_numbers<[1], [0], [0], [1], [0, 0, 1, 1], [], []>} : vector<2x64xf32>, vector<64x256xf32>, vector<2x256xf32> -> vector<2x256xf32>
    %263 = arith.addf %261, %262 : vector<2x256xf32>
    %cst_88 = arith.constant 5.000000e-01 : f32
    %264 = vector.broadcast %cst_88 : f32 to vector<2x256xf32>
    %265 = arith.mulf %263, %264 : vector<2x256xf32>
    %266 = arith.select %23, %263, %265 : vector<2x256xi1>, vector<2x256xf32>
    %267 = math.tanh %266 : vector<2x256xf32>
    %cst_89 = arith.constant 5.000000e-01 : f32
    %268 = vector.broadcast %cst_89 : f32 to vector<2x256xf32>
    %269 = arith.mulf %268, %267 : vector<2x256xf32>
    %cst_90 = arith.constant 5.000000e-01 : f32
    %270 = vector.broadcast %cst_90 : f32 to vector<2x256xf32>
    %271 = arith.addf %269, %270 : vector<2x256xf32>
    %272 = arith.select %23, %267, %271 : vector<2x256xi1>, vector<2x256xf32>
    %273 = vector.extract_strided_slice %272 {offsets = [0, 0], sizes = [2, 64], strides = [1, 1]} : vector<2x256xf32> to vector<2x64xf32>
    %274 = vector.extract_strided_slice %272 {offsets = [0, 64], sizes = [2, 64], strides = [1, 1]} : vector<2x256xf32> to vector<2x64xf32>
    %275 = vector.extract_strided_slice %272 {offsets = [0, 128], sizes = [2, 64], strides = [1, 1]} : vector<2x256xf32> to vector<2x64xf32>
    %276 = vector.extract_strided_slice %272 {offsets = [0, 192], sizes = [2, 64], strides = [1, 1]} : vector<2x256xf32> to vector<2x64xf32>
    %277 = arith.mulf %274, %241 : vector<2x64xf32>
    %278 = arith.mulf %273, %275 : vector<2x64xf32>
    %279 = arith.addf %277, %278 : vector<2x64xf32>
    %280 = math.tanh %279 : vector<2x64xf32>
    %281 = arith.mulf %276, %280 : vector<2x64xf32>
    %282 = vector.extract_strided_slice %281 {offsets = [0, 0], sizes = [2, 32], strides = [1, 1]} : vector<2x64xf32> to vector<2x32xf32>
    %283 = arith.index_cast %c6_i32 : i32 to index
    %c0_91 = arith.constant 0 : index
    %c0_92 = arith.constant 0 : index
    %284 = vector.load %arg7[%283, %c0_91, %c0_92] : memref<16x2x64xf32, #tpu.memory_space<vmem>>, vector<1x2x32xf32>
    %285 = vector.shape_cast %284 : vector<1x2x32xf32> to vector<2x32xf32>
    %286 = vector.shape_cast %282 : vector<2x32xf32> to vector<1x2x32xf32>
    tpu.vector_store %arg7[%283, %c0_91, %c0_92], %286 {strides = array<i32>} : memref<16x2x64xf32, #tpu.memory_space<vmem>>, vector<1x2x32xf32>,
    %287 = vector.extract_strided_slice %281 {offsets = [0, 32], sizes = [2, 32], strides = [1, 1]} : vector<2x64xf32> to vector<2x32xf32>
    %288 = arith.index_cast %254 : i32 to index
    %c0_93 = arith.constant 0 : index
    %c32_94 = arith.constant 32 : index
    %289 = vector.load %arg7[%288, %c0_93, %c32_94] : memref<16x2x64xf32, #tpu.memory_space<vmem>>, vector<1x2x32xf32>
    %290 = vector.shape_cast %289 : vector<1x2x32xf32> to vector<2x32xf32>
    %291 = vector.shape_cast %287 : vector<2x32xf32> to vector<1x2x32xf32>
    tpu.vector_store %arg7[%288, %c0_93, %c32_94], %291 {strides = array<i32>} : memref<16x2x64xf32, #tpu.memory_space<vmem>>, vector<1x2x32xf32>,
    %c7_i32 = arith.constant 7 : i32
    %c15_i32_95 = arith.constant 15 : i32
    %292 = arith.subi %c15_i32_95, %c7_i32 : i32
    %293 = arith.index_cast %c7_i32 : i32 to index
    %c0_96 = arith.constant 0 : index
    %c0_97 = arith.constant 0 : index
    %294 = vector.load %arg0[%293, %c0_96, %c0_97] : memref<16x2x256xf32, #tpu.memory_space<vmem>>, vector<1x2x256xf32>
    %295 = vector.shape_cast %294 : vector<1x2x256xf32> to vector<2x256xf32>
    %296 = arith.index_cast %292 : i32 to index
    %c0_98 = arith.constant 0 : index
    %c0_99 = arith.constant 0 : index
    %297 = vector.load %arg0[%296, %c0_98, %c0_99] : memref<16x2x256xf32, #tpu.memory_space<vmem>>, vector<1x2x256xf32>
    %298 = vector.shape_cast %297 : vector<1x2x256xf32> to vector<2x256xf32>
    %299 = arith.select %18, %295, %298 : vector<2x256xi1>, vector<2x256xf32>
    %cst_100 = arith.constant dense<0.000000e+00> : vector<2x256xf32>
    %300 = tpu.matmul %281, %24, %cst_100 {dimension_numbers = #tpu.dot_dimension_numbers<[1], [0], [0], [1], [0, 0, 1, 1], [], []>} : vector<2x64xf32>, vector<64x256xf32>, vector<2x256xf32> -> vector<2x256xf32>
    %301 = arith.addf %299, %300 : vector<2x256xf32>
    %cst_101 = arith.constant 5.000000e-01 : f32
    %302 = vector.broadcast %cst_101 : f32 to vector<2x256xf32>
    %303 = arith.mulf %301, %302 : vector<2x256xf32>
    %304 = arith.select %23, %301, %303 : vector<2x256xi1>, vector<2x256xf32>
    %305 = math.tanh %304 : vector<2x256xf32>
    %cst_102 = arith.constant 5.000000e-01 : f32
    %306 = vector.broadcast %cst_102 : f32 to vector<2x256xf32>
    %307 = arith.mulf %306, %305 : vector<2x256xf32>
    %cst_103 = arith.constant 5.000000e-01 : f32
    %308 = vector.broadcast %cst_103 : f32 to vector<2x256xf32>
    %309 = arith.addf %307, %308 : vector<2x256xf32>
    %310 = arith.select %23, %305, %309 : vector<2x256xi1>, vector<2x256xf32>
    %311 = vector.extract_strided_slice %310 {offsets = [0, 0], sizes = [2, 64], strides = [1, 1]} : vector<2x256xf32> to vector<2x64xf32>
    %312 = vector.extract_strided_slice %310 {offsets = [0, 64], sizes = [2, 64], strides = [1, 1]} : vector<2x256xf32> to vector<2x64xf32>
    %313 = vector.extract_strided_slice %310 {offsets = [0, 128], sizes = [2, 64], strides = [1, 1]} : vector<2x256xf32> to vector<2x64xf32>
    %314 = vector.extract_strided_slice %310 {offsets = [0, 192], sizes = [2, 64], strides = [1, 1]} : vector<2x256xf32> to vector<2x64xf32>
    %315 = arith.mulf %312, %279 : vector<2x64xf32>
    %316 = arith.mulf %311, %313 : vector<2x64xf32>
    %317 = arith.addf %315, %316 : vector<2x64xf32>
    %318 = math.tanh %317 : vector<2x64xf32>
    %319 = arith.mulf %314, %318 : vector<2x64xf32>
    %320 = vector.extract_strided_slice %319 {offsets = [0, 0], sizes = [2, 32], strides = [1, 1]} : vector<2x64xf32> to vector<2x32xf32>
    %321 = arith.index_cast %c7_i32 : i32 to index
    %c0_104 = arith.constant 0 : index
    %c0_105 = arith.constant 0 : index
    %322 = vector.load %arg7[%321, %c0_104, %c0_105] : memref<16x2x64xf32, #tpu.memory_space<vmem>>, vector<1x2x32xf32>
    %323 = vector.shape_cast %322 : vector<1x2x32xf32> to vector<2x32xf32>
    %324 = vector.shape_cast %320 : vector<2x32xf32> to vector<1x2x32xf32>
    tpu.vector_store %arg7[%321, %c0_104, %c0_105], %324 {strides = array<i32>} : memref<16x2x64xf32, #tpu.memory_space<vmem>>, vector<1x2x32xf32>,
    %325 = vector.extract_strided_slice %319 {offsets = [0, 32], sizes = [2, 32], strides = [1, 1]} : vector<2x64xf32> to vector<2x32xf32>
    %326 = arith.index_cast %292 : i32 to index
    %c0_106 = arith.constant 0 : index
    %c32_107 = arith.constant 32 : index
    %327 = vector.load %arg7[%326, %c0_106, %c32_107] : memref<16x2x64xf32, #tpu.memory_space<vmem>>, vector<1x2x32xf32>
    %328 = vector.shape_cast %327 : vector<1x2x32xf32> to vector<2x32xf32>
    %329 = vector.shape_cast %325 : vector<2x32xf32> to vector<1x2x32xf32>
    tpu.vector_store %arg7[%326, %c0_106, %c32_107], %329 {strides = array<i32>} : memref<16x2x64xf32, #tpu.memory_space<vmem>>, vector<1x2x32xf32>,
    %c8_i32 = arith.constant 8 : i32
    %c15_i32_108 = arith.constant 15 : i32
    %330 = arith.subi %c15_i32_108, %c8_i32 : i32
    %331 = arith.index_cast %c8_i32 : i32 to index
    %c0_109 = arith.constant 0 : index
    %c0_110 = arith.constant 0 : index
    %332 = vector.load %arg0[%331, %c0_109, %c0_110] : memref<16x2x256xf32, #tpu.memory_space<vmem>>, vector<1x2x256xf32>
    %333 = vector.shape_cast %332 : vector<1x2x256xf32> to vector<2x256xf32>
    %334 = arith.index_cast %330 : i32 to index
    %c0_111 = arith.constant 0 : index
    %c0_112 = arith.constant 0 : index
    %335 = vector.load %arg0[%334, %c0_111, %c0_112] : memref<16x2x256xf32, #tpu.memory_space<vmem>>, vector<1x2x256xf32>
    %336 = vector.shape_cast %335 : vector<1x2x256xf32> to vector<2x256xf32>
    %337 = arith.select %18, %333, %336 : vector<2x256xi1>, vector<2x256xf32>
    %cst_113 = arith.constant dense<0.000000e+00> : vector<2x256xf32>
    %338 = tpu.matmul %319, %24, %cst_113 {dimension_numbers = #tpu.dot_dimension_numbers<[1], [0], [0], [1], [0, 0, 1, 1], [], []>} : vector<2x64xf32>, vector<64x256xf32>, vector<2x256xf32> -> vector<2x256xf32>
    %339 = arith.addf %337, %338 : vector<2x256xf32>
    %cst_114 = arith.constant 5.000000e-01 : f32
    %340 = vector.broadcast %cst_114 : f32 to vector<2x256xf32>
    %341 = arith.mulf %339, %340 : vector<2x256xf32>
    %342 = arith.select %23, %339, %341 : vector<2x256xi1>, vector<2x256xf32>
    %343 = math.tanh %342 : vector<2x256xf32>
    %cst_115 = arith.constant 5.000000e-01 : f32
    %344 = vector.broadcast %cst_115 : f32 to vector<2x256xf32>
    %345 = arith.mulf %344, %343 : vector<2x256xf32>
    %cst_116 = arith.constant 5.000000e-01 : f32
    %346 = vector.broadcast %cst_116 : f32 to vector<2x256xf32>
    %347 = arith.addf %345, %346 : vector<2x256xf32>
    %348 = arith.select %23, %343, %347 : vector<2x256xi1>, vector<2x256xf32>
    %349 = vector.extract_strided_slice %348 {offsets = [0, 0], sizes = [2, 64], strides = [1, 1]} : vector<2x256xf32> to vector<2x64xf32>
    %350 = vector.extract_strided_slice %348 {offsets = [0, 64], sizes = [2, 64], strides = [1, 1]} : vector<2x256xf32> to vector<2x64xf32>
    %351 = vector.extract_strided_slice %348 {offsets = [0, 128], sizes = [2, 64], strides = [1, 1]} : vector<2x256xf32> to vector<2x64xf32>
    %352 = vector.extract_strided_slice %348 {offsets = [0, 192], sizes = [2, 64], strides = [1, 1]} : vector<2x256xf32> to vector<2x64xf32>
    %353 = arith.mulf %350, %317 : vector<2x64xf32>
    %354 = arith.mulf %349, %351 : vector<2x64xf32>
    %355 = arith.addf %353, %354 : vector<2x64xf32>
    %356 = math.tanh %355 : vector<2x64xf32>
    %357 = arith.mulf %352, %356 : vector<2x64xf32>
    %358 = vector.extract_strided_slice %357 {offsets = [0, 0], sizes = [2, 32], strides = [1, 1]} : vector<2x64xf32> to vector<2x32xf32>
    %359 = arith.index_cast %c8_i32 : i32 to index
    %c0_117 = arith.constant 0 : index
    %c0_118 = arith.constant 0 : index
    %360 = vector.load %arg7[%359, %c0_117, %c0_118] : memref<16x2x64xf32, #tpu.memory_space<vmem>>, vector<1x2x32xf32>
    %361 = vector.shape_cast %360 : vector<1x2x32xf32> to vector<2x32xf32>
    %362 = vector.shape_cast %358 : vector<2x32xf32> to vector<1x2x32xf32>
    tpu.vector_store %arg7[%359, %c0_117, %c0_118], %362 {strides = array<i32>} : memref<16x2x64xf32, #tpu.memory_space<vmem>>, vector<1x2x32xf32>,
    %363 = vector.extract_strided_slice %357 {offsets = [0, 32], sizes = [2, 32], strides = [1, 1]} : vector<2x64xf32> to vector<2x32xf32>
    %364 = arith.index_cast %330 : i32 to index
    %c0_119 = arith.constant 0 : index
    %c32_120 = arith.constant 32 : index
    %365 = vector.load %arg7[%364, %c0_119, %c32_120] : memref<16x2x64xf32, #tpu.memory_space<vmem>>, vector<1x2x32xf32>
    %366 = vector.shape_cast %365 : vector<1x2x32xf32> to vector<2x32xf32>
    %367 = vector.shape_cast %363 : vector<2x32xf32> to vector<1x2x32xf32>
    tpu.vector_store %arg7[%364, %c0_119, %c32_120], %367 {strides = array<i32>} : memref<16x2x64xf32, #tpu.memory_space<vmem>>, vector<1x2x32xf32>,
    %c9_i32 = arith.constant 9 : i32
    %c15_i32_121 = arith.constant 15 : i32
    %368 = arith.subi %c15_i32_121, %c9_i32 : i32
    %369 = arith.index_cast %c9_i32 : i32 to index
    %c0_122 = arith.constant 0 : index
    %c0_123 = arith.constant 0 : index
    %370 = vector.load %arg0[%369, %c0_122, %c0_123] : memref<16x2x256xf32, #tpu.memory_space<vmem>>, vector<1x2x256xf32>
    %371 = vector.shape_cast %370 : vector<1x2x256xf32> to vector<2x256xf32>
    %372 = arith.index_cast %368 : i32 to index
    %c0_124 = arith.constant 0 : index
    %c0_125 = arith.constant 0 : index
    %373 = vector.load %arg0[%372, %c0_124, %c0_125] : memref<16x2x256xf32, #tpu.memory_space<vmem>>, vector<1x2x256xf32>
    %374 = vector.shape_cast %373 : vector<1x2x256xf32> to vector<2x256xf32>
    %375 = arith.select %18, %371, %374 : vector<2x256xi1>, vector<2x256xf32>
    %cst_126 = arith.constant dense<0.000000e+00> : vector<2x256xf32>
    %376 = tpu.matmul %357, %24, %cst_126 {dimension_numbers = #tpu.dot_dimension_numbers<[1], [0], [0], [1], [0, 0, 1, 1], [], []>} : vector<2x64xf32>, vector<64x256xf32>, vector<2x256xf32> -> vector<2x256xf32>
    %377 = arith.addf %375, %376 : vector<2x256xf32>
    %cst_127 = arith.constant 5.000000e-01 : f32
    %378 = vector.broadcast %cst_127 : f32 to vector<2x256xf32>
    %379 = arith.mulf %377, %378 : vector<2x256xf32>
    %380 = arith.select %23, %377, %379 : vector<2x256xi1>, vector<2x256xf32>
    %381 = math.tanh %380 : vector<2x256xf32>
    %cst_128 = arith.constant 5.000000e-01 : f32
    %382 = vector.broadcast %cst_128 : f32 to vector<2x256xf32>
    %383 = arith.mulf %382, %381 : vector<2x256xf32>
    %cst_129 = arith.constant 5.000000e-01 : f32
    %384 = vector.broadcast %cst_129 : f32 to vector<2x256xf32>
    %385 = arith.addf %383, %384 : vector<2x256xf32>
    %386 = arith.select %23, %381, %385 : vector<2x256xi1>, vector<2x256xf32>
    %387 = vector.extract_strided_slice %386 {offsets = [0, 0], sizes = [2, 64], strides = [1, 1]} : vector<2x256xf32> to vector<2x64xf32>
    %388 = vector.extract_strided_slice %386 {offsets = [0, 64], sizes = [2, 64], strides = [1, 1]} : vector<2x256xf32> to vector<2x64xf32>
    %389 = vector.extract_strided_slice %386 {offsets = [0, 128], sizes = [2, 64], strides = [1, 1]} : vector<2x256xf32> to vector<2x64xf32>
    %390 = vector.extract_strided_slice %386 {offsets = [0, 192], sizes = [2, 64], strides = [1, 1]} : vector<2x256xf32> to vector<2x64xf32>
    %391 = arith.mulf %388, %355 : vector<2x64xf32>
    %392 = arith.mulf %387, %389 : vector<2x64xf32>
    %393 = arith.addf %391, %392 : vector<2x64xf32>
    %394 = math.tanh %393 : vector<2x64xf32>
    %395 = arith.mulf %390, %394 : vector<2x64xf32>
    %396 = vector.extract_strided_slice %395 {offsets = [0, 0], sizes = [2, 32], strides = [1, 1]} : vector<2x64xf32> to vector<2x32xf32>
    %397 = arith.index_cast %c9_i32 : i32 to index
    %c0_130 = arith.constant 0 : index
    %c0_131 = arith.constant 0 : index
    %398 = vector.load %arg7[%397, %c0_130, %c0_131] : memref<16x2x64xf32, #tpu.memory_space<vmem>>, vector<1x2x32xf32>
    %399 = vector.shape_cast %398 : vector<1x2x32xf32> to vector<2x32xf32>
    %400 = vector.shape_cast %396 : vector<2x32xf32> to vector<1x2x32xf32>
    tpu.vector_store %arg7[%397, %c0_130, %c0_131], %400 {strides = array<i32>} : memref<16x2x64xf32, #tpu.memory_space<vmem>>, vector<1x2x32xf32>,
    %401 = vector.extract_strided_slice %395 {offsets = [0, 32], sizes = [2, 32], strides = [1, 1]} : vector<2x64xf32> to vector<2x32xf32>
    %402 = arith.index_cast %368 : i32 to index
    %c0_132 = arith.constant 0 : index
    %c32_133 = arith.constant 32 : index
    %403 = vector.load %arg7[%402, %c0_132, %c32_133] : memref<16x2x64xf32, #tpu.memory_space<vmem>>, vector<1x2x32xf32>
    %404 = vector.shape_cast %403 : vector<1x2x32xf32> to vector<2x32xf32>
    %405 = vector.shape_cast %401 : vector<2x32xf32> to vector<1x2x32xf32>
    tpu.vector_store %arg7[%402, %c0_132, %c32_133], %405 {strides = array<i32>} : memref<16x2x64xf32, #tpu.memory_space<vmem>>, vector<1x2x32xf32>,
    %c10_i32 = arith.constant 10 : i32
    %c15_i32_134 = arith.constant 15 : i32
    %406 = arith.subi %c15_i32_134, %c10_i32 : i32
    %407 = arith.index_cast %c10_i32 : i32 to index
    %c0_135 = arith.constant 0 : index
    %c0_136 = arith.constant 0 : index
    %408 = vector.load %arg0[%407, %c0_135, %c0_136] : memref<16x2x256xf32, #tpu.memory_space<vmem>>, vector<1x2x256xf32>
    %409 = vector.shape_cast %408 : vector<1x2x256xf32> to vector<2x256xf32>
    %410 = arith.index_cast %406 : i32 to index
    %c0_137 = arith.constant 0 : index
    %c0_138 = arith.constant 0 : index
    %411 = vector.load %arg0[%410, %c0_137, %c0_138] : memref<16x2x256xf32, #tpu.memory_space<vmem>>, vector<1x2x256xf32>
    %412 = vector.shape_cast %411 : vector<1x2x256xf32> to vector<2x256xf32>
    %413 = arith.select %18, %409, %412 : vector<2x256xi1>, vector<2x256xf32>
    %cst_139 = arith.constant dense<0.000000e+00> : vector<2x256xf32>
    %414 = tpu.matmul %395, %24, %cst_139 {dimension_numbers = #tpu.dot_dimension_numbers<[1], [0], [0], [1], [0, 0, 1, 1], [], []>} : vector<2x64xf32>, vector<64x256xf32>, vector<2x256xf32> -> vector<2x256xf32>
    %415 = arith.addf %413, %414 : vector<2x256xf32>
    %cst_140 = arith.constant 5.000000e-01 : f32
    %416 = vector.broadcast %cst_140 : f32 to vector<2x256xf32>
    %417 = arith.mulf %415, %416 : vector<2x256xf32>
    %418 = arith.select %23, %415, %417 : vector<2x256xi1>, vector<2x256xf32>
    %419 = math.tanh %418 : vector<2x256xf32>
    %cst_141 = arith.constant 5.000000e-01 : f32
    %420 = vector.broadcast %cst_141 : f32 to vector<2x256xf32>
    %421 = arith.mulf %420, %419 : vector<2x256xf32>
    %cst_142 = arith.constant 5.000000e-01 : f32
    %422 = vector.broadcast %cst_142 : f32 to vector<2x256xf32>
    %423 = arith.addf %421, %422 : vector<2x256xf32>
    %424 = arith.select %23, %419, %423 : vector<2x256xi1>, vector<2x256xf32>
    %425 = vector.extract_strided_slice %424 {offsets = [0, 0], sizes = [2, 64], strides = [1, 1]} : vector<2x256xf32> to vector<2x64xf32>
    %426 = vector.extract_strided_slice %424 {offsets = [0, 64], sizes = [2, 64], strides = [1, 1]} : vector<2x256xf32> to vector<2x64xf32>
    %427 = vector.extract_strided_slice %424 {offsets = [0, 128], sizes = [2, 64], strides = [1, 1]} : vector<2x256xf32> to vector<2x64xf32>
    %428 = vector.extract_strided_slice %424 {offsets = [0, 192], sizes = [2, 64], strides = [1, 1]} : vector<2x256xf32> to vector<2x64xf32>
    %429 = arith.mulf %426, %393 : vector<2x64xf32>
    %430 = arith.mulf %425, %427 : vector<2x64xf32>
    %431 = arith.addf %429, %430 : vector<2x64xf32>
    %432 = math.tanh %431 : vector<2x64xf32>
    %433 = arith.mulf %428, %432 : vector<2x64xf32>
    %434 = vector.extract_strided_slice %433 {offsets = [0, 0], sizes = [2, 32], strides = [1, 1]} : vector<2x64xf32> to vector<2x32xf32>
    %435 = arith.index_cast %c10_i32 : i32 to index
    %c0_143 = arith.constant 0 : index
    %c0_144 = arith.constant 0 : index
    %436 = vector.load %arg7[%435, %c0_143, %c0_144] : memref<16x2x64xf32, #tpu.memory_space<vmem>>, vector<1x2x32xf32>
    %437 = vector.shape_cast %436 : vector<1x2x32xf32> to vector<2x32xf32>
    %438 = vector.shape_cast %434 : vector<2x32xf32> to vector<1x2x32xf32>
    tpu.vector_store %arg7[%435, %c0_143, %c0_144], %438 {strides = array<i32>} : memref<16x2x64xf32, #tpu.memory_space<vmem>>, vector<1x2x32xf32>,
    %439 = vector.extract_strided_slice %433 {offsets = [0, 32], sizes = [2, 32], strides = [1, 1]} : vector<2x64xf32> to vector<2x32xf32>
    %440 = arith.index_cast %406 : i32 to index
    %c0_145 = arith.constant 0 : index
    %c32_146 = arith.constant 32 : index
    %441 = vector.load %arg7[%440, %c0_145, %c32_146] : memref<16x2x64xf32, #tpu.memory_space<vmem>>, vector<1x2x32xf32>
    %442 = vector.shape_cast %441 : vector<1x2x32xf32> to vector<2x32xf32>
    %443 = vector.shape_cast %439 : vector<2x32xf32> to vector<1x2x32xf32>
    tpu.vector_store %arg7[%440, %c0_145, %c32_146], %443 {strides = array<i32>} : memref<16x2x64xf32, #tpu.memory_space<vmem>>, vector<1x2x32xf32>,
    %c11_i32 = arith.constant 11 : i32
    %c15_i32_147 = arith.constant 15 : i32
    %444 = arith.subi %c15_i32_147, %c11_i32 : i32
    %445 = arith.index_cast %c11_i32 : i32 to index
    %c0_148 = arith.constant 0 : index
    %c0_149 = arith.constant 0 : index
    %446 = vector.load %arg0[%445, %c0_148, %c0_149] : memref<16x2x256xf32, #tpu.memory_space<vmem>>, vector<1x2x256xf32>
    %447 = vector.shape_cast %446 : vector<1x2x256xf32> to vector<2x256xf32>
    %448 = arith.index_cast %444 : i32 to index
    %c0_150 = arith.constant 0 : index
    %c0_151 = arith.constant 0 : index
    %449 = vector.load %arg0[%448, %c0_150, %c0_151] : memref<16x2x256xf32, #tpu.memory_space<vmem>>, vector<1x2x256xf32>
    %450 = vector.shape_cast %449 : vector<1x2x256xf32> to vector<2x256xf32>
    %451 = arith.select %18, %447, %450 : vector<2x256xi1>, vector<2x256xf32>
    %cst_152 = arith.constant dense<0.000000e+00> : vector<2x256xf32>
    %452 = tpu.matmul %433, %24, %cst_152 {dimension_numbers = #tpu.dot_dimension_numbers<[1], [0], [0], [1], [0, 0, 1, 1], [], []>} : vector<2x64xf32>, vector<64x256xf32>, vector<2x256xf32> -> vector<2x256xf32>
    %453 = arith.addf %451, %452 : vector<2x256xf32>
    %cst_153 = arith.constant 5.000000e-01 : f32
    %454 = vector.broadcast %cst_153 : f32 to vector<2x256xf32>
    %455 = arith.mulf %453, %454 : vector<2x256xf32>
    %456 = arith.select %23, %453, %455 : vector<2x256xi1>, vector<2x256xf32>
    %457 = math.tanh %456 : vector<2x256xf32>
    %cst_154 = arith.constant 5.000000e-01 : f32
    %458 = vector.broadcast %cst_154 : f32 to vector<2x256xf32>
    %459 = arith.mulf %458, %457 : vector<2x256xf32>
    %cst_155 = arith.constant 5.000000e-01 : f32
    %460 = vector.broadcast %cst_155 : f32 to vector<2x256xf32>
    %461 = arith.addf %459, %460 : vector<2x256xf32>
    %462 = arith.select %23, %457, %461 : vector<2x256xi1>, vector<2x256xf32>
    %463 = vector.extract_strided_slice %462 {offsets = [0, 0], sizes = [2, 64], strides = [1, 1]} : vector<2x256xf32> to vector<2x64xf32>
    %464 = vector.extract_strided_slice %462 {offsets = [0, 64], sizes = [2, 64], strides = [1, 1]} : vector<2x256xf32> to vector<2x64xf32>
    %465 = vector.extract_strided_slice %462 {offsets = [0, 128], sizes = [2, 64], strides = [1, 1]} : vector<2x256xf32> to vector<2x64xf32>
    %466 = vector.extract_strided_slice %462 {offsets = [0, 192], sizes = [2, 64], strides = [1, 1]} : vector<2x256xf32> to vector<2x64xf32>
    %467 = arith.mulf %464, %431 : vector<2x64xf32>
    %468 = arith.mulf %463, %465 : vector<2x64xf32>
    %469 = arith.addf %467, %468 : vector<2x64xf32>
    %470 = math.tanh %469 : vector<2x64xf32>
    %471 = arith.mulf %466, %470 : vector<2x64xf32>
    %472 = vector.extract_strided_slice %471 {offsets = [0, 0], sizes = [2, 32], strides = [1, 1]} : vector<2x64xf32> to vector<2x32xf32>
    %473 = arith.index_cast %c11_i32 : i32 to index
    %c0_156 = arith.constant 0 : index
    %c0_157 = arith.constant 0 : index
    %474 = vector.load %arg7[%473, %c0_156, %c0_157] : memref<16x2x64xf32, #tpu.memory_space<vmem>>, vector<1x2x32xf32>
    %475 = vector.shape_cast %474 : vector<1x2x32xf32> to vector<2x32xf32>
    %476 = vector.shape_cast %472 : vector<2x32xf32> to vector<1x2x32xf32>
    tpu.vector_store %arg7[%473, %c0_156, %c0_157], %476 {strides = array<i32>} : memref<16x2x64xf32, #tpu.memory_space<vmem>>, vector<1x2x32xf32>,
    %477 = vector.extract_strided_slice %471 {offsets = [0, 32], sizes = [2, 32], strides = [1, 1]} : vector<2x64xf32> to vector<2x32xf32>
    %478 = arith.index_cast %444 : i32 to index
    %c0_158 = arith.constant 0 : index
    %c32_159 = arith.constant 32 : index
    %479 = vector.load %arg7[%478, %c0_158, %c32_159] : memref<16x2x64xf32, #tpu.memory_space<vmem>>, vector<1x2x32xf32>
    %480 = vector.shape_cast %479 : vector<1x2x32xf32> to vector<2x32xf32>
    %481 = vector.shape_cast %477 : vector<2x32xf32> to vector<1x2x32xf32>
    tpu.vector_store %arg7[%478, %c0_158, %c32_159], %481 {strides = array<i32>} : memref<16x2x64xf32, #tpu.memory_space<vmem>>, vector<1x2x32xf32>,
    %c12_i32 = arith.constant 12 : i32
    %c15_i32_160 = arith.constant 15 : i32
    %482 = arith.subi %c15_i32_160, %c12_i32 : i32
    %483 = arith.index_cast %c12_i32 : i32 to index
    %c0_161 = arith.constant 0 : index
    %c0_162 = arith.constant 0 : index
    %484 = vector.load %arg0[%483, %c0_161, %c0_162] : memref<16x2x256xf32, #tpu.memory_space<vmem>>, vector<1x2x256xf32>
    %485 = vector.shape_cast %484 : vector<1x2x256xf32> to vector<2x256xf32>
    %486 = arith.index_cast %482 : i32 to index
    %c0_163 = arith.constant 0 : index
    %c0_164 = arith.constant 0 : index
    %487 = vector.load %arg0[%486, %c0_163, %c0_164] : memref<16x2x256xf32, #tpu.memory_space<vmem>>, vector<1x2x256xf32>
    %488 = vector.shape_cast %487 : vector<1x2x256xf32> to vector<2x256xf32>
    %489 = arith.select %18, %485, %488 : vector<2x256xi1>, vector<2x256xf32>
    %cst_165 = arith.constant dense<0.000000e+00> : vector<2x256xf32>
    %490 = tpu.matmul %471, %24, %cst_165 {dimension_numbers = #tpu.dot_dimension_numbers<[1], [0], [0], [1], [0, 0, 1, 1], [], []>} : vector<2x64xf32>, vector<64x256xf32>, vector<2x256xf32> -> vector<2x256xf32>
    %491 = arith.addf %489, %490 : vector<2x256xf32>
    %cst_166 = arith.constant 5.000000e-01 : f32
    %492 = vector.broadcast %cst_166 : f32 to vector<2x256xf32>
    %493 = arith.mulf %491, %492 : vector<2x256xf32>
    %494 = arith.select %23, %491, %493 : vector<2x256xi1>, vector<2x256xf32>
    %495 = math.tanh %494 : vector<2x256xf32>
    %cst_167 = arith.constant 5.000000e-01 : f32
    %496 = vector.broadcast %cst_167 : f32 to vector<2x256xf32>
    %497 = arith.mulf %496, %495 : vector<2x256xf32>
    %cst_168 = arith.constant 5.000000e-01 : f32
    %498 = vector.broadcast %cst_168 : f32 to vector<2x256xf32>
    %499 = arith.addf %497, %498 : vector<2x256xf32>
    %500 = arith.select %23, %495, %499 : vector<2x256xi1>, vector<2x256xf32>
    %501 = vector.extract_strided_slice %500 {offsets = [0, 0], sizes = [2, 64], strides = [1, 1]} : vector<2x256xf32> to vector<2x64xf32>
    %502 = vector.extract_strided_slice %500 {offsets = [0, 64], sizes = [2, 64], strides = [1, 1]} : vector<2x256xf32> to vector<2x64xf32>
    %503 = vector.extract_strided_slice %500 {offsets = [0, 128], sizes = [2, 64], strides = [1, 1]} : vector<2x256xf32> to vector<2x64xf32>
    %504 = vector.extract_strided_slice %500 {offsets = [0, 192], sizes = [2, 64], strides = [1, 1]} : vector<2x256xf32> to vector<2x64xf32>
    %505 = arith.mulf %502, %469 : vector<2x64xf32>
    %506 = arith.mulf %501, %503 : vector<2x64xf32>
    %507 = arith.addf %505, %506 : vector<2x64xf32>
    %508 = math.tanh %507 : vector<2x64xf32>
    %509 = arith.mulf %504, %508 : vector<2x64xf32>
    %510 = vector.extract_strided_slice %509 {offsets = [0, 0], sizes = [2, 32], strides = [1, 1]} : vector<2x64xf32> to vector<2x32xf32>
    %511 = arith.index_cast %c12_i32 : i32 to index
    %c0_169 = arith.constant 0 : index
    %c0_170 = arith.constant 0 : index
    %512 = vector.load %arg7[%511, %c0_169, %c0_170] : memref<16x2x64xf32, #tpu.memory_space<vmem>>, vector<1x2x32xf32>
    %513 = vector.shape_cast %512 : vector<1x2x32xf32> to vector<2x32xf32>
    %514 = vector.shape_cast %510 : vector<2x32xf32> to vector<1x2x32xf32>
    tpu.vector_store %arg7[%511, %c0_169, %c0_170], %514 {strides = array<i32>} : memref<16x2x64xf32, #tpu.memory_space<vmem>>, vector<1x2x32xf32>,
    %515 = vector.extract_strided_slice %509 {offsets = [0, 32], sizes = [2, 32], strides = [1, 1]} : vector<2x64xf32> to vector<2x32xf32>
    %516 = arith.index_cast %482 : i32 to index
    %c0_171 = arith.constant 0 : index
    %c32_172 = arith.constant 32 : index
    %517 = vector.load %arg7[%516, %c0_171, %c32_172] : memref<16x2x64xf32, #tpu.memory_space<vmem>>, vector<1x2x32xf32>
    %518 = vector.shape_cast %517 : vector<1x2x32xf32> to vector<2x32xf32>
    %519 = vector.shape_cast %515 : vector<2x32xf32> to vector<1x2x32xf32>
    tpu.vector_store %arg7[%516, %c0_171, %c32_172], %519 {strides = array<i32>} : memref<16x2x64xf32, #tpu.memory_space<vmem>>, vector<1x2x32xf32>,
    %c13_i32 = arith.constant 13 : i32
    %c15_i32_173 = arith.constant 15 : i32
    %520 = arith.subi %c15_i32_173, %c13_i32 : i32
    %521 = arith.index_cast %c13_i32 : i32 to index
    %c0_174 = arith.constant 0 : index
    %c0_175 = arith.constant 0 : index
    %522 = vector.load %arg0[%521, %c0_174, %c0_175] : memref<16x2x256xf32, #tpu.memory_space<vmem>>, vector<1x2x256xf32>
    %523 = vector.shape_cast %522 : vector<1x2x256xf32> to vector<2x256xf32>
    %524 = arith.index_cast %520 : i32 to index
    %c0_176 = arith.constant 0 : index
    %c0_177 = arith.constant 0 : index
    %525 = vector.load %arg0[%524, %c0_176, %c0_177] : memref<16x2x256xf32, #tpu.memory_space<vmem>>, vector<1x2x256xf32>
    %526 = vector.shape_cast %525 : vector<1x2x256xf32> to vector<2x256xf32>
    %527 = arith.select %18, %523, %526 : vector<2x256xi1>, vector<2x256xf32>
    %cst_178 = arith.constant dense<0.000000e+00> : vector<2x256xf32>
    %528 = tpu.matmul %509, %24, %cst_178 {dimension_numbers = #tpu.dot_dimension_numbers<[1], [0], [0], [1], [0, 0, 1, 1], [], []>} : vector<2x64xf32>, vector<64x256xf32>, vector<2x256xf32> -> vector<2x256xf32>
    %529 = arith.addf %527, %528 : vector<2x256xf32>
    %cst_179 = arith.constant 5.000000e-01 : f32
    %530 = vector.broadcast %cst_179 : f32 to vector<2x256xf32>
    %531 = arith.mulf %529, %530 : vector<2x256xf32>
    %532 = arith.select %23, %529, %531 : vector<2x256xi1>, vector<2x256xf32>
    %533 = math.tanh %532 : vector<2x256xf32>
    %cst_180 = arith.constant 5.000000e-01 : f32
    %534 = vector.broadcast %cst_180 : f32 to vector<2x256xf32>
    %535 = arith.mulf %534, %533 : vector<2x256xf32>
    %cst_181 = arith.constant 5.000000e-01 : f32
    %536 = vector.broadcast %cst_181 : f32 to vector<2x256xf32>
    %537 = arith.addf %535, %536 : vector<2x256xf32>
    %538 = arith.select %23, %533, %537 : vector<2x256xi1>, vector<2x256xf32>
    %539 = vector.extract_strided_slice %538 {offsets = [0, 0], sizes = [2, 64], strides = [1, 1]} : vector<2x256xf32> to vector<2x64xf32>
    %540 = vector.extract_strided_slice %538 {offsets = [0, 64], sizes = [2, 64], strides = [1, 1]} : vector<2x256xf32> to vector<2x64xf32>
    %541 = vector.extract_strided_slice %538 {offsets = [0, 128], sizes = [2, 64], strides = [1, 1]} : vector<2x256xf32> to vector<2x64xf32>
    %542 = vector.extract_strided_slice %538 {offsets = [0, 192], sizes = [2, 64], strides = [1, 1]} : vector<2x256xf32> to vector<2x64xf32>
    %543 = arith.mulf %540, %507 : vector<2x64xf32>
    %544 = arith.mulf %539, %541 : vector<2x64xf32>
    %545 = arith.addf %543, %544 : vector<2x64xf32>
    %546 = math.tanh %545 : vector<2x64xf32>
    %547 = arith.mulf %542, %546 : vector<2x64xf32>
    %548 = vector.extract_strided_slice %547 {offsets = [0, 0], sizes = [2, 32], strides = [1, 1]} : vector<2x64xf32> to vector<2x32xf32>
    %549 = arith.index_cast %c13_i32 : i32 to index
    %c0_182 = arith.constant 0 : index
    %c0_183 = arith.constant 0 : index
    %550 = vector.load %arg7[%549, %c0_182, %c0_183] : memref<16x2x64xf32, #tpu.memory_space<vmem>>, vector<1x2x32xf32>
    %551 = vector.shape_cast %550 : vector<1x2x32xf32> to vector<2x32xf32>
    %552 = vector.shape_cast %548 : vector<2x32xf32> to vector<1x2x32xf32>
    tpu.vector_store %arg7[%549, %c0_182, %c0_183], %552 {strides = array<i32>} : memref<16x2x64xf32, #tpu.memory_space<vmem>>, vector<1x2x32xf32>,
    %553 = vector.extract_strided_slice %547 {offsets = [0, 32], sizes = [2, 32], strides = [1, 1]} : vector<2x64xf32> to vector<2x32xf32>
    %554 = arith.index_cast %520 : i32 to index
    %c0_184 = arith.constant 0 : index
    %c32_185 = arith.constant 32 : index
    %555 = vector.load %arg7[%554, %c0_184, %c32_185] : memref<16x2x64xf32, #tpu.memory_space<vmem>>, vector<1x2x32xf32>
    %556 = vector.shape_cast %555 : vector<1x2x32xf32> to vector<2x32xf32>
    %557 = vector.shape_cast %553 : vector<2x32xf32> to vector<1x2x32xf32>
    tpu.vector_store %arg7[%554, %c0_184, %c32_185], %557 {strides = array<i32>} : memref<16x2x64xf32, #tpu.memory_space<vmem>>, vector<1x2x32xf32>,
    %c14_i32 = arith.constant 14 : i32
    %c15_i32_186 = arith.constant 15 : i32
    %558 = arith.subi %c15_i32_186, %c14_i32 : i32
    %559 = arith.index_cast %c14_i32 : i32 to index
    %c0_187 = arith.constant 0 : index
    %c0_188 = arith.constant 0 : index
    %560 = vector.load %arg0[%559, %c0_187, %c0_188] : memref<16x2x256xf32, #tpu.memory_space<vmem>>, vector<1x2x256xf32>
    %561 = vector.shape_cast %560 : vector<1x2x256xf32> to vector<2x256xf32>
    %562 = arith.index_cast %558 : i32 to index
    %c0_189 = arith.constant 0 : index
    %c0_190 = arith.constant 0 : index
    %563 = vector.load %arg0[%562, %c0_189, %c0_190] : memref<16x2x256xf32, #tpu.memory_space<vmem>>, vector<1x2x256xf32>
    %564 = vector.shape_cast %563 : vector<1x2x256xf32> to vector<2x256xf32>
    %565 = arith.select %18, %561, %564 : vector<2x256xi1>, vector<2x256xf32>
    %cst_191 = arith.constant dense<0.000000e+00> : vector<2x256xf32>
    %566 = tpu.matmul %547, %24, %cst_191 {dimension_numbers = #tpu.dot_dimension_numbers<[1], [0], [0], [1], [0, 0, 1, 1], [], []>} : vector<2x64xf32>, vector<64x256xf32>, vector<2x256xf32> -> vector<2x256xf32>
    %567 = arith.addf %565, %566 : vector<2x256xf32>
    %cst_192 = arith.constant 5.000000e-01 : f32
    %568 = vector.broadcast %cst_192 : f32 to vector<2x256xf32>
    %569 = arith.mulf %567, %568 : vector<2x256xf32>
    %570 = arith.select %23, %567, %569 : vector<2x256xi1>, vector<2x256xf32>
    %571 = math.tanh %570 : vector<2x256xf32>
    %cst_193 = arith.constant 5.000000e-01 : f32
    %572 = vector.broadcast %cst_193 : f32 to vector<2x256xf32>
    %573 = arith.mulf %572, %571 : vector<2x256xf32>
    %cst_194 = arith.constant 5.000000e-01 : f32
    %574 = vector.broadcast %cst_194 : f32 to vector<2x256xf32>
    %575 = arith.addf %573, %574 : vector<2x256xf32>
    %576 = arith.select %23, %571, %575 : vector<2x256xi1>, vector<2x256xf32>
    %577 = vector.extract_strided_slice %576 {offsets = [0, 0], sizes = [2, 64], strides = [1, 1]} : vector<2x256xf32> to vector<2x64xf32>
    %578 = vector.extract_strided_slice %576 {offsets = [0, 64], sizes = [2, 64], strides = [1, 1]} : vector<2x256xf32> to vector<2x64xf32>
    %579 = vector.extract_strided_slice %576 {offsets = [0, 128], sizes = [2, 64], strides = [1, 1]} : vector<2x256xf32> to vector<2x64xf32>
    %580 = vector.extract_strided_slice %576 {offsets = [0, 192], sizes = [2, 64], strides = [1, 1]} : vector<2x256xf32> to vector<2x64xf32>
    %581 = arith.mulf %578, %545 : vector<2x64xf32>
    %582 = arith.mulf %577, %579 : vector<2x64xf32>
    %583 = arith.addf %581, %582 : vector<2x64xf32>
    %584 = math.tanh %583 : vector<2x64xf32>
    %585 = arith.mulf %580, %584 : vector<2x64xf32>
    %586 = vector.extract_strided_slice %585 {offsets = [0, 0], sizes = [2, 32], strides = [1, 1]} : vector<2x64xf32> to vector<2x32xf32>
    %587 = arith.index_cast %c14_i32 : i32 to index
    %c0_195 = arith.constant 0 : index
    %c0_196 = arith.constant 0 : index
    %588 = vector.load %arg7[%587, %c0_195, %c0_196] : memref<16x2x64xf32, #tpu.memory_space<vmem>>, vector<1x2x32xf32>
    %589 = vector.shape_cast %588 : vector<1x2x32xf32> to vector<2x32xf32>
    %590 = vector.shape_cast %586 : vector<2x32xf32> to vector<1x2x32xf32>
    tpu.vector_store %arg7[%587, %c0_195, %c0_196], %590 {strides = array<i32>} : memref<16x2x64xf32, #tpu.memory_space<vmem>>, vector<1x2x32xf32>,
    %591 = vector.extract_strided_slice %585 {offsets = [0, 32], sizes = [2, 32], strides = [1, 1]} : vector<2x64xf32> to vector<2x32xf32>
    %592 = arith.index_cast %558 : i32 to index
    %c0_197 = arith.constant 0 : index
    %c32_198 = arith.constant 32 : index
    %593 = vector.load %arg7[%592, %c0_197, %c32_198] : memref<16x2x64xf32, #tpu.memory_space<vmem>>, vector<1x2x32xf32>
    %594 = vector.shape_cast %593 : vector<1x2x32xf32> to vector<2x32xf32>
    %595 = vector.shape_cast %591 : vector<2x32xf32> to vector<1x2x32xf32>
    tpu.vector_store %arg7[%592, %c0_197, %c32_198], %595 {strides = array<i32>} : memref<16x2x64xf32, #tpu.memory_space<vmem>>, vector<1x2x32xf32>,
    %c15_i32_199 = arith.constant 15 : i32
    %c15_i32_200 = arith.constant 15 : i32
    %596 = arith.subi %c15_i32_200, %c15_i32_199 : i32
    %597 = arith.index_cast %c15_i32_199 : i32 to index
    %c0_201 = arith.constant 0 : index
    %c0_202 = arith.constant 0 : index
    %598 = vector.load %arg0[%597, %c0_201, %c0_202] : memref<16x2x256xf32, #tpu.memory_space<vmem>>, vector<1x2x256xf32>
    %599 = vector.shape_cast %598 : vector<1x2x256xf32> to vector<2x256xf32>
    %600 = arith.index_cast %596 : i32 to index
    %c0_203 = arith.constant 0 : index
    %c0_204 = arith.constant 0 : index
    %601 = vector.load %arg0[%600, %c0_203, %c0_204] : memref<16x2x256xf32, #tpu.memory_space<vmem>>, vector<1x2x256xf32>
    %602 = vector.shape_cast %601 : vector<1x2x256xf32> to vector<2x256xf32>
    %603 = arith.select %18, %599, %602 : vector<2x256xi1>, vector<2x256xf32>
    %cst_205 = arith.constant dense<0.000000e+00> : vector<2x256xf32>
    %604 = tpu.matmul %585, %24, %cst_205 {dimension_numbers = #tpu.dot_dimension_numbers<[1], [0], [0], [1], [0, 0, 1, 1], [], []>} : vector<2x64xf32>, vector<64x256xf32>, vector<2x256xf32> -> vector<2x256xf32>
    %605 = arith.addf %603, %604 : vector<2x256xf32>
    %cst_206 = arith.constant 5.000000e-01 : f32
    %606 = vector.broadcast %cst_206 : f32 to vector<2x256xf32>
    %607 = arith.mulf %605, %606 : vector<2x256xf32>
    %608 = arith.select %23, %605, %607 : vector<2x256xi1>, vector<2x256xf32>
    %609 = math.tanh %608 : vector<2x256xf32>
    %cst_207 = arith.constant 5.000000e-01 : f32
    %610 = vector.broadcast %cst_207 : f32 to vector<2x256xf32>
    %611 = arith.mulf %610, %609 : vector<2x256xf32>
    %cst_208 = arith.constant 5.000000e-01 : f32
    %612 = vector.broadcast %cst_208 : f32 to vector<2x256xf32>
    %613 = arith.addf %611, %612 : vector<2x256xf32>
    %614 = arith.select %23, %609, %613 : vector<2x256xi1>, vector<2x256xf32>
    %615 = vector.extract_strided_slice %614 {offsets = [0, 0], sizes = [2, 64], strides = [1, 1]} : vector<2x256xf32> to vector<2x64xf32>
    %616 = vector.extract_strided_slice %614 {offsets = [0, 64], sizes = [2, 64], strides = [1, 1]} : vector<2x256xf32> to vector<2x64xf32>
    %617 = vector.extract_strided_slice %614 {offsets = [0, 128], sizes = [2, 64], strides = [1, 1]} : vector<2x256xf32> to vector<2x64xf32>
    %618 = vector.extract_strided_slice %614 {offsets = [0, 192], sizes = [2, 64], strides = [1, 1]} : vector<2x256xf32> to vector<2x64xf32>
    %619 = arith.mulf %616, %583 : vector<2x64xf32>
    %620 = arith.mulf %615, %617 : vector<2x64xf32>
    %621 = arith.addf %619, %620 : vector<2x64xf32>
    %622 = math.tanh %621 : vector<2x64xf32>
    %623 = arith.mulf %618, %622 : vector<2x64xf32>
    %624 = vector.extract_strided_slice %623 {offsets = [0, 0], sizes = [2, 32], strides = [1, 1]} : vector<2x64xf32> to vector<2x32xf32>
    %625 = arith.index_cast %c15_i32_199 : i32 to index
    %c0_209 = arith.constant 0 : index
    %c0_210 = arith.constant 0 : index
    %626 = vector.load %arg7[%625, %c0_209, %c0_210] : memref<16x2x64xf32, #tpu.memory_space<vmem>>, vector<1x2x32xf32>
    %627 = vector.shape_cast %626 : vector<1x2x32xf32> to vector<2x32xf32>
    %628 = vector.shape_cast %624 : vector<2x32xf32> to vector<1x2x32xf32>
    tpu.vector_store %arg7[%625, %c0_209, %c0_210], %628 {strides = array<i32>} : memref<16x2x64xf32, #tpu.memory_space<vmem>>, vector<1x2x32xf32>,
    %629 = vector.extract_strided_slice %623 {offsets = [0, 32], sizes = [2, 32], strides = [1, 1]} : vector<2x64xf32> to vector<2x32xf32>
    %630 = arith.index_cast %596 : i32 to index
    %c0_211 = arith.constant 0 : index
    %c32_212 = arith.constant 32 : index
    %631 = vector.load %arg7[%630, %c0_211, %c32_212] : memref<16x2x64xf32, #tpu.memory_space<vmem>>, vector<1x2x32xf32>
    %632 = vector.shape_cast %631 : vector<1x2x32xf32> to vector<2x32xf32>
    %633 = vector.shape_cast %629 : vector<2x32xf32> to vector<1x2x32xf32>
    tpu.vector_store %arg7[%630, %c0_211, %c32_212], %633 {strides = array<i32>} : memref<16x2x64xf32, #tpu.memory_space<vmem>>, vector<1x2x32xf32>,
    %c16_i32 = arith.constant 16 : i32
    %c0_213 = arith.constant 0 : index
    %c0_214 = arith.constant 0 : index
    %634 = vector.load %arg2[%c0_213, %c0_214] : memref<64x256xf32, #tpu.memory_space<vmem>>, vector<64x256xf32>
    %c0_215 = arith.constant 0 : index
    %c0_216 = arith.constant 0 : index
    %635 = vector.load %arg3[%c0_215, %c0_216] : memref<1x256xf32, #tpu.memory_space<vmem>>, vector<1x256xf32>
    %636 = vector.shape_cast %635 : vector<1x256xf32> to vector<1x256xf32>
    %637 = vector.broadcast %636 : vector<1x256xf32> to vector<2x256xf32>
    %c0_217 = arith.constant 0 : index
    %c0_218 = arith.constant 0 : index
    %638 = vector.load %arg4[%c0_217, %c0_218] : memref<64x256xf32, #tpu.memory_space<vmem>>, vector<64x256xf32>
    %c0_i32_219 = arith.constant 0 : i32
    %639 = arith.index_cast %c0_i32_219 : i32 to index
    %c0_220 = arith.constant 0 : index
    %c0_221 = arith.constant 0 : index
    %640 = vector.load %arg7[%639, %c0_220, %c0_221] : memref<16x2x64xf32, #tpu.memory_space<vmem>>, vector<1x2x64xf32>
    %641 = vector.shape_cast %640 : vector<1x2x64xf32> to vector<2x64xf32>
    %cst_222 = arith.constant dense<0.000000e+00> : vector<2x256xf32>
    %642 = tpu.matmul %641, %634, %cst_222 {dimension_numbers = #tpu.dot_dimension_numbers<[1], [0], [0], [1], [0, 0, 1, 1], [], []>} : vector<2x64xf32>, vector<64x256xf32>, vector<2x256xf32> -> vector<2x256xf32>
    %643 = arith.addf %642, %637 : vector<2x256xf32>
    %644 = arith.index_cast %c0_i32_219 : i32 to index
    %c0_223 = arith.constant 0 : index
    %c0_224 = arith.constant 0 : index
    %645 = vector.load %arg6[%644, %c0_223, %c0_224] : memref<16x2x256xf32, #tpu.memory_space<vmem>>, vector<1x2x256xf32>
    %646 = vector.shape_cast %645 : vector<1x2x256xf32> to vector<2x256xf32>
    %647 = vector.shape_cast %643 : vector<2x256xf32> to vector<1x2x256xf32>
    tpu.vector_store %arg6[%644, %c0_223, %c0_224], %647 {strides = array<i32>} : memref<16x2x256xf32, #tpu.memory_space<vmem>>, vector<1x2x256xf32>,
    %c1_i32_225 = arith.constant 1 : i32
    %648 = arith.index_cast %c1_i32_225 : i32 to index
    %c0_226 = arith.constant 0 : index
    %c0_227 = arith.constant 0 : index
    %649 = vector.load %arg7[%648, %c0_226, %c0_227] : memref<16x2x64xf32, #tpu.memory_space<vmem>>, vector<1x2x64xf32>
    %650 = vector.shape_cast %649 : vector<1x2x64xf32> to vector<2x64xf32>
    %cst_228 = arith.constant dense<0.000000e+00> : vector<2x256xf32>
    %651 = tpu.matmul %650, %634, %cst_228 {dimension_numbers = #tpu.dot_dimension_numbers<[1], [0], [0], [1], [0, 0, 1, 1], [], []>} : vector<2x64xf32>, vector<64x256xf32>, vector<2x256xf32> -> vector<2x256xf32>
    %652 = arith.addf %651, %637 : vector<2x256xf32>
    %653 = arith.index_cast %c1_i32_225 : i32 to index
    %c0_229 = arith.constant 0 : index
    %c0_230 = arith.constant 0 : index
    %654 = vector.load %arg6[%653, %c0_229, %c0_230] : memref<16x2x256xf32, #tpu.memory_space<vmem>>, vector<1x2x256xf32>
    %655 = vector.shape_cast %654 : vector<1x2x256xf32> to vector<2x256xf32>
    %656 = vector.shape_cast %652 : vector<2x256xf32> to vector<1x2x256xf32>
    tpu.vector_store %arg6[%653, %c0_229, %c0_230], %656 {strides = array<i32>} : memref<16x2x256xf32, #tpu.memory_space<vmem>>, vector<1x2x256xf32>,
    %c2_i32_231 = arith.constant 2 : i32
    %657 = arith.index_cast %c2_i32_231 : i32 to index
    %c0_232 = arith.constant 0 : index
    %c0_233 = arith.constant 0 : index
    %658 = vector.load %arg7[%657, %c0_232, %c0_233] : memref<16x2x64xf32, #tpu.memory_space<vmem>>, vector<1x2x64xf32>
    %659 = vector.shape_cast %658 : vector<1x2x64xf32> to vector<2x64xf32>
    %cst_234 = arith.constant dense<0.000000e+00> : vector<2x256xf32>
    %660 = tpu.matmul %659, %634, %cst_234 {dimension_numbers = #tpu.dot_dimension_numbers<[1], [0], [0], [1], [0, 0, 1, 1], [], []>} : vector<2x64xf32>, vector<64x256xf32>, vector<2x256xf32> -> vector<2x256xf32>
    %661 = arith.addf %660, %637 : vector<2x256xf32>
    %662 = arith.index_cast %c2_i32_231 : i32 to index
    %c0_235 = arith.constant 0 : index
    %c0_236 = arith.constant 0 : index
    %663 = vector.load %arg6[%662, %c0_235, %c0_236] : memref<16x2x256xf32, #tpu.memory_space<vmem>>, vector<1x2x256xf32>
    %664 = vector.shape_cast %663 : vector<1x2x256xf32> to vector<2x256xf32>
    %665 = vector.shape_cast %661 : vector<2x256xf32> to vector<1x2x256xf32>
    tpu.vector_store %arg6[%662, %c0_235, %c0_236], %665 {strides = array<i32>} : memref<16x2x256xf32, #tpu.memory_space<vmem>>, vector<1x2x256xf32>,
    %c3_i32_237 = arith.constant 3 : i32
    %666 = arith.index_cast %c3_i32_237 : i32 to index
    %c0_238 = arith.constant 0 : index
    %c0_239 = arith.constant 0 : index
    %667 = vector.load %arg7[%666, %c0_238, %c0_239] : memref<16x2x64xf32, #tpu.memory_space<vmem>>, vector<1x2x64xf32>
    %668 = vector.shape_cast %667 : vector<1x2x64xf32> to vector<2x64xf32>
    %cst_240 = arith.constant dense<0.000000e+00> : vector<2x256xf32>
    %669 = tpu.matmul %668, %634, %cst_240 {dimension_numbers = #tpu.dot_dimension_numbers<[1], [0], [0], [1], [0, 0, 1, 1], [], []>} : vector<2x64xf32>, vector<64x256xf32>, vector<2x256xf32> -> vector<2x256xf32>
    %670 = arith.addf %669, %637 : vector<2x256xf32>
    %671 = arith.index_cast %c3_i32_237 : i32 to index
    %c0_241 = arith.constant 0 : index
    %c0_242 = arith.constant 0 : index
    %672 = vector.load %arg6[%671, %c0_241, %c0_242] : memref<16x2x256xf32, #tpu.memory_space<vmem>>, vector<1x2x256xf32>
    %673 = vector.shape_cast %672 : vector<1x2x256xf32> to vector<2x256xf32>
    %674 = vector.shape_cast %670 : vector<2x256xf32> to vector<1x2x256xf32>
    tpu.vector_store %arg6[%671, %c0_241, %c0_242], %674 {strides = array<i32>} : memref<16x2x256xf32, #tpu.memory_space<vmem>>, vector<1x2x256xf32>,
    %c4_i32_243 = arith.constant 4 : i32
    %675 = arith.index_cast %c4_i32_243 : i32 to index
    %c0_244 = arith.constant 0 : index
    %c0_245 = arith.constant 0 : index
    %676 = vector.load %arg7[%675, %c0_244, %c0_245] : memref<16x2x64xf32, #tpu.memory_space<vmem>>, vector<1x2x64xf32>
    %677 = vector.shape_cast %676 : vector<1x2x64xf32> to vector<2x64xf32>
    %cst_246 = arith.constant dense<0.000000e+00> : vector<2x256xf32>
    %678 = tpu.matmul %677, %634, %cst_246 {dimension_numbers = #tpu.dot_dimension_numbers<[1], [0], [0], [1], [0, 0, 1, 1], [], []>} : vector<2x64xf32>, vector<64x256xf32>, vector<2x256xf32> -> vector<2x256xf32>
    %679 = arith.addf %678, %637 : vector<2x256xf32>
    %680 = arith.index_cast %c4_i32_243 : i32 to index
    %c0_247 = arith.constant 0 : index
    %c0_248 = arith.constant 0 : index
    %681 = vector.load %arg6[%680, %c0_247, %c0_248] : memref<16x2x256xf32, #tpu.memory_space<vmem>>, vector<1x2x256xf32>
    %682 = vector.shape_cast %681 : vector<1x2x256xf32> to vector<2x256xf32>
    %683 = vector.shape_cast %679 : vector<2x256xf32> to vector<1x2x256xf32>
    tpu.vector_store %arg6[%680, %c0_247, %c0_248], %683 {strides = array<i32>} : memref<16x2x256xf32, #tpu.memory_space<vmem>>, vector<1x2x256xf32>,
    %c5_i32_249 = arith.constant 5 : i32
    %684 = arith.index_cast %c5_i32_249 : i32 to index
    %c0_250 = arith.constant 0 : index
    %c0_251 = arith.constant 0 : index
    %685 = vector.load %arg7[%684, %c0_250, %c0_251] : memref<16x2x64xf32, #tpu.memory_space<vmem>>, vector<1x2x64xf32>
    %686 = vector.shape_cast %685 : vector<1x2x64xf32> to vector<2x64xf32>
    %cst_252 = arith.constant dense<0.000000e+00> : vector<2x256xf32>
    %687 = tpu.matmul %686, %634, %cst_252 {dimension_numbers = #tpu.dot_dimension_numbers<[1], [0], [0], [1], [0, 0, 1, 1], [], []>} : vector<2x64xf32>, vector<64x256xf32>, vector<2x256xf32> -> vector<2x256xf32>
    %688 = arith.addf %687, %637 : vector<2x256xf32>
    %689 = arith.index_cast %c5_i32_249 : i32 to index
    %c0_253 = arith.constant 0 : index
    %c0_254 = arith.constant 0 : index
    %690 = vector.load %arg6[%689, %c0_253, %c0_254] : memref<16x2x256xf32, #tpu.memory_space<vmem>>, vector<1x2x256xf32>
    %691 = vector.shape_cast %690 : vector<1x2x256xf32> to vector<2x256xf32>
    %692 = vector.shape_cast %688 : vector<2x256xf32> to vector<1x2x256xf32>
    tpu.vector_store %arg6[%689, %c0_253, %c0_254], %692 {strides = array<i32>} : memref<16x2x256xf32, #tpu.memory_space<vmem>>, vector<1x2x256xf32>,
    %c6_i32_255 = arith.constant 6 : i32
    %693 = arith.index_cast %c6_i32_255 : i32 to index
    %c0_256 = arith.constant 0 : index
    %c0_257 = arith.constant 0 : index
    %694 = vector.load %arg7[%693, %c0_256, %c0_257] : memref<16x2x64xf32, #tpu.memory_space<vmem>>, vector<1x2x64xf32>
    %695 = vector.shape_cast %694 : vector<1x2x64xf32> to vector<2x64xf32>
    %cst_258 = arith.constant dense<0.000000e+00> : vector<2x256xf32>
    %696 = tpu.matmul %695, %634, %cst_258 {dimension_numbers = #tpu.dot_dimension_numbers<[1], [0], [0], [1], [0, 0, 1, 1], [], []>} : vector<2x64xf32>, vector<64x256xf32>, vector<2x256xf32> -> vector<2x256xf32>
    %697 = arith.addf %696, %637 : vector<2x256xf32>
    %698 = arith.index_cast %c6_i32_255 : i32 to index
    %c0_259 = arith.constant 0 : index
    %c0_260 = arith.constant 0 : index
    %699 = vector.load %arg6[%698, %c0_259, %c0_260] : memref<16x2x256xf32, #tpu.memory_space<vmem>>, vector<1x2x256xf32>
    %700 = vector.shape_cast %699 : vector<1x2x256xf32> to vector<2x256xf32>
    %701 = vector.shape_cast %697 : vector<2x256xf32> to vector<1x2x256xf32>
    tpu.vector_store %arg6[%698, %c0_259, %c0_260], %701 {strides = array<i32>} : memref<16x2x256xf32, #tpu.memory_space<vmem>>, vector<1x2x256xf32>,
    %c7_i32_261 = arith.constant 7 : i32
    %702 = arith.index_cast %c7_i32_261 : i32 to index
    %c0_262 = arith.constant 0 : index
    %c0_263 = arith.constant 0 : index
    %703 = vector.load %arg7[%702, %c0_262, %c0_263] : memref<16x2x64xf32, #tpu.memory_space<vmem>>, vector<1x2x64xf32>
    %704 = vector.shape_cast %703 : vector<1x2x64xf32> to vector<2x64xf32>
    %cst_264 = arith.constant dense<0.000000e+00> : vector<2x256xf32>
    %705 = tpu.matmul %704, %634, %cst_264 {dimension_numbers = #tpu.dot_dimension_numbers<[1], [0], [0], [1], [0, 0, 1, 1], [], []>} : vector<2x64xf32>, vector<64x256xf32>, vector<2x256xf32> -> vector<2x256xf32>
    %706 = arith.addf %705, %637 : vector<2x256xf32>
    %707 = arith.index_cast %c7_i32_261 : i32 to index
    %c0_265 = arith.constant 0 : index
    %c0_266 = arith.constant 0 : index
    %708 = vector.load %arg6[%707, %c0_265, %c0_266] : memref<16x2x256xf32, #tpu.memory_space<vmem>>, vector<1x2x256xf32>
    %709 = vector.shape_cast %708 : vector<1x2x256xf32> to vector<2x256xf32>
    %710 = vector.shape_cast %706 : vector<2x256xf32> to vector<1x2x256xf32>
    tpu.vector_store %arg6[%707, %c0_265, %c0_266], %710 {strides = array<i32>} : memref<16x2x256xf32, #tpu.memory_space<vmem>>, vector<1x2x256xf32>,
    %c8_i32_267 = arith.constant 8 : i32
    %711 = arith.index_cast %c8_i32_267 : i32 to index
    %c0_268 = arith.constant 0 : index
    %c0_269 = arith.constant 0 : index
    %712 = vector.load %arg7[%711, %c0_268, %c0_269] : memref<16x2x64xf32, #tpu.memory_space<vmem>>, vector<1x2x64xf32>
    %713 = vector.shape_cast %712 : vector<1x2x64xf32> to vector<2x64xf32>
    %cst_270 = arith.constant dense<0.000000e+00> : vector<2x256xf32>
    %714 = tpu.matmul %713, %634, %cst_270 {dimension_numbers = #tpu.dot_dimension_numbers<[1], [0], [0], [1], [0, 0, 1, 1], [], []>} : vector<2x64xf32>, vector<64x256xf32>, vector<2x256xf32> -> vector<2x256xf32>
    %715 = arith.addf %714, %637 : vector<2x256xf32>
    %716 = arith.index_cast %c8_i32_267 : i32 to index
    %c0_271 = arith.constant 0 : index
    %c0_272 = arith.constant 0 : index
    %717 = vector.load %arg6[%716, %c0_271, %c0_272] : memref<16x2x256xf32, #tpu.memory_space<vmem>>, vector<1x2x256xf32>
    %718 = vector.shape_cast %717 : vector<1x2x256xf32> to vector<2x256xf32>
    %719 = vector.shape_cast %715 : vector<2x256xf32> to vector<1x2x256xf32>
    tpu.vector_store %arg6[%716, %c0_271, %c0_272], %719 {strides = array<i32>} : memref<16x2x256xf32, #tpu.memory_space<vmem>>, vector<1x2x256xf32>,
    %c9_i32_273 = arith.constant 9 : i32
    %720 = arith.index_cast %c9_i32_273 : i32 to index
    %c0_274 = arith.constant 0 : index
    %c0_275 = arith.constant 0 : index
    %721 = vector.load %arg7[%720, %c0_274, %c0_275] : memref<16x2x64xf32, #tpu.memory_space<vmem>>, vector<1x2x64xf32>
    %722 = vector.shape_cast %721 : vector<1x2x64xf32> to vector<2x64xf32>
    %cst_276 = arith.constant dense<0.000000e+00> : vector<2x256xf32>
    %723 = tpu.matmul %722, %634, %cst_276 {dimension_numbers = #tpu.dot_dimension_numbers<[1], [0], [0], [1], [0, 0, 1, 1], [], []>} : vector<2x64xf32>, vector<64x256xf32>, vector<2x256xf32> -> vector<2x256xf32>
    %724 = arith.addf %723, %637 : vector<2x256xf32>
    %725 = arith.index_cast %c9_i32_273 : i32 to index
    %c0_277 = arith.constant 0 : index
    %c0_278 = arith.constant 0 : index
    %726 = vector.load %arg6[%725, %c0_277, %c0_278] : memref<16x2x256xf32, #tpu.memory_space<vmem>>, vector<1x2x256xf32>
    %727 = vector.shape_cast %726 : vector<1x2x256xf32> to vector<2x256xf32>
    %728 = vector.shape_cast %724 : vector<2x256xf32> to vector<1x2x256xf32>
    tpu.vector_store %arg6[%725, %c0_277, %c0_278], %728 {strides = array<i32>} : memref<16x2x256xf32, #tpu.memory_space<vmem>>, vector<1x2x256xf32>,
    %c10_i32_279 = arith.constant 10 : i32
    %729 = arith.index_cast %c10_i32_279 : i32 to index
    %c0_280 = arith.constant 0 : index
    %c0_281 = arith.constant 0 : index
    %730 = vector.load %arg7[%729, %c0_280, %c0_281] : memref<16x2x64xf32, #tpu.memory_space<vmem>>, vector<1x2x64xf32>
    %731 = vector.shape_cast %730 : vector<1x2x64xf32> to vector<2x64xf32>
    %cst_282 = arith.constant dense<0.000000e+00> : vector<2x256xf32>
    %732 = tpu.matmul %731, %634, %cst_282 {dimension_numbers = #tpu.dot_dimension_numbers<[1], [0], [0], [1], [0, 0, 1, 1], [], []>} : vector<2x64xf32>, vector<64x256xf32>, vector<2x256xf32> -> vector<2x256xf32>
    %733 = arith.addf %732, %637 : vector<2x256xf32>
    %734 = arith.index_cast %c10_i32_279 : i32 to index
    %c0_283 = arith.constant 0 : index
    %c0_284 = arith.constant 0 : index
    %735 = vector.load %arg6[%734, %c0_283, %c0_284] : memref<16x2x256xf32, #tpu.memory_space<vmem>>, vector<1x2x256xf32>
    %736 = vector.shape_cast %735 : vector<1x2x256xf32> to vector<2x256xf32>
    %737 = vector.shape_cast %733 : vector<2x256xf32> to vector<1x2x256xf32>
    tpu.vector_store %arg6[%734, %c0_283, %c0_284], %737 {strides = array<i32>} : memref<16x2x256xf32, #tpu.memory_space<vmem>>, vector<1x2x256xf32>,
    %c11_i32_285 = arith.constant 11 : i32
    %738 = arith.index_cast %c11_i32_285 : i32 to index
    %c0_286 = arith.constant 0 : index
    %c0_287 = arith.constant 0 : index
    %739 = vector.load %arg7[%738, %c0_286, %c0_287] : memref<16x2x64xf32, #tpu.memory_space<vmem>>, vector<1x2x64xf32>
    %740 = vector.shape_cast %739 : vector<1x2x64xf32> to vector<2x64xf32>
    %cst_288 = arith.constant dense<0.000000e+00> : vector<2x256xf32>
    %741 = tpu.matmul %740, %634, %cst_288 {dimension_numbers = #tpu.dot_dimension_numbers<[1], [0], [0], [1], [0, 0, 1, 1], [], []>} : vector<2x64xf32>, vector<64x256xf32>, vector<2x256xf32> -> vector<2x256xf32>
    %742 = arith.addf %741, %637 : vector<2x256xf32>
    %743 = arith.index_cast %c11_i32_285 : i32 to index
    %c0_289 = arith.constant 0 : index
    %c0_290 = arith.constant 0 : index
    %744 = vector.load %arg6[%743, %c0_289, %c0_290] : memref<16x2x256xf32, #tpu.memory_space<vmem>>, vector<1x2x256xf32>
    %745 = vector.shape_cast %744 : vector<1x2x256xf32> to vector<2x256xf32>
    %746 = vector.shape_cast %742 : vector<2x256xf32> to vector<1x2x256xf32>
    tpu.vector_store %arg6[%743, %c0_289, %c0_290], %746 {strides = array<i32>} : memref<16x2x256xf32, #tpu.memory_space<vmem>>, vector<1x2x256xf32>,
    %c12_i32_291 = arith.constant 12 : i32
    %747 = arith.index_cast %c12_i32_291 : i32 to index
    %c0_292 = arith.constant 0 : index
    %c0_293 = arith.constant 0 : index
    %748 = vector.load %arg7[%747, %c0_292, %c0_293] : memref<16x2x64xf32, #tpu.memory_space<vmem>>, vector<1x2x64xf32>
    %749 = vector.shape_cast %748 : vector<1x2x64xf32> to vector<2x64xf32>
    %cst_294 = arith.constant dense<0.000000e+00> : vector<2x256xf32>
    %750 = tpu.matmul %749, %634, %cst_294 {dimension_numbers = #tpu.dot_dimension_numbers<[1], [0], [0], [1], [0, 0, 1, 1], [], []>} : vector<2x64xf32>, vector<64x256xf32>, vector<2x256xf32> -> vector<2x256xf32>
    %751 = arith.addf %750, %637 : vector<2x256xf32>
    %752 = arith.index_cast %c12_i32_291 : i32 to index
    %c0_295 = arith.constant 0 : index
    %c0_296 = arith.constant 0 : index
    %753 = vector.load %arg6[%752, %c0_295, %c0_296] : memref<16x2x256xf32, #tpu.memory_space<vmem>>, vector<1x2x256xf32>
    %754 = vector.shape_cast %753 : vector<1x2x256xf32> to vector<2x256xf32>
    %755 = vector.shape_cast %751 : vector<2x256xf32> to vector<1x2x256xf32>
    tpu.vector_store %arg6[%752, %c0_295, %c0_296], %755 {strides = array<i32>} : memref<16x2x256xf32, #tpu.memory_space<vmem>>, vector<1x2x256xf32>,
    %c13_i32_297 = arith.constant 13 : i32
    %756 = arith.index_cast %c13_i32_297 : i32 to index
    %c0_298 = arith.constant 0 : index
    %c0_299 = arith.constant 0 : index
    %757 = vector.load %arg7[%756, %c0_298, %c0_299] : memref<16x2x64xf32, #tpu.memory_space<vmem>>, vector<1x2x64xf32>
    %758 = vector.shape_cast %757 : vector<1x2x64xf32> to vector<2x64xf32>
    %cst_300 = arith.constant dense<0.000000e+00> : vector<2x256xf32>
    %759 = tpu.matmul %758, %634, %cst_300 {dimension_numbers = #tpu.dot_dimension_numbers<[1], [0], [0], [1], [0, 0, 1, 1], [], []>} : vector<2x64xf32>, vector<64x256xf32>, vector<2x256xf32> -> vector<2x256xf32>
    %760 = arith.addf %759, %637 : vector<2x256xf32>
    %761 = arith.index_cast %c13_i32_297 : i32 to index
    %c0_301 = arith.constant 0 : index
    %c0_302 = arith.constant 0 : index
    %762 = vector.load %arg6[%761, %c0_301, %c0_302] : memref<16x2x256xf32, #tpu.memory_space<vmem>>, vector<1x2x256xf32>
    %763 = vector.shape_cast %762 : vector<1x2x256xf32> to vector<2x256xf32>
    %764 = vector.shape_cast %760 : vector<2x256xf32> to vector<1x2x256xf32>
    tpu.vector_store %arg6[%761, %c0_301, %c0_302], %764 {strides = array<i32>} : memref<16x2x256xf32, #tpu.memory_space<vmem>>, vector<1x2x256xf32>,
    %c14_i32_303 = arith.constant 14 : i32
    %765 = arith.index_cast %c14_i32_303 : i32 to index
    %c0_304 = arith.constant 0 : index
    %c0_305 = arith.constant 0 : index
    %766 = vector.load %arg7[%765, %c0_304, %c0_305] : memref<16x2x64xf32, #tpu.memory_space<vmem>>, vector<1x2x64xf32>
    %767 = vector.shape_cast %766 : vector<1x2x64xf32> to vector<2x64xf32>
    %cst_306 = arith.constant dense<0.000000e+00> : vector<2x256xf32>
    %768 = tpu.matmul %767, %634, %cst_306 {dimension_numbers = #tpu.dot_dimension_numbers<[1], [0], [0], [1], [0, 0, 1, 1], [], []>} : vector<2x64xf32>, vector<64x256xf32>, vector<2x256xf32> -> vector<2x256xf32>
    %769 = arith.addf %768, %637 : vector<2x256xf32>
    %770 = arith.index_cast %c14_i32_303 : i32 to index
    %c0_307 = arith.constant 0 : index
    %c0_308 = arith.constant 0 : index
    %771 = vector.load %arg6[%770, %c0_307, %c0_308] : memref<16x2x256xf32, #tpu.memory_space<vmem>>, vector<1x2x256xf32>
    %772 = vector.shape_cast %771 : vector<1x2x256xf32> to vector<2x256xf32>
    %773 = vector.shape_cast %769 : vector<2x256xf32> to vector<1x2x256xf32>
    tpu.vector_store %arg6[%770, %c0_307, %c0_308], %773 {strides = array<i32>} : memref<16x2x256xf32, #tpu.memory_space<vmem>>, vector<1x2x256xf32>,
    %c15_i32_309 = arith.constant 15 : i32
    %774 = arith.index_cast %c15_i32_309 : i32 to index
    %c0_310 = arith.constant 0 : index
    %c0_311 = arith.constant 0 : index
    %775 = vector.load %arg7[%774, %c0_310, %c0_311] : memref<16x2x64xf32, #tpu.memory_space<vmem>>, vector<1x2x64xf32>
    %776 = vector.shape_cast %775 : vector<1x2x64xf32> to vector<2x64xf32>
    %cst_312 = arith.constant dense<0.000000e+00> : vector<2x256xf32>
    %777 = tpu.matmul %776, %634, %cst_312 {dimension_numbers = #tpu.dot_dimension_numbers<[1], [0], [0], [1], [0, 0, 1, 1], [], []>} : vector<2x64xf32>, vector<64x256xf32>, vector<2x256xf32> -> vector<2x256xf32>
    %778 = arith.addf %777, %637 : vector<2x256xf32>
    %779 = arith.index_cast %c15_i32_309 : i32 to index
    %c0_313 = arith.constant 0 : index
    %c0_314 = arith.constant 0 : index
    %780 = vector.load %arg6[%779, %c0_313, %c0_314] : memref<16x2x256xf32, #tpu.memory_space<vmem>>, vector<1x2x256xf32>
    %781 = vector.shape_cast %780 : vector<1x2x256xf32> to vector<2x256xf32>
    %782 = vector.shape_cast %778 : vector<2x256xf32> to vector<1x2x256xf32>
    tpu.vector_store %arg6[%779, %c0_313, %c0_314], %782 {strides = array<i32>} : memref<16x2x256xf32, #tpu.memory_space<vmem>>, vector<1x2x256xf32>,
    %c16_i32_315 = arith.constant 16 : i32
    %cst_316 = arith.constant 0.000000e+00 : f32
    %783 = vector.broadcast %cst_316 : f32 to vector<2x64xf32>
    %cst_317 = arith.constant 0xFF800000 : f32
    %784 = vector.broadcast %cst_317 : f32 to vector<2x64xf32>
    %c0_i32_318 = arith.constant 0 : i32
    %c15_i32_319 = arith.constant 15 : i32
    %785 = arith.subi %c15_i32_319, %c0_i32_318 : i32
    %786 = arith.index_cast %c0_i32_318 : i32 to index
    %c0_320 = arith.constant 0 : index
    %c0_321 = arith.constant 0 : index
    %787 = vector.load %arg6[%786, %c0_320, %c0_321] : memref<16x2x256xf32, #tpu.memory_space<vmem>>, vector<1x2x256xf32>
    %788 = vector.shape_cast %787 : vector<1x2x256xf32> to vector<2x256xf32>
    %789 = arith.index_cast %785 : i32 to index
    %c0_322 = arith.constant 0 : index
    %c0_323 = arith.constant 0 : index
    %790 = vector.load %arg6[%789, %c0_322, %c0_323] : memref<16x2x256xf32, #tpu.memory_space<vmem>>, vector<1x2x256xf32>
    %791 = vector.shape_cast %790 : vector<1x2x256xf32> to vector<2x256xf32>
    %792 = arith.select %18, %788, %791 : vector<2x256xi1>, vector<2x256xf32>
    %cst_324 = arith.constant dense<0.000000e+00> : vector<2x256xf32>
    %793 = tpu.matmul %783, %638, %cst_324 {dimension_numbers = #tpu.dot_dimension_numbers<[1], [0], [0], [1], [0, 0, 1, 1], [], []>} : vector<2x64xf32>, vector<64x256xf32>, vector<2x256xf32> -> vector<2x256xf32>
    %794 = arith.addf %792, %793 : vector<2x256xf32>
    %cst_325 = arith.constant 5.000000e-01 : f32
    %795 = vector.broadcast %cst_325 : f32 to vector<2x256xf32>
    %796 = arith.mulf %794, %795 : vector<2x256xf32>
    %797 = arith.select %23, %794, %796 : vector<2x256xi1>, vector<2x256xf32>
    %798 = math.tanh %797 : vector<2x256xf32>
    %cst_326 = arith.constant 5.000000e-01 : f32
    %799 = vector.broadcast %cst_326 : f32 to vector<2x256xf32>
    %800 = arith.mulf %799, %798 : vector<2x256xf32>
    %cst_327 = arith.constant 5.000000e-01 : f32
    %801 = vector.broadcast %cst_327 : f32 to vector<2x256xf32>
    %802 = arith.addf %800, %801 : vector<2x256xf32>
    %803 = arith.select %23, %798, %802 : vector<2x256xi1>, vector<2x256xf32>
    %804 = vector.extract_strided_slice %803 {offsets = [0, 0], sizes = [2, 64], strides = [1, 1]} : vector<2x256xf32> to vector<2x64xf32>
    %805 = vector.extract_strided_slice %803 {offsets = [0, 64], sizes = [2, 64], strides = [1, 1]} : vector<2x256xf32> to vector<2x64xf32>
    %806 = vector.extract_strided_slice %803 {offsets = [0, 128], sizes = [2, 64], strides = [1, 1]} : vector<2x256xf32> to vector<2x64xf32>
    %807 = vector.extract_strided_slice %803 {offsets = [0, 192], sizes = [2, 64], strides = [1, 1]} : vector<2x256xf32> to vector<2x64xf32>
    %808 = arith.mulf %805, %783 : vector<2x64xf32>
    %809 = arith.mulf %804, %806 : vector<2x64xf32>
    %810 = arith.addf %808, %809 : vector<2x64xf32>
    %811 = math.tanh %810 : vector<2x64xf32>
    %812 = arith.mulf %807, %811 : vector<2x64xf32>
    %813 = arith.maximumf %784, %812 : vector<2x64xf32>
    %c1_i32_328 = arith.constant 1 : i32
    %c15_i32_329 = arith.constant 15 : i32
    %814 = arith.subi %c15_i32_329, %c1_i32_328 : i32
    %815 = arith.index_cast %c1_i32_328 : i32 to index
    %c0_330 = arith.constant 0 : index
    %c0_331 = arith.constant 0 : index
    %816 = vector.load %arg6[%815, %c0_330, %c0_331] : memref<16x2x256xf32, #tpu.memory_space<vmem>>, vector<1x2x256xf32>
    %817 = vector.shape_cast %816 : vector<1x2x256xf32> to vector<2x256xf32>
    %818 = arith.index_cast %814 : i32 to index
    %c0_332 = arith.constant 0 : index
    %c0_333 = arith.constant 0 : index
    %819 = vector.load %arg6[%818, %c0_332, %c0_333] : memref<16x2x256xf32, #tpu.memory_space<vmem>>, vector<1x2x256xf32>
    %820 = vector.shape_cast %819 : vector<1x2x256xf32> to vector<2x256xf32>
    %821 = arith.select %18, %817, %820 : vector<2x256xi1>, vector<2x256xf32>
    %cst_334 = arith.constant dense<0.000000e+00> : vector<2x256xf32>
    %822 = tpu.matmul %812, %638, %cst_334 {dimension_numbers = #tpu.dot_dimension_numbers<[1], [0], [0], [1], [0, 0, 1, 1], [], []>} : vector<2x64xf32>, vector<64x256xf32>, vector<2x256xf32> -> vector<2x256xf32>
    %823 = arith.addf %821, %822 : vector<2x256xf32>
    %cst_335 = arith.constant 5.000000e-01 : f32
    %824 = vector.broadcast %cst_335 : f32 to vector<2x256xf32>
    %825 = arith.mulf %823, %824 : vector<2x256xf32>
    %826 = arith.select %23, %823, %825 : vector<2x256xi1>, vector<2x256xf32>
    %827 = math.tanh %826 : vector<2x256xf32>
    %cst_336 = arith.constant 5.000000e-01 : f32
    %828 = vector.broadcast %cst_336 : f32 to vector<2x256xf32>
    %829 = arith.mulf %828, %827 : vector<2x256xf32>
    %cst_337 = arith.constant 5.000000e-01 : f32
    %830 = vector.broadcast %cst_337 : f32 to vector<2x256xf32>
    %831 = arith.addf %829, %830 : vector<2x256xf32>
    %832 = arith.select %23, %827, %831 : vector<2x256xi1>, vector<2x256xf32>
    %833 = vector.extract_strided_slice %832 {offsets = [0, 0], sizes = [2, 64], strides = [1, 1]} : vector<2x256xf32> to vector<2x64xf32>
    %834 = vector.extract_strided_slice %832 {offsets = [0, 64], sizes = [2, 64], strides = [1, 1]} : vector<2x256xf32> to vector<2x64xf32>
    %835 = vector.extract_strided_slice %832 {offsets = [0, 128], sizes = [2, 64], strides = [1, 1]} : vector<2x256xf32> to vector<2x64xf32>
    %836 = vector.extract_strided_slice %832 {offsets = [0, 192], sizes = [2, 64], strides = [1, 1]} : vector<2x256xf32> to vector<2x64xf32>
    %837 = arith.mulf %834, %810 : vector<2x64xf32>
    %838 = arith.mulf %833, %835 : vector<2x64xf32>
    %839 = arith.addf %837, %838 : vector<2x64xf32>
    %840 = math.tanh %839 : vector<2x64xf32>
    %841 = arith.mulf %836, %840 : vector<2x64xf32>
    %842 = arith.maximumf %813, %841 : vector<2x64xf32>
    %c2_i32_338 = arith.constant 2 : i32
    %c15_i32_339 = arith.constant 15 : i32
    %843 = arith.subi %c15_i32_339, %c2_i32_338 : i32
    %844 = arith.index_cast %c2_i32_338 : i32 to index
    %c0_340 = arith.constant 0 : index
    %c0_341 = arith.constant 0 : index
    %845 = vector.load %arg6[%844, %c0_340, %c0_341] : memref<16x2x256xf32, #tpu.memory_space<vmem>>, vector<1x2x256xf32>
    %846 = vector.shape_cast %845 : vector<1x2x256xf32> to vector<2x256xf32>
    %847 = arith.index_cast %843 : i32 to index
    %c0_342 = arith.constant 0 : index
    %c0_343 = arith.constant 0 : index
    %848 = vector.load %arg6[%847, %c0_342, %c0_343] : memref<16x2x256xf32, #tpu.memory_space<vmem>>, vector<1x2x256xf32>
    %849 = vector.shape_cast %848 : vector<1x2x256xf32> to vector<2x256xf32>
    %850 = arith.select %18, %846, %849 : vector<2x256xi1>, vector<2x256xf32>
    %cst_344 = arith.constant dense<0.000000e+00> : vector<2x256xf32>
    %851 = tpu.matmul %841, %638, %cst_344 {dimension_numbers = #tpu.dot_dimension_numbers<[1], [0], [0], [1], [0, 0, 1, 1], [], []>} : vector<2x64xf32>, vector<64x256xf32>, vector<2x256xf32> -> vector<2x256xf32>
    %852 = arith.addf %850, %851 : vector<2x256xf32>
    %cst_345 = arith.constant 5.000000e-01 : f32
    %853 = vector.broadcast %cst_345 : f32 to vector<2x256xf32>
    %854 = arith.mulf %852, %853 : vector<2x256xf32>
    %855 = arith.select %23, %852, %854 : vector<2x256xi1>, vector<2x256xf32>
    %856 = math.tanh %855 : vector<2x256xf32>
    %cst_346 = arith.constant 5.000000e-01 : f32
    %857 = vector.broadcast %cst_346 : f32 to vector<2x256xf32>
    %858 = arith.mulf %857, %856 : vector<2x256xf32>
    %cst_347 = arith.constant 5.000000e-01 : f32
    %859 = vector.broadcast %cst_347 : f32 to vector<2x256xf32>
    %860 = arith.addf %858, %859 : vector<2x256xf32>
    %861 = arith.select %23, %856, %860 : vector<2x256xi1>, vector<2x256xf32>
    %862 = vector.extract_strided_slice %861 {offsets = [0, 0], sizes = [2, 64], strides = [1, 1]} : vector<2x256xf32> to vector<2x64xf32>
    %863 = vector.extract_strided_slice %861 {offsets = [0, 64], sizes = [2, 64], strides = [1, 1]} : vector<2x256xf32> to vector<2x64xf32>
    %864 = vector.extract_strided_slice %861 {offsets = [0, 128], sizes = [2, 64], strides = [1, 1]} : vector<2x256xf32> to vector<2x64xf32>
    %865 = vector.extract_strided_slice %861 {offsets = [0, 192], sizes = [2, 64], strides = [1, 1]} : vector<2x256xf32> to vector<2x64xf32>
    %866 = arith.mulf %863, %839 : vector<2x64xf32>
    %867 = arith.mulf %862, %864 : vector<2x64xf32>
    %868 = arith.addf %866, %867 : vector<2x64xf32>
    %869 = math.tanh %868 : vector<2x64xf32>
    %870 = arith.mulf %865, %869 : vector<2x64xf32>
    %871 = arith.maximumf %842, %870 : vector<2x64xf32>
    %c3_i32_348 = arith.constant 3 : i32
    %c15_i32_349 = arith.constant 15 : i32
    %872 = arith.subi %c15_i32_349, %c3_i32_348 : i32
    %873 = arith.index_cast %c3_i32_348 : i32 to index
    %c0_350 = arith.constant 0 : index
    %c0_351 = arith.constant 0 : index
    %874 = vector.load %arg6[%873, %c0_350, %c0_351] : memref<16x2x256xf32, #tpu.memory_space<vmem>>, vector<1x2x256xf32>
    %875 = vector.shape_cast %874 : vector<1x2x256xf32> to vector<2x256xf32>
    %876 = arith.index_cast %872 : i32 to index
    %c0_352 = arith.constant 0 : index
    %c0_353 = arith.constant 0 : index
    %877 = vector.load %arg6[%876, %c0_352, %c0_353] : memref<16x2x256xf32, #tpu.memory_space<vmem>>, vector<1x2x256xf32>
    %878 = vector.shape_cast %877 : vector<1x2x256xf32> to vector<2x256xf32>
    %879 = arith.select %18, %875, %878 : vector<2x256xi1>, vector<2x256xf32>
    %cst_354 = arith.constant dense<0.000000e+00> : vector<2x256xf32>
    %880 = tpu.matmul %870, %638, %cst_354 {dimension_numbers = #tpu.dot_dimension_numbers<[1], [0], [0], [1], [0, 0, 1, 1], [], []>} : vector<2x64xf32>, vector<64x256xf32>, vector<2x256xf32> -> vector<2x256xf32>
    %881 = arith.addf %879, %880 : vector<2x256xf32>
    %cst_355 = arith.constant 5.000000e-01 : f32
    %882 = vector.broadcast %cst_355 : f32 to vector<2x256xf32>
    %883 = arith.mulf %881, %882 : vector<2x256xf32>
    %884 = arith.select %23, %881, %883 : vector<2x256xi1>, vector<2x256xf32>
    %885 = math.tanh %884 : vector<2x256xf32>
    %cst_356 = arith.constant 5.000000e-01 : f32
    %886 = vector.broadcast %cst_356 : f32 to vector<2x256xf32>
    %887 = arith.mulf %886, %885 : vector<2x256xf32>
    %cst_357 = arith.constant 5.000000e-01 : f32
    %888 = vector.broadcast %cst_357 : f32 to vector<2x256xf32>
    %889 = arith.addf %887, %888 : vector<2x256xf32>
    %890 = arith.select %23, %885, %889 : vector<2x256xi1>, vector<2x256xf32>
    %891 = vector.extract_strided_slice %890 {offsets = [0, 0], sizes = [2, 64], strides = [1, 1]} : vector<2x256xf32> to vector<2x64xf32>
    %892 = vector.extract_strided_slice %890 {offsets = [0, 64], sizes = [2, 64], strides = [1, 1]} : vector<2x256xf32> to vector<2x64xf32>
    %893 = vector.extract_strided_slice %890 {offsets = [0, 128], sizes = [2, 64], strides = [1, 1]} : vector<2x256xf32> to vector<2x64xf32>
    %894 = vector.extract_strided_slice %890 {offsets = [0, 192], sizes = [2, 64], strides = [1, 1]} : vector<2x256xf32> to vector<2x64xf32>
    %895 = arith.mulf %892, %868 : vector<2x64xf32>
    %896 = arith.mulf %891, %893 : vector<2x64xf32>
    %897 = arith.addf %895, %896 : vector<2x64xf32>
    %898 = math.tanh %897 : vector<2x64xf32>
    %899 = arith.mulf %894, %898 : vector<2x64xf32>
    %900 = arith.maximumf %871, %899 : vector<2x64xf32>
    %c4_i32_358 = arith.constant 4 : i32
    %c15_i32_359 = arith.constant 15 : i32
    %901 = arith.subi %c15_i32_359, %c4_i32_358 : i32
    %902 = arith.index_cast %c4_i32_358 : i32 to index
    %c0_360 = arith.constant 0 : index
    %c0_361 = arith.constant 0 : index
    %903 = vector.load %arg6[%902, %c0_360, %c0_361] : memref<16x2x256xf32, #tpu.memory_space<vmem>>, vector<1x2x256xf32>
    %904 = vector.shape_cast %903 : vector<1x2x256xf32> to vector<2x256xf32>
    %905 = arith.index_cast %901 : i32 to index
    %c0_362 = arith.constant 0 : index
    %c0_363 = arith.constant 0 : index
    %906 = vector.load %arg6[%905, %c0_362, %c0_363] : memref<16x2x256xf32, #tpu.memory_space<vmem>>, vector<1x2x256xf32>
    %907 = vector.shape_cast %906 : vector<1x2x256xf32> to vector<2x256xf32>
    %908 = arith.select %18, %904, %907 : vector<2x256xi1>, vector<2x256xf32>
    %cst_364 = arith.constant dense<0.000000e+00> : vector<2x256xf32>
    %909 = tpu.matmul %899, %638, %cst_364 {dimension_numbers = #tpu.dot_dimension_numbers<[1], [0], [0], [1], [0, 0, 1, 1], [], []>} : vector<2x64xf32>, vector<64x256xf32>, vector<2x256xf32> -> vector<2x256xf32>
    %910 = arith.addf %908, %909 : vector<2x256xf32>
    %cst_365 = arith.constant 5.000000e-01 : f32
    %911 = vector.broadcast %cst_365 : f32 to vector<2x256xf32>
    %912 = arith.mulf %910, %911 : vector<2x256xf32>
    %913 = arith.select %23, %910, %912 : vector<2x256xi1>, vector<2x256xf32>
    %914 = math.tanh %913 : vector<2x256xf32>
    %cst_366 = arith.constant 5.000000e-01 : f32
    %915 = vector.broadcast %cst_366 : f32 to vector<2x256xf32>
    %916 = arith.mulf %915, %914 : vector<2x256xf32>
    %cst_367 = arith.constant 5.000000e-01 : f32
    %917 = vector.broadcast %cst_367 : f32 to vector<2x256xf32>
    %918 = arith.addf %916, %917 : vector<2x256xf32>
    %919 = arith.select %23, %914, %918 : vector<2x256xi1>, vector<2x256xf32>
    %920 = vector.extract_strided_slice %919 {offsets = [0, 0], sizes = [2, 64], strides = [1, 1]} : vector<2x256xf32> to vector<2x64xf32>
    %921 = vector.extract_strided_slice %919 {offsets = [0, 64], sizes = [2, 64], strides = [1, 1]} : vector<2x256xf32> to vector<2x64xf32>
    %922 = vector.extract_strided_slice %919 {offsets = [0, 128], sizes = [2, 64], strides = [1, 1]} : vector<2x256xf32> to vector<2x64xf32>
    %923 = vector.extract_strided_slice %919 {offsets = [0, 192], sizes = [2, 64], strides = [1, 1]} : vector<2x256xf32> to vector<2x64xf32>
    %924 = arith.mulf %921, %897 : vector<2x64xf32>
    %925 = arith.mulf %920, %922 : vector<2x64xf32>
    %926 = arith.addf %924, %925 : vector<2x64xf32>
    %927 = math.tanh %926 : vector<2x64xf32>
    %928 = arith.mulf %923, %927 : vector<2x64xf32>
    %929 = arith.maximumf %900, %928 : vector<2x64xf32>
    %c5_i32_368 = arith.constant 5 : i32
    %c15_i32_369 = arith.constant 15 : i32
    %930 = arith.subi %c15_i32_369, %c5_i32_368 : i32
    %931 = arith.index_cast %c5_i32_368 : i32 to index
    %c0_370 = arith.constant 0 : index
    %c0_371 = arith.constant 0 : index
    %932 = vector.load %arg6[%931, %c0_370, %c0_371] : memref<16x2x256xf32, #tpu.memory_space<vmem>>, vector<1x2x256xf32>
    %933 = vector.shape_cast %932 : vector<1x2x256xf32> to vector<2x256xf32>
    %934 = arith.index_cast %930 : i32 to index
    %c0_372 = arith.constant 0 : index
    %c0_373 = arith.constant 0 : index
    %935 = vector.load %arg6[%934, %c0_372, %c0_373] : memref<16x2x256xf32, #tpu.memory_space<vmem>>, vector<1x2x256xf32>
    %936 = vector.shape_cast %935 : vector<1x2x256xf32> to vector<2x256xf32>
    %937 = arith.select %18, %933, %936 : vector<2x256xi1>, vector<2x256xf32>
    %cst_374 = arith.constant dense<0.000000e+00> : vector<2x256xf32>
    %938 = tpu.matmul %928, %638, %cst_374 {dimension_numbers = #tpu.dot_dimension_numbers<[1], [0], [0], [1], [0, 0, 1, 1], [], []>} : vector<2x64xf32>, vector<64x256xf32>, vector<2x256xf32> -> vector<2x256xf32>
    %939 = arith.addf %937, %938 : vector<2x256xf32>
    %cst_375 = arith.constant 5.000000e-01 : f32
    %940 = vector.broadcast %cst_375 : f32 to vector<2x256xf32>
    %941 = arith.mulf %939, %940 : vector<2x256xf32>
    %942 = arith.select %23, %939, %941 : vector<2x256xi1>, vector<2x256xf32>
    %943 = math.tanh %942 : vector<2x256xf32>
    %cst_376 = arith.constant 5.000000e-01 : f32
    %944 = vector.broadcast %cst_376 : f32 to vector<2x256xf32>
    %945 = arith.mulf %944, %943 : vector<2x256xf32>
    %cst_377 = arith.constant 5.000000e-01 : f32
    %946 = vector.broadcast %cst_377 : f32 to vector<2x256xf32>
    %947 = arith.addf %945, %946 : vector<2x256xf32>
    %948 = arith.select %23, %943, %947 : vector<2x256xi1>, vector<2x256xf32>
    %949 = vector.extract_strided_slice %948 {offsets = [0, 0], sizes = [2, 64], strides = [1, 1]} : vector<2x256xf32> to vector<2x64xf32>
    %950 = vector.extract_strided_slice %948 {offsets = [0, 64], sizes = [2, 64], strides = [1, 1]} : vector<2x256xf32> to vector<2x64xf32>
    %951 = vector.extract_strided_slice %948 {offsets = [0, 128], sizes = [2, 64], strides = [1, 1]} : vector<2x256xf32> to vector<2x64xf32>
    %952 = vector.extract_strided_slice %948 {offsets = [0, 192], sizes = [2, 64], strides = [1, 1]} : vector<2x256xf32> to vector<2x64xf32>
    %953 = arith.mulf %950, %926 : vector<2x64xf32>
    %954 = arith.mulf %949, %951 : vector<2x64xf32>
    %955 = arith.addf %953, %954 : vector<2x64xf32>
    %956 = math.tanh %955 : vector<2x64xf32>
    %957 = arith.mulf %952, %956 : vector<2x64xf32>
    %958 = arith.maximumf %929, %957 : vector<2x64xf32>
    %c6_i32_378 = arith.constant 6 : i32
    %c15_i32_379 = arith.constant 15 : i32
    %959 = arith.subi %c15_i32_379, %c6_i32_378 : i32
    %960 = arith.index_cast %c6_i32_378 : i32 to index
    %c0_380 = arith.constant 0 : index
    %c0_381 = arith.constant 0 : index
    %961 = vector.load %arg6[%960, %c0_380, %c0_381] : memref<16x2x256xf32, #tpu.memory_space<vmem>>, vector<1x2x256xf32>
    %962 = vector.shape_cast %961 : vector<1x2x256xf32> to vector<2x256xf32>
    %963 = arith.index_cast %959 : i32 to index
    %c0_382 = arith.constant 0 : index
    %c0_383 = arith.constant 0 : index
    %964 = vector.load %arg6[%963, %c0_382, %c0_383] : memref<16x2x256xf32, #tpu.memory_space<vmem>>, vector<1x2x256xf32>
    %965 = vector.shape_cast %964 : vector<1x2x256xf32> to vector<2x256xf32>
    %966 = arith.select %18, %962, %965 : vector<2x256xi1>, vector<2x256xf32>
    %cst_384 = arith.constant dense<0.000000e+00> : vector<2x256xf32>
    %967 = tpu.matmul %957, %638, %cst_384 {dimension_numbers = #tpu.dot_dimension_numbers<[1], [0], [0], [1], [0, 0, 1, 1], [], []>} : vector<2x64xf32>, vector<64x256xf32>, vector<2x256xf32> -> vector<2x256xf32>
    %968 = arith.addf %966, %967 : vector<2x256xf32>
    %cst_385 = arith.constant 5.000000e-01 : f32
    %969 = vector.broadcast %cst_385 : f32 to vector<2x256xf32>
    %970 = arith.mulf %968, %969 : vector<2x256xf32>
    %971 = arith.select %23, %968, %970 : vector<2x256xi1>, vector<2x256xf32>
    %972 = math.tanh %971 : vector<2x256xf32>
    %cst_386 = arith.constant 5.000000e-01 : f32
    %973 = vector.broadcast %cst_386 : f32 to vector<2x256xf32>
    %974 = arith.mulf %973, %972 : vector<2x256xf32>
    %cst_387 = arith.constant 5.000000e-01 : f32
    %975 = vector.broadcast %cst_387 : f32 to vector<2x256xf32>
    %976 = arith.addf %974, %975 : vector<2x256xf32>
    %977 = arith.select %23, %972, %976 : vector<2x256xi1>, vector<2x256xf32>
    %978 = vector.extract_strided_slice %977 {offsets = [0, 0], sizes = [2, 64], strides = [1, 1]} : vector<2x256xf32> to vector<2x64xf32>
    %979 = vector.extract_strided_slice %977 {offsets = [0, 64], sizes = [2, 64], strides = [1, 1]} : vector<2x256xf32> to vector<2x64xf32>
    %980 = vector.extract_strided_slice %977 {offsets = [0, 128], sizes = [2, 64], strides = [1, 1]} : vector<2x256xf32> to vector<2x64xf32>
    %981 = vector.extract_strided_slice %977 {offsets = [0, 192], sizes = [2, 64], strides = [1, 1]} : vector<2x256xf32> to vector<2x64xf32>
    %982 = arith.mulf %979, %955 : vector<2x64xf32>
    %983 = arith.mulf %978, %980 : vector<2x64xf32>
    %984 = arith.addf %982, %983 : vector<2x64xf32>
    %985 = math.tanh %984 : vector<2x64xf32>
    %986 = arith.mulf %981, %985 : vector<2x64xf32>
    %987 = arith.maximumf %958, %986 : vector<2x64xf32>
    %c7_i32_388 = arith.constant 7 : i32
    %c15_i32_389 = arith.constant 15 : i32
    %988 = arith.subi %c15_i32_389, %c7_i32_388 : i32
    %989 = arith.index_cast %c7_i32_388 : i32 to index
    %c0_390 = arith.constant 0 : index
    %c0_391 = arith.constant 0 : index
    %990 = vector.load %arg6[%989, %c0_390, %c0_391] : memref<16x2x256xf32, #tpu.memory_space<vmem>>, vector<1x2x256xf32>
    %991 = vector.shape_cast %990 : vector<1x2x256xf32> to vector<2x256xf32>
    %992 = arith.index_cast %988 : i32 to index
    %c0_392 = arith.constant 0 : index
    %c0_393 = arith.constant 0 : index
    %993 = vector.load %arg6[%992, %c0_392, %c0_393] : memref<16x2x256xf32, #tpu.memory_space<vmem>>, vector<1x2x256xf32>
    %994 = vector.shape_cast %993 : vector<1x2x256xf32> to vector<2x256xf32>
    %995 = arith.select %18, %991, %994 : vector<2x256xi1>, vector<2x256xf32>
    %cst_394 = arith.constant dense<0.000000e+00> : vector<2x256xf32>
    %996 = tpu.matmul %986, %638, %cst_394 {dimension_numbers = #tpu.dot_dimension_numbers<[1], [0], [0], [1], [0, 0, 1, 1], [], []>} : vector<2x64xf32>, vector<64x256xf32>, vector<2x256xf32> -> vector<2x256xf32>
    %997 = arith.addf %995, %996 : vector<2x256xf32>
    %cst_395 = arith.constant 5.000000e-01 : f32
    %998 = vector.broadcast %cst_395 : f32 to vector<2x256xf32>
    %999 = arith.mulf %997, %998 : vector<2x256xf32>
    %1000 = arith.select %23, %997, %999 : vector<2x256xi1>, vector<2x256xf32>
    %1001 = math.tanh %1000 : vector<2x256xf32>
    %cst_396 = arith.constant 5.000000e-01 : f32
    %1002 = vector.broadcast %cst_396 : f32 to vector<2x256xf32>
    %1003 = arith.mulf %1002, %1001 : vector<2x256xf32>
    %cst_397 = arith.constant 5.000000e-01 : f32
    %1004 = vector.broadcast %cst_397 : f32 to vector<2x256xf32>
    %1005 = arith.addf %1003, %1004 : vector<2x256xf32>
    %1006 = arith.select %23, %1001, %1005 : vector<2x256xi1>, vector<2x256xf32>
    %1007 = vector.extract_strided_slice %1006 {offsets = [0, 0], sizes = [2, 64], strides = [1, 1]} : vector<2x256xf32> to vector<2x64xf32>
    %1008 = vector.extract_strided_slice %1006 {offsets = [0, 64], sizes = [2, 64], strides = [1, 1]} : vector<2x256xf32> to vector<2x64xf32>
    %1009 = vector.extract_strided_slice %1006 {offsets = [0, 128], sizes = [2, 64], strides = [1, 1]} : vector<2x256xf32> to vector<2x64xf32>
    %1010 = vector.extract_strided_slice %1006 {offsets = [0, 192], sizes = [2, 64], strides = [1, 1]} : vector<2x256xf32> to vector<2x64xf32>
    %1011 = arith.mulf %1008, %984 : vector<2x64xf32>
    %1012 = arith.mulf %1007, %1009 : vector<2x64xf32>
    %1013 = arith.addf %1011, %1012 : vector<2x64xf32>
    %1014 = math.tanh %1013 : vector<2x64xf32>
    %1015 = arith.mulf %1010, %1014 : vector<2x64xf32>
    %1016 = arith.maximumf %987, %1015 : vector<2x64xf32>
    %c8_i32_398 = arith.constant 8 : i32
    %c15_i32_399 = arith.constant 15 : i32
    %1017 = arith.subi %c15_i32_399, %c8_i32_398 : i32
    %1018 = arith.index_cast %c8_i32_398 : i32 to index
    %c0_400 = arith.constant 0 : index
    %c0_401 = arith.constant 0 : index
    %1019 = vector.load %arg6[%1018, %c0_400, %c0_401] : memref<16x2x256xf32, #tpu.memory_space<vmem>>, vector<1x2x256xf32>
    %1020 = vector.shape_cast %1019 : vector<1x2x256xf32> to vector<2x256xf32>
    %1021 = arith.index_cast %1017 : i32 to index
    %c0_402 = arith.constant 0 : index
    %c0_403 = arith.constant 0 : index
    %1022 = vector.load %arg6[%1021, %c0_402, %c0_403] : memref<16x2x256xf32, #tpu.memory_space<vmem>>, vector<1x2x256xf32>
    %1023 = vector.shape_cast %1022 : vector<1x2x256xf32> to vector<2x256xf32>
    %1024 = arith.select %18, %1020, %1023 : vector<2x256xi1>, vector<2x256xf32>
    %cst_404 = arith.constant dense<0.000000e+00> : vector<2x256xf32>
    %1025 = tpu.matmul %1015, %638, %cst_404 {dimension_numbers = #tpu.dot_dimension_numbers<[1], [0], [0], [1], [0, 0, 1, 1], [], []>} : vector<2x64xf32>, vector<64x256xf32>, vector<2x256xf32> -> vector<2x256xf32>
    %1026 = arith.addf %1024, %1025 : vector<2x256xf32>
    %cst_405 = arith.constant 5.000000e-01 : f32
    %1027 = vector.broadcast %cst_405 : f32 to vector<2x256xf32>
    %1028 = arith.mulf %1026, %1027 : vector<2x256xf32>
    %1029 = arith.select %23, %1026, %1028 : vector<2x256xi1>, vector<2x256xf32>
    %1030 = math.tanh %1029 : vector<2x256xf32>
    %cst_406 = arith.constant 5.000000e-01 : f32
    %1031 = vector.broadcast %cst_406 : f32 to vector<2x256xf32>
    %1032 = arith.mulf %1031, %1030 : vector<2x256xf32>
    %cst_407 = arith.constant 5.000000e-01 : f32
    %1033 = vector.broadcast %cst_407 : f32 to vector<2x256xf32>
    %1034 = arith.addf %1032, %1033 : vector<2x256xf32>
    %1035 = arith.select %23, %1030, %1034 : vector<2x256xi1>, vector<2x256xf32>
    %1036 = vector.extract_strided_slice %1035 {offsets = [0, 0], sizes = [2, 64], strides = [1, 1]} : vector<2x256xf32> to vector<2x64xf32>
    %1037 = vector.extract_strided_slice %1035 {offsets = [0, 64], sizes = [2, 64], strides = [1, 1]} : vector<2x256xf32> to vector<2x64xf32>
    %1038 = vector.extract_strided_slice %1035 {offsets = [0, 128], sizes = [2, 64], strides = [1, 1]} : vector<2x256xf32> to vector<2x64xf32>
    %1039 = vector.extract_strided_slice %1035 {offsets = [0, 192], sizes = [2, 64], strides = [1, 1]} : vector<2x256xf32> to vector<2x64xf32>
    %1040 = arith.mulf %1037, %1013 : vector<2x64xf32>
    %1041 = arith.mulf %1036, %1038 : vector<2x64xf32>
    %1042 = arith.addf %1040, %1041 : vector<2x64xf32>
    %1043 = math.tanh %1042 : vector<2x64xf32>
    %1044 = arith.mulf %1039, %1043 : vector<2x64xf32>
    %1045 = arith.maximumf %1016, %1044 : vector<2x64xf32>
    %c9_i32_408 = arith.constant 9 : i32
    %c15_i32_409 = arith.constant 15 : i32
    %1046 = arith.subi %c15_i32_409, %c9_i32_408 : i32
    %1047 = arith.index_cast %c9_i32_408 : i32 to index
    %c0_410 = arith.constant 0 : index
    %c0_411 = arith.constant 0 : index
    %1048 = vector.load %arg6[%1047, %c0_410, %c0_411] : memref<16x2x256xf32, #tpu.memory_space<vmem>>, vector<1x2x256xf32>
    %1049 = vector.shape_cast %1048 : vector<1x2x256xf32> to vector<2x256xf32>
    %1050 = arith.index_cast %1046 : i32 to index
    %c0_412 = arith.constant 0 : index
    %c0_413 = arith.constant 0 : index
    %1051 = vector.load %arg6[%1050, %c0_412, %c0_413] : memref<16x2x256xf32, #tpu.memory_space<vmem>>, vector<1x2x256xf32>
    %1052 = vector.shape_cast %1051 : vector<1x2x256xf32> to vector<2x256xf32>
    %1053 = arith.select %18, %1049, %1052 : vector<2x256xi1>, vector<2x256xf32>
    %cst_414 = arith.constant dense<0.000000e+00> : vector<2x256xf32>
    %1054 = tpu.matmul %1044, %638, %cst_414 {dimension_numbers = #tpu.dot_dimension_numbers<[1], [0], [0], [1], [0, 0, 1, 1], [], []>} : vector<2x64xf32>, vector<64x256xf32>, vector<2x256xf32> -> vector<2x256xf32>
    %1055 = arith.addf %1053, %1054 : vector<2x256xf32>
    %cst_415 = arith.constant 5.000000e-01 : f32
    %1056 = vector.broadcast %cst_415 : f32 to vector<2x256xf32>
    %1057 = arith.mulf %1055, %1056 : vector<2x256xf32>
    %1058 = arith.select %23, %1055, %1057 : vector<2x256xi1>, vector<2x256xf32>
    %1059 = math.tanh %1058 : vector<2x256xf32>
    %cst_416 = arith.constant 5.000000e-01 : f32
    %1060 = vector.broadcast %cst_416 : f32 to vector<2x256xf32>
    %1061 = arith.mulf %1060, %1059 : vector<2x256xf32>
    %cst_417 = arith.constant 5.000000e-01 : f32
    %1062 = vector.broadcast %cst_417 : f32 to vector<2x256xf32>
    %1063 = arith.addf %1061, %1062 : vector<2x256xf32>
    %1064 = arith.select %23, %1059, %1063 : vector<2x256xi1>, vector<2x256xf32>
    %1065 = vector.extract_strided_slice %1064 {offsets = [0, 0], sizes = [2, 64], strides = [1, 1]} : vector<2x256xf32> to vector<2x64xf32>
    %1066 = vector.extract_strided_slice %1064 {offsets = [0, 64], sizes = [2, 64], strides = [1, 1]} : vector<2x256xf32> to vector<2x64xf32>
    %1067 = vector.extract_strided_slice %1064 {offsets = [0, 128], sizes = [2, 64], strides = [1, 1]} : vector<2x256xf32> to vector<2x64xf32>
    %1068 = vector.extract_strided_slice %1064 {offsets = [0, 192], sizes = [2, 64], strides = [1, 1]} : vector<2x256xf32> to vector<2x64xf32>
    %1069 = arith.mulf %1066, %1042 : vector<2x64xf32>
    %1070 = arith.mulf %1065, %1067 : vector<2x64xf32>
    %1071 = arith.addf %1069, %1070 : vector<2x64xf32>
    %1072 = math.tanh %1071 : vector<2x64xf32>
    %1073 = arith.mulf %1068, %1072 : vector<2x64xf32>
    %1074 = arith.maximumf %1045, %1073 : vector<2x64xf32>
    %c10_i32_418 = arith.constant 10 : i32
    %c15_i32_419 = arith.constant 15 : i32
    %1075 = arith.subi %c15_i32_419, %c10_i32_418 : i32
    %1076 = arith.index_cast %c10_i32_418 : i32 to index
    %c0_420 = arith.constant 0 : index
    %c0_421 = arith.constant 0 : index
    %1077 = vector.load %arg6[%1076, %c0_420, %c0_421] : memref<16x2x256xf32, #tpu.memory_space<vmem>>, vector<1x2x256xf32>
    %1078 = vector.shape_cast %1077 : vector<1x2x256xf32> to vector<2x256xf32>
    %1079 = arith.index_cast %1075 : i32 to index
    %c0_422 = arith.constant 0 : index
    %c0_423 = arith.constant 0 : index
    %1080 = vector.load %arg6[%1079, %c0_422, %c0_423] : memref<16x2x256xf32, #tpu.memory_space<vmem>>, vector<1x2x256xf32>
    %1081 = vector.shape_cast %1080 : vector<1x2x256xf32> to vector<2x256xf32>
    %1082 = arith.select %18, %1078, %1081 : vector<2x256xi1>, vector<2x256xf32>
    %cst_424 = arith.constant dense<0.000000e+00> : vector<2x256xf32>
    %1083 = tpu.matmul %1073, %638, %cst_424 {dimension_numbers = #tpu.dot_dimension_numbers<[1], [0], [0], [1], [0, 0, 1, 1], [], []>} : vector<2x64xf32>, vector<64x256xf32>, vector<2x256xf32> -> vector<2x256xf32>
    %1084 = arith.addf %1082, %1083 : vector<2x256xf32>
    %cst_425 = arith.constant 5.000000e-01 : f32
    %1085 = vector.broadcast %cst_425 : f32 to vector<2x256xf32>
    %1086 = arith.mulf %1084, %1085 : vector<2x256xf32>
    %1087 = arith.select %23, %1084, %1086 : vector<2x256xi1>, vector<2x256xf32>
    %1088 = math.tanh %1087 : vector<2x256xf32>
    %cst_426 = arith.constant 5.000000e-01 : f32
    %1089 = vector.broadcast %cst_426 : f32 to vector<2x256xf32>
    %1090 = arith.mulf %1089, %1088 : vector<2x256xf32>
    %cst_427 = arith.constant 5.000000e-01 : f32
    %1091 = vector.broadcast %cst_427 : f32 to vector<2x256xf32>
    %1092 = arith.addf %1090, %1091 : vector<2x256xf32>
    %1093 = arith.select %23, %1088, %1092 : vector<2x256xi1>, vector<2x256xf32>
    %1094 = vector.extract_strided_slice %1093 {offsets = [0, 0], sizes = [2, 64], strides = [1, 1]} : vector<2x256xf32> to vector<2x64xf32>
    %1095 = vector.extract_strided_slice %1093 {offsets = [0, 64], sizes = [2, 64], strides = [1, 1]} : vector<2x256xf32> to vector<2x64xf32>
    %1096 = vector.extract_strided_slice %1093 {offsets = [0, 128], sizes = [2, 64], strides = [1, 1]} : vector<2x256xf32> to vector<2x64xf32>
    %1097 = vector.extract_strided_slice %1093 {offsets = [0, 192], sizes = [2, 64], strides = [1, 1]} : vector<2x256xf32> to vector<2x64xf32>
    %1098 = arith.mulf %1095, %1071 : vector<2x64xf32>
    %1099 = arith.mulf %1094, %1096 : vector<2x64xf32>
    %1100 = arith.addf %1098, %1099 : vector<2x64xf32>
    %1101 = math.tanh %1100 : vector<2x64xf32>
    %1102 = arith.mulf %1097, %1101 : vector<2x64xf32>
    %1103 = arith.maximumf %1074, %1102 : vector<2x64xf32>
    %c11_i32_428 = arith.constant 11 : i32
    %c15_i32_429 = arith.constant 15 : i32
    %1104 = arith.subi %c15_i32_429, %c11_i32_428 : i32
    %1105 = arith.index_cast %c11_i32_428 : i32 to index
    %c0_430 = arith.constant 0 : index
    %c0_431 = arith.constant 0 : index
    %1106 = vector.load %arg6[%1105, %c0_430, %c0_431] : memref<16x2x256xf32, #tpu.memory_space<vmem>>, vector<1x2x256xf32>
    %1107 = vector.shape_cast %1106 : vector<1x2x256xf32> to vector<2x256xf32>
    %1108 = arith.index_cast %1104 : i32 to index
    %c0_432 = arith.constant 0 : index
    %c0_433 = arith.constant 0 : index
    %1109 = vector.load %arg6[%1108, %c0_432, %c0_433] : memref<16x2x256xf32, #tpu.memory_space<vmem>>, vector<1x2x256xf32>
    %1110 = vector.shape_cast %1109 : vector<1x2x256xf32> to vector<2x256xf32>
    %1111 = arith.select %18, %1107, %1110 : vector<2x256xi1>, vector<2x256xf32>
    %cst_434 = arith.constant dense<0.000000e+00> : vector<2x256xf32>
    %1112 = tpu.matmul %1102, %638, %cst_434 {dimension_numbers = #tpu.dot_dimension_numbers<[1], [0], [0], [1], [0, 0, 1, 1], [], []>} : vector<2x64xf32>, vector<64x256xf32>, vector<2x256xf32> -> vector<2x256xf32>
    %1113 = arith.addf %1111, %1112 : vector<2x256xf32>
    %cst_435 = arith.constant 5.000000e-01 : f32
    %1114 = vector.broadcast %cst_435 : f32 to vector<2x256xf32>
    %1115 = arith.mulf %1113, %1114 : vector<2x256xf32>
    %1116 = arith.select %23, %1113, %1115 : vector<2x256xi1>, vector<2x256xf32>
    %1117 = math.tanh %1116 : vector<2x256xf32>
    %cst_436 = arith.constant 5.000000e-01 : f32
    %1118 = vector.broadcast %cst_436 : f32 to vector<2x256xf32>
    %1119 = arith.mulf %1118, %1117 : vector<2x256xf32>
    %cst_437 = arith.constant 5.000000e-01 : f32
    %1120 = vector.broadcast %cst_437 : f32 to vector<2x256xf32>
    %1121 = arith.addf %1119, %1120 : vector<2x256xf32>
    %1122 = arith.select %23, %1117, %1121 : vector<2x256xi1>, vector<2x256xf32>
    %1123 = vector.extract_strided_slice %1122 {offsets = [0, 0], sizes = [2, 64], strides = [1, 1]} : vector<2x256xf32> to vector<2x64xf32>
    %1124 = vector.extract_strided_slice %1122 {offsets = [0, 64], sizes = [2, 64], strides = [1, 1]} : vector<2x256xf32> to vector<2x64xf32>
    %1125 = vector.extract_strided_slice %1122 {offsets = [0, 128], sizes = [2, 64], strides = [1, 1]} : vector<2x256xf32> to vector<2x64xf32>
    %1126 = vector.extract_strided_slice %1122 {offsets = [0, 192], sizes = [2, 64], strides = [1, 1]} : vector<2x256xf32> to vector<2x64xf32>
    %1127 = arith.mulf %1124, %1100 : vector<2x64xf32>
    %1128 = arith.mulf %1123, %1125 : vector<2x64xf32>
    %1129 = arith.addf %1127, %1128 : vector<2x64xf32>
    %1130 = math.tanh %1129 : vector<2x64xf32>
    %1131 = arith.mulf %1126, %1130 : vector<2x64xf32>
    %1132 = arith.maximumf %1103, %1131 : vector<2x64xf32>
    %c12_i32_438 = arith.constant 12 : i32
    %c15_i32_439 = arith.constant 15 : i32
    %1133 = arith.subi %c15_i32_439, %c12_i32_438 : i32
    %1134 = arith.index_cast %c12_i32_438 : i32 to index
    %c0_440 = arith.constant 0 : index
    %c0_441 = arith.constant 0 : index
    %1135 = vector.load %arg6[%1134, %c0_440, %c0_441] : memref<16x2x256xf32, #tpu.memory_space<vmem>>, vector<1x2x256xf32>
    %1136 = vector.shape_cast %1135 : vector<1x2x256xf32> to vector<2x256xf32>
    %1137 = arith.index_cast %1133 : i32 to index
    %c0_442 = arith.constant 0 : index
    %c0_443 = arith.constant 0 : index
    %1138 = vector.load %arg6[%1137, %c0_442, %c0_443] : memref<16x2x256xf32, #tpu.memory_space<vmem>>, vector<1x2x256xf32>
    %1139 = vector.shape_cast %1138 : vector<1x2x256xf32> to vector<2x256xf32>
    %1140 = arith.select %18, %1136, %1139 : vector<2x256xi1>, vector<2x256xf32>
    %cst_444 = arith.constant dense<0.000000e+00> : vector<2x256xf32>
    %1141 = tpu.matmul %1131, %638, %cst_444 {dimension_numbers = #tpu.dot_dimension_numbers<[1], [0], [0], [1], [0, 0, 1, 1], [], []>} : vector<2x64xf32>, vector<64x256xf32>, vector<2x256xf32> -> vector<2x256xf32>
    %1142 = arith.addf %1140, %1141 : vector<2x256xf32>
    %cst_445 = arith.constant 5.000000e-01 : f32
    %1143 = vector.broadcast %cst_445 : f32 to vector<2x256xf32>
    %1144 = arith.mulf %1142, %1143 : vector<2x256xf32>
    %1145 = arith.select %23, %1142, %1144 : vector<2x256xi1>, vector<2x256xf32>
    %1146 = math.tanh %1145 : vector<2x256xf32>
    %cst_446 = arith.constant 5.000000e-01 : f32
    %1147 = vector.broadcast %cst_446 : f32 to vector<2x256xf32>
    %1148 = arith.mulf %1147, %1146 : vector<2x256xf32>
    %cst_447 = arith.constant 5.000000e-01 : f32
    %1149 = vector.broadcast %cst_447 : f32 to vector<2x256xf32>
    %1150 = arith.addf %1148, %1149 : vector<2x256xf32>
    %1151 = arith.select %23, %1146, %1150 : vector<2x256xi1>, vector<2x256xf32>
    %1152 = vector.extract_strided_slice %1151 {offsets = [0, 0], sizes = [2, 64], strides = [1, 1]} : vector<2x256xf32> to vector<2x64xf32>
    %1153 = vector.extract_strided_slice %1151 {offsets = [0, 64], sizes = [2, 64], strides = [1, 1]} : vector<2x256xf32> to vector<2x64xf32>
    %1154 = vector.extract_strided_slice %1151 {offsets = [0, 128], sizes = [2, 64], strides = [1, 1]} : vector<2x256xf32> to vector<2x64xf32>
    %1155 = vector.extract_strided_slice %1151 {offsets = [0, 192], sizes = [2, 64], strides = [1, 1]} : vector<2x256xf32> to vector<2x64xf32>
    %1156 = arith.mulf %1153, %1129 : vector<2x64xf32>
    %1157 = arith.mulf %1152, %1154 : vector<2x64xf32>
    %1158 = arith.addf %1156, %1157 : vector<2x64xf32>
    %1159 = math.tanh %1158 : vector<2x64xf32>
    %1160 = arith.mulf %1155, %1159 : vector<2x64xf32>
    %1161 = arith.maximumf %1132, %1160 : vector<2x64xf32>
    %c13_i32_448 = arith.constant 13 : i32
    %c15_i32_449 = arith.constant 15 : i32
    %1162 = arith.subi %c15_i32_449, %c13_i32_448 : i32
    %1163 = arith.index_cast %c13_i32_448 : i32 to index
    %c0_450 = arith.constant 0 : index
    %c0_451 = arith.constant 0 : index
    %1164 = vector.load %arg6[%1163, %c0_450, %c0_451] : memref<16x2x256xf32, #tpu.memory_space<vmem>>, vector<1x2x256xf32>
    %1165 = vector.shape_cast %1164 : vector<1x2x256xf32> to vector<2x256xf32>
    %1166 = arith.index_cast %1162 : i32 to index
    %c0_452 = arith.constant 0 : index
    %c0_453 = arith.constant 0 : index
    %1167 = vector.load %arg6[%1166, %c0_452, %c0_453] : memref<16x2x256xf32, #tpu.memory_space<vmem>>, vector<1x2x256xf32>
    %1168 = vector.shape_cast %1167 : vector<1x2x256xf32> to vector<2x256xf32>
    %1169 = arith.select %18, %1165, %1168 : vector<2x256xi1>, vector<2x256xf32>
    %cst_454 = arith.constant dense<0.000000e+00> : vector<2x256xf32>
    %1170 = tpu.matmul %1160, %638, %cst_454 {dimension_numbers = #tpu.dot_dimension_numbers<[1], [0], [0], [1], [0, 0, 1, 1], [], []>} : vector<2x64xf32>, vector<64x256xf32>, vector<2x256xf32> -> vector<2x256xf32>
    %1171 = arith.addf %1169, %1170 : vector<2x256xf32>
    %cst_455 = arith.constant 5.000000e-01 : f32
    %1172 = vector.broadcast %cst_455 : f32 to vector<2x256xf32>
    %1173 = arith.mulf %1171, %1172 : vector<2x256xf32>
    %1174 = arith.select %23, %1171, %1173 : vector<2x256xi1>, vector<2x256xf32>
    %1175 = math.tanh %1174 : vector<2x256xf32>
    %cst_456 = arith.constant 5.000000e-01 : f32
    %1176 = vector.broadcast %cst_456 : f32 to vector<2x256xf32>
    %1177 = arith.mulf %1176, %1175 : vector<2x256xf32>
    %cst_457 = arith.constant 5.000000e-01 : f32
    %1178 = vector.broadcast %cst_457 : f32 to vector<2x256xf32>
    %1179 = arith.addf %1177, %1178 : vector<2x256xf32>
    %1180 = arith.select %23, %1175, %1179 : vector<2x256xi1>, vector<2x256xf32>
    %1181 = vector.extract_strided_slice %1180 {offsets = [0, 0], sizes = [2, 64], strides = [1, 1]} : vector<2x256xf32> to vector<2x64xf32>
    %1182 = vector.extract_strided_slice %1180 {offsets = [0, 64], sizes = [2, 64], strides = [1, 1]} : vector<2x256xf32> to vector<2x64xf32>
    %1183 = vector.extract_strided_slice %1180 {offsets = [0, 128], sizes = [2, 64], strides = [1, 1]} : vector<2x256xf32> to vector<2x64xf32>
    %1184 = vector.extract_strided_slice %1180 {offsets = [0, 192], sizes = [2, 64], strides = [1, 1]} : vector<2x256xf32> to vector<2x64xf32>
    %1185 = arith.mulf %1182, %1158 : vector<2x64xf32>
    %1186 = arith.mulf %1181, %1183 : vector<2x64xf32>
    %1187 = arith.addf %1185, %1186 : vector<2x64xf32>
    %1188 = math.tanh %1187 : vector<2x64xf32>
    %1189 = arith.mulf %1184, %1188 : vector<2x64xf32>
    %1190 = arith.maximumf %1161, %1189 : vector<2x64xf32>
    %c14_i32_458 = arith.constant 14 : i32
    %c15_i32_459 = arith.constant 15 : i32
    %1191 = arith.subi %c15_i32_459, %c14_i32_458 : i32
    %1192 = arith.index_cast %c14_i32_458 : i32 to index
    %c0_460 = arith.constant 0 : index
    %c0_461 = arith.constant 0 : index
    %1193 = vector.load %arg6[%1192, %c0_460, %c0_461] : memref<16x2x256xf32, #tpu.memory_space<vmem>>, vector<1x2x256xf32>
    %1194 = vector.shape_cast %1193 : vector<1x2x256xf32> to vector<2x256xf32>
    %1195 = arith.index_cast %1191 : i32 to index
    %c0_462 = arith.constant 0 : index
    %c0_463 = arith.constant 0 : index
    %1196 = vector.load %arg6[%1195, %c0_462, %c0_463] : memref<16x2x256xf32, #tpu.memory_space<vmem>>, vector<1x2x256xf32>
    %1197 = vector.shape_cast %1196 : vector<1x2x256xf32> to vector<2x256xf32>
    %1198 = arith.select %18, %1194, %1197 : vector<2x256xi1>, vector<2x256xf32>
    %cst_464 = arith.constant dense<0.000000e+00> : vector<2x256xf32>
    %1199 = tpu.matmul %1189, %638, %cst_464 {dimension_numbers = #tpu.dot_dimension_numbers<[1], [0], [0], [1], [0, 0, 1, 1], [], []>} : vector<2x64xf32>, vector<64x256xf32>, vector<2x256xf32> -> vector<2x256xf32>
    %1200 = arith.addf %1198, %1199 : vector<2x256xf32>
    %cst_465 = arith.constant 5.000000e-01 : f32
    %1201 = vector.broadcast %cst_465 : f32 to vector<2x256xf32>
    %1202 = arith.mulf %1200, %1201 : vector<2x256xf32>
    %1203 = arith.select %23, %1200, %1202 : vector<2x256xi1>, vector<2x256xf32>
    %1204 = math.tanh %1203 : vector<2x256xf32>
    %cst_466 = arith.constant 5.000000e-01 : f32
    %1205 = vector.broadcast %cst_466 : f32 to vector<2x256xf32>
    %1206 = arith.mulf %1205, %1204 : vector<2x256xf32>
    %cst_467 = arith.constant 5.000000e-01 : f32
    %1207 = vector.broadcast %cst_467 : f32 to vector<2x256xf32>
    %1208 = arith.addf %1206, %1207 : vector<2x256xf32>
    %1209 = arith.select %23, %1204, %1208 : vector<2x256xi1>, vector<2x256xf32>
    %1210 = vector.extract_strided_slice %1209 {offsets = [0, 0], sizes = [2, 64], strides = [1, 1]} : vector<2x256xf32> to vector<2x64xf32>
    %1211 = vector.extract_strided_slice %1209 {offsets = [0, 64], sizes = [2, 64], strides = [1, 1]} : vector<2x256xf32> to vector<2x64xf32>
    %1212 = vector.extract_strided_slice %1209 {offsets = [0, 128], sizes = [2, 64], strides = [1, 1]} : vector<2x256xf32> to vector<2x64xf32>
    %1213 = vector.extract_strided_slice %1209 {offsets = [0, 192], sizes = [2, 64], strides = [1, 1]} : vector<2x256xf32> to vector<2x64xf32>
    %1214 = arith.mulf %1211, %1187 : vector<2x64xf32>
    %1215 = arith.mulf %1210, %1212 : vector<2x64xf32>
    %1216 = arith.addf %1214, %1215 : vector<2x64xf32>
    %1217 = math.tanh %1216 : vector<2x64xf32>
    %1218 = arith.mulf %1213, %1217 : vector<2x64xf32>
    %1219 = arith.maximumf %1190, %1218 : vector<2x64xf32>
    %c15_i32_468 = arith.constant 15 : i32
    %c15_i32_469 = arith.constant 15 : i32
    %1220 = arith.subi %c15_i32_469, %c15_i32_468 : i32
    %1221 = arith.index_cast %c15_i32_468 : i32 to index
    %c0_470 = arith.constant 0 : index
    %c0_471 = arith.constant 0 : index
    %1222 = vector.load %arg6[%1221, %c0_470, %c0_471] : memref<16x2x256xf32, #tpu.memory_space<vmem>>, vector<1x2x256xf32>
    %1223 = vector.shape_cast %1222 : vector<1x2x256xf32> to vector<2x256xf32>
    %1224 = arith.index_cast %1220 : i32 to index
    %c0_472 = arith.constant 0 : index
    %c0_473 = arith.constant 0 : index
    %1225 = vector.load %arg6[%1224, %c0_472, %c0_473] : memref<16x2x256xf32, #tpu.memory_space<vmem>>, vector<1x2x256xf32>
    %1226 = vector.shape_cast %1225 : vector<1x2x256xf32> to vector<2x256xf32>
    %1227 = arith.select %18, %1223, %1226 : vector<2x256xi1>, vector<2x256xf32>
    %cst_474 = arith.constant dense<0.000000e+00> : vector<2x256xf32>
    %1228 = tpu.matmul %1218, %638, %cst_474 {dimension_numbers = #tpu.dot_dimension_numbers<[1], [0], [0], [1], [0, 0, 1, 1], [], []>} : vector<2x64xf32>, vector<64x256xf32>, vector<2x256xf32> -> vector<2x256xf32>
    %1229 = arith.addf %1227, %1228 : vector<2x256xf32>
    %cst_475 = arith.constant 5.000000e-01 : f32
    %1230 = vector.broadcast %cst_475 : f32 to vector<2x256xf32>
    %1231 = arith.mulf %1229, %1230 : vector<2x256xf32>
    %1232 = arith.select %23, %1229, %1231 : vector<2x256xi1>, vector<2x256xf32>
    %1233 = math.tanh %1232 : vector<2x256xf32>
    %cst_476 = arith.constant 5.000000e-01 : f32
    %1234 = vector.broadcast %cst_476 : f32 to vector<2x256xf32>
    %1235 = arith.mulf %1234, %1233 : vector<2x256xf32>
    %cst_477 = arith.constant 5.000000e-01 : f32
    %1236 = vector.broadcast %cst_477 : f32 to vector<2x256xf32>
    %1237 = arith.addf %1235, %1236 : vector<2x256xf32>
    %1238 = arith.select %23, %1233, %1237 : vector<2x256xi1>, vector<2x256xf32>
    %1239 = vector.extract_strided_slice %1238 {offsets = [0, 0], sizes = [2, 64], strides = [1, 1]} : vector<2x256xf32> to vector<2x64xf32>
    %1240 = vector.extract_strided_slice %1238 {offsets = [0, 64], sizes = [2, 64], strides = [1, 1]} : vector<2x256xf32> to vector<2x64xf32>
    %1241 = vector.extract_strided_slice %1238 {offsets = [0, 128], sizes = [2, 64], strides = [1, 1]} : vector<2x256xf32> to vector<2x64xf32>
    %1242 = vector.extract_strided_slice %1238 {offsets = [0, 192], sizes = [2, 64], strides = [1, 1]} : vector<2x256xf32> to vector<2x64xf32>
    %1243 = arith.mulf %1240, %1216 : vector<2x64xf32>
    %1244 = arith.mulf %1239, %1241 : vector<2x64xf32>
    %1245 = arith.addf %1243, %1244 : vector<2x64xf32>
    %1246 = math.tanh %1245 : vector<2x64xf32>
    %1247 = arith.mulf %1242, %1246 : vector<2x64xf32>
    %1248 = arith.maximumf %1219, %1247 : vector<2x64xf32>
    %c16_i32_478 = arith.constant 16 : i32
    %c0_479 = arith.constant 0 : index
    %c0_480 = arith.constant 0 : index
    %1249 = vector.load %arg5[%c0_479, %c0_480] : memref<2x64xf32, #tpu.memory_space<vmem>>, vector<2x64xf32>
    tpu.vector_store %arg5[%c0_479, %c0_480], %1248 {strides = array<i32>} : memref<2x64xf32, #tpu.memory_space<vmem>>, vector<2x64xf32>,
    return
  }
}

</mosaic_0001>

<bundles_post_ra>
// kernel: bilstm_forward.1
= control target key start
LH: loop header
LB: loop body
LE: loop exit
PB: predicated region body
PF: predicated region fallthrough
CT: control target
= control target key end

     0   :  { %v6574_v7 = vmov 0.0   ;;  %s8073_s0 = inlined_call_operand.vmem [shape: f32[16,2,256], index: 0, kind: input, shape index: {}]   ;;  %s8074_s1 = inlined_call_operand.vmem [shape: f32[64,256], index: 1, kind: input, shape index: {}]   ;;  %s8075_s2 = inlined_call_operand.vmem [shape: f32[64,256], index: 2, kind: input, shape index: {}]   ;;  %s8076_s3 = inlined_call_operand.vmem [shape: f32[1,256], index: 3, kind: input, shape index: {}]   ;;  %s8077_s4 = inlined_call_operand.vmem [shape: f32[64,256], index: 4, kind: input, shape index: {}]   ;;  %s8078_s5 = inlined_call_operand.hbm [shape: f32[2,64], index: 5, kind: output, shape index: {}]  }
   0x1   :  { %v57_v0 = vld [vmem:[%s8074_s1 + $0x8] sm:$0xff]  ;;  %v59_v1 = vld [vmem:[%s8074_s1 + $0x18] sm:$0xff]  ;;  %v56_v2 = vld [vmem:[%s8074_s1] sm:$0xff]  ;;  %167 = vmatprep.mubr.f32.mxu0 %v6574_v7  ;;  %300 = vmatprep.mubr.f32.mxu1 %v6574_v7 }
   0x2   :  { %v6616_v3 = vpack.c.bf16 %v59_v1, %v57_v0  ;;  %v58_v4 = vld [vmem:[%s8074_s1 + $0x10] sm:$0xff]  ;;  %v61_v5 = vld [vmem:[%s8074_s1 + $0x28] sm:$0xff]  ;;  %v63_v6 = vld [vmem:[%s8074_s1 + $0x38] sm:$0xff] }
   0x3   :  { %v6629_v8 = vpack.c.bf16 %v58_v4, %v56_v2  ;;  %v6631_v9 = vpack.c.bf16 %v63_v6, %v61_v5  ;;  %v60_v10 = vld [vmem:[%s8074_s1 + $0x20] sm:$0xff]  ;;  %v62_v11 = vld [vmem:[%s8074_s1 + $0x30] sm:$0xff]  ;;  %v65_v12 = vld [vmem:[%s8074_s1 + $0x48] sm:$0xff] }
   0x4   :  { %5584 = vmatprep.subr.bf16.mxu0 %v6616_v3  ;;  %v67_v13 = vld [vmem:[%s8074_s1 + $0x58] sm:$0xff]  ;;  %5600 = vmatprep.subr.bf16.mxu1 %v6616_v3  ;;  %v6648_v14 = vpack.c.bf16 %v62_v11, %v60_v10  ;;  %v64_v16 = vld [vmem:[%s8074_s1 + $0x40] sm:$0xff]  ;;  %v66_v17 = vld [vmem:[%s8074_s1 + $0x50] sm:$0xff] }
   0x5   :  { %5586 = vmatpush1.bf16.msra.mxu0 %v6629_v8  ;;  %5602 = vmatpush1.bf16.msra.mxu1 %v6629_v8  ;;  %v6652_v15 = vpack.c.bf16 %v67_v13, %v65_v12  ;;  %v69_v18 = vld [vmem:[%s8074_s1 + $0x68] sm:$0xff]  ;;  %v71_v19 = vld [vmem:[%s8074_s1 + $0x78] sm:$0xff] }
   0x6   :  { %5588 = vmatprep.subr.bf16.mxu0 %v6631_v9  ;;  %5604 = vmatprep.subr.bf16.mxu1 %v6631_v9 }
   0x7   :  { %10 = vsyncpa [#allocation5], 0  ;;  %v6668_v20 = vpack.c.bf16 %v66_v17, %v64_v16  ;;  %v6672_v21 = vpack.c.bf16 %v71_v19, %v69_v18  ;;  %v68_v22 = vld [vmem:[%s8074_s1 + $0x60] sm:$0xff]  ;;  %v70_v23 = vld [vmem:[%s8074_s1 + $0x70] sm:$0xff]  ;;  %v21_v25 = vlaneseq  ;;  %s6575_s28 = smov 64   ;;  %vm201_vm3 = vcmask 254976  }
   0x8   :  { %v6682_v24 = vpack.c.bf16 %v70_v23, %v68_v22  ;;  %v5444_v29 = vld.sshfl [vmem:[%s8073_s0] sm:$0x33 pattern:$0x76325410]  ;;  %vm204_vm4 = vcmask 517376   ;;  %vm99_vm5 = vcmask 523264  }
   0x9   :  { %5590 = vmatpush1.bf16.msra.mxu0 %v6648_v14  ;;  %5606 = vmatpush1.bf16.msra.mxu1 %v6648_v14  ;;  %v22_v26 = vand.u32 127, %v21_v25  ;;  %v5445_v30 = vld.sshfl [vmem:[%s8073_s0 + $0x3c] sm:$0x33 pattern:$0x76325410]  ;;  %v83_v33 = vcombine.high %v5444_v29, %v5444_v29  ;;  %vm5427_vm6 = vcmask 517120  }
   0xa   :  { %5592 = vmatprep.subr.bf16.mxu0 %v6652_v15  ;;  %5608 = vmatprep.subr.bf16.mxu1 %v6652_v15  ;;  %v94_v34 = vcombine.high %v5445_v30, %v5445_v30  ;;  %v5448_v59 = vld.sshfl [vmem:[%s8073_s0 + $0x4] sm:$0x33 pattern:$0x76325410] }
   0xb   :  { %v6702_v27 = vadd.s32 128, %v22_v26  ;;  %v28_v28 = vand.u32 63, %v22_v26  ;;  %v5449_v60 = vld.sshfl [vmem:[%s8073_s0 + $0x38] sm:$0x33 pattern:$0x76325410]  ;;  %v218_v61 = vcombine.high %v5448_v59, %v5448_v59 }
   0xc   :  { %v229_v62 = vcombine.high %v5449_v60, %v5449_v60 }
   0xd   :  { %5594 = vmatpush1.bf16.msra.mxu0 %v6668_v20  ;;  %5610 = vmatpush1.bf16.msra.mxu1 %v6668_v20  ;;  %v35_v31 = vand.u32 63, %v6702_v27  ;;  %vm6711_vm0 = vcmp.lt.s32.totalorder %v28_v28, 32  ;;  %vm53_vm2 = vcmp.lt.s32.totalorder %v6702_v27, 192 }
   0xe   :  { %5596 = vmatprep.subr.bf16.mxu0 %v6672_v21  ;;  %5612 = vmatprep.subr.bf16.mxu1 %v6672_v21  ;;  %v97_v36 = vsel %vm6711_vm0, %v5444_v29, %v5445_v30  ;;  %v232_v63 = vsel %vm6711_vm0, %v5448_v59, %v5449_v60 }
   0xf   :  { %vm6715_vm1 = vcmp.lt.s32.totalorder %v35_v31, 32 }
  0x10   :  { %v98_v37 = vsel %vm6715_vm1, %v83_v33, %v94_v34  ;;  %v233_v0 = vsel %vm6715_vm1, %v218_v61, %v229_v62  ;;  %v6773_v34 = vld.sshfl [vmem:[%s8073_s0 + $0x8] sm:$0x33 pattern:$0x76325410] }
  0x11   :  { %5598 = vmatpush1.bf16.msra.mxu0 %v6682_v24  ;;  %5614 = vmatpush1.bf16.msra.mxu1 %v6682_v24  ;;  %v6817_v62 = vld.sshfl [vmem:[%s8073_s0 + $0xc] sm:$0x33 pattern:$0x76325410] }
  0x12   :  { %5616 = vmatprep.subr.bf16.mxu0 %v6616_v3  ;;  %5632 = vmatprep.subr.bf16.mxu1 %v6616_v3 }
  0x14   :  { %168 = vmatmul.mubr.f32.vlgmr.msra.gmra.mrb[0].mxu0 %v6574_v7 }
  0x15   :  { %5618 = vmatpush1.bf16.msra.mxu0 %v6629_v8  ;;  %432 = vmatprep.mubr.f32.mxu0 %v6574_v7 }
  0x16   :  { %5620 = vmatprep.subr.bf16.mxu0 %v6631_v9 }
  0x19   :  { %5622 = vmatpush1.bf16.msra.mxu0 %v6648_v14 }
  0x1a   :  { %5624 = vmatprep.subr.bf16.mxu0 %v6652_v15 }
  0x1d   :  { %5626 = vmatpush1.bf16.msra.mxu0 %v6668_v20 }
  0x1e   :  { %5628 = vmatprep.subr.bf16.mxu0 %v6672_v21 }
  0x21   :  { %5630 = vmatpush1.bf16.msra.mxu0 %v6682_v24 }
  0x22   :  { %5648 = vmatprep.subr.bf16.mxu0 %v6616_v3 }
  0xe7   :  { %v169_v38 = vpop.f32.mrb[0].mxu0 }
  0xe8   :  { %v174_v39 = vadd.f32 %v169_v38, %v97_v36  ;;  %v171_v40 = vpop.f32.mrb[1].mxu0  ;;  %v6778_v36 = vld.sshfl [vmem:[%s8073_s0 + $0x34] sm:$0x33 pattern:$0x76325410] }
  0xe9   :  { %v175_v41 = vadd.f32 %v171_v40, %v98_v37  ;;  %v6782_v37 = vcombine.high %v6773_v34, %v6773_v34  ;;  %v6786_v38 = vcombine.high %v6778_v36, %v6778_v36 }
  0xea   :  { %v176_v42 = vmul.f32 0.5, %v174_v39  ;;  %v364_v39 = vsel %vm6711_vm0, %v6773_v34, %v6778_v36 }
  0xeb   :  { %v177_v43 = vmul.f32 0.5, %v175_v41  ;;  %v365_v40 = vsel %vm6715_vm1, %v6782_v37, %v6786_v38 }
  0xec   :  { %6354 = vtanh.f32 %v176_v42 }
  0xed   :  { %v179_v44 = vsel %vm53_vm2, %v175_v41, %v177_v43 }
  0xee   :  { %6356 = vtanh.f32 %v179_v44 }
  0xf6   :  { %v6355_v45 = vpop.eup %6354 }
  0xf7   :  { %v182_v47 = vmul.f32 0.5, %v6355_v45 }
  0xf8   :  { %v6357_v46 = vpop.eup %6356 }
  0xf9   :  { %v183_v48 = vmul.f32 0.5, %v6357_v46  ;;  %v184_v50 = vadd.f32 0.5, %v182_v47 }
  0xfb   :  { %v185_v49 = vadd.f32 0.5, %v183_v48  ;;  %v188_v53 = vmul.f32 0.0, %v184_v50 }
  0xfd   :  { %v187_v51 = vsel %vm53_vm2, %v6357_v46, %v185_v49 }
  0xfe   :  { %v189_v52 = vmul.f32 %v187_v51, %v184_v50 }
 0x100   :  { %191 = vrot.lane.b32.xlu0 %v189_v52, %s6575_s28 }
 0x172   :  { %v192_v54 = vpop.permute.xlu0 %191 }
 0x173   :  { %v194_v55 = vadd.f32 %v192_v54, %v188_v53 }
 0x175   :  { %6358 = vtanh.f32 %v194_v55 }
 0x17f   :  { %v6359_v56 = vpop.eup %6358 }
 0x180   :  { %v196_v57 = vmul.f32 %v6359_v56, %v187_v51 }
 0x182   :  { %198 = vrot.lane.b32.xlu0 %v196_v57, %s6575_s28 }
 0x1f4   :  { %v199_v58 = vpop.permute.xlu0 %198 }
 0x1f5   :  { %202 = vst.msk [vmem:[#allocation3] sm:$0x3] %vm201_vm3, %v199_v58  ;;  %5450 = vmatmul.mubr.msk.f32.vlgmr.msra.gmra.mrb[0].mxu1 %vm99_vm5, %v199_v58 }
 0x1f6   :  { %205 = vst.msk [vmem:[#allocation3 + $0x1e] sm:$0x3] %vm204_vm4, %v199_v58  ;;  %5634 = vmatpush1.bf16.msra.mxu1 %v6629_v8  ;;  %564 = vmatprep.mubr.f32.mxu1 %v6574_v7 }
 0x1f7   :  { %5636 = vmatprep.subr.bf16.mxu1 %v6631_v9 }
 0x1fa   :  { %5638 = vmatpush1.bf16.msra.mxu1 %v6648_v14 }
 0x1fb   :  { %5640 = vmatprep.subr.bf16.mxu1 %v6652_v15 }
 0x1fe   :  { %5642 = vmatpush1.bf16.msra.mxu1 %v6668_v20 }
 0x1ff   :  { %5644 = vmatprep.subr.bf16.mxu1 %v6672_v21 }
 0x202   :  { %5646 = vmatpush1.bf16.msra.mxu1 %v6682_v24 }
 0x203   :  { %5664 = vmatprep.subr.bf16.mxu1 %v6616_v3 }
 0x2c8   :  { %v302_v1 = vpop.f32.mrb[0].mxu1 }
 0x2c9   :  { %v307_v2 = vadd.f32 %v302_v1, %v232_v63  ;;  %v304_v4 = vpop.f32.mrb[1].mxu1  ;;  %v6822_v63 = vld.sshfl [vmem:[%s8073_s0 + $0x30] sm:$0x33 pattern:$0x76325410] }
 0x2ca   :  { %v308_v5 = vadd.f32 %v304_v4, %v233_v0  ;;  %v6826_v0 = vcombine.high %v6817_v62, %v6817_v62  ;;  %v6830_v1 = vcombine.high %v6822_v63, %v6822_v63 }
 0x2cb   :  { %v309_v6 = vmul.f32 0.5, %v307_v2  ;;  %v496_v2 = vsel %vm6711_vm0, %v6817_v62, %v6822_v63 }
 0x2cc   :  { %v310_v10 = vmul.f32 0.5, %v308_v5  ;;  %v497_v4 = vsel %vm6715_vm1, %v6826_v0, %v6830_v1 }
 0x2cd   :  { %6360 = vtanh.f32 %v309_v6 }
 0x2ce   :  { %v312_v11 = vsel %vm53_vm2, %v308_v5, %v310_v10 }
 0x2cf   :  { %6362 = vtanh.f32 %v312_v11 }
 0x2d7   :  { %v6361_v12 = vpop.eup %6360 }
 0x2d8   :  { %v315_v16 = vmul.f32 0.5, %v6361_v12 }
 0x2d9   :  { %v6363_v13 = vpop.eup %6362 }
 0x2da   :  { %v316_v17 = vmul.f32 0.5, %v6363_v13  ;;  %v317_v19 = vadd.f32 0.5, %v315_v16 }
 0x2dc   :  { %v318_v18 = vadd.f32 0.5, %v316_v17  ;;  %v321_v26 = vmul.f32 %v317_v19, %v194_v55 }
 0x2de   :  { %v320_v22 = vsel %vm53_vm2, %v6363_v13, %v318_v18 }
 0x2df   :  { %v322_v23 = vmul.f32 %v320_v22, %v317_v19 }
 0x2e1   :  { %324 = vrot.lane.b32.xlu1 %v322_v23, %s6575_s28 }
 0x353   :  { %v325_v28 = vpop.permute.xlu1 %324 }
 0x354   :  { %v327_v29 = vadd.f32 %v325_v28, %v321_v26 }
 0x356   :  { %6364 = vtanh.f32 %v327_v29 }
 0x360   :  { %v6365_v30 = vpop.eup %6364 }
 0x361   :  { %v329_v31 = vmul.f32 %v6365_v30, %v320_v22 }
 0x363   :  { %331 = vrot.lane.b32.xlu1 %v329_v31, %s6575_s28 }
 0x3d5   :  { %v332_v33 = vpop.permute.xlu1 %331 }
 0x3d6   :  { %335 = vst.msk [vmem:[#allocation3 + $0x2] sm:$0x3] %vm201_vm3, %v332_v33  ;;  %5455 = vmatmul.mubr.msk.f32.vlgmr.msra.gmra.mrb[2].mxu0 %vm99_vm5, %v332_v33 }
 0x3d7   :  { %337 = vst.msk [vmem:[#allocation3 + $0x1c] sm:$0x3] %vm204_vm4, %v332_v33  ;;  %5650 = vmatpush1.bf16.msra.mxu0 %v6629_v8  ;;  %696 = vmatprep.mubr.f32.mxu0 %v6574_v7 }
 0x3d8   :  { %5652 = vmatprep.subr.bf16.mxu0 %v6631_v9 }
 0x3db   :  { %5654 = vmatpush1.bf16.msra.mxu0 %v6648_v14 }
 0x3dc   :  { %5656 = vmatprep.subr.bf16.mxu0 %v6652_v15 }
 0x3df   :  { %5658 = vmatpush1.bf16.msra.mxu0 %v6668_v20 }
 0x3e0   :  { %5660 = vmatprep.subr.bf16.mxu0 %v6672_v21 }
 0x3e3   :  { %5662 = vmatpush1.bf16.msra.mxu0 %v6682_v24 }
 0x3e4   :  { %5680 = vmatprep.subr.bf16.mxu0 %v6616_v3 }
 0x4a9   :  { %v434_v41 = vpop.f32.mrb[2].mxu0 }
 0x4aa   :  { %v439_v42 = vadd.f32 %v434_v41, %v364_v39  ;;  %v436_v43 = vpop.f32.mrb[3].mxu0 }
 0x4ab   :  { %v440_v44 = vadd.f32 %v436_v43, %v365_v40  ;;  %v6866_v43 = vld.sshfl [vmem:[%s8073_s0 + $0x2c] sm:$0x33 pattern:$0x76325410] }
 0x4ac   :  { %v441_v45 = vmul.f32 0.5, %v439_v42  ;;  %v6861_v42 = vld.sshfl [vmem:[%s8073_s0 + $0x10] sm:$0x33 pattern:$0x76325410] }
 0x4ad   :  { %v442_v46 = vmul.f32 0.5, %v440_v44 }
 0x4ae   :  { %6366 = vtanh.f32 %v441_v45  ;;  %v6874_v45 = vcombine.high %v6866_v43, %v6866_v43 }
 0x4af   :  { %v444_v47 = vsel %vm53_vm2, %v440_v44, %v442_v46  ;;  %v6870_v44 = vcombine.high %v6861_v42, %v6861_v42  ;;  %v628_v46 = vsel %vm6711_vm0, %v6861_v42, %v6866_v43 }
 0x4b0   :  { %6368 = vtanh.f32 %v444_v47 }
 0x4b1   :  { %v629_v47 = vsel %vm6715_vm1, %v6870_v44, %v6874_v45 }
 0x4b8   :  { %v6367_v48 = vpop.eup %6366 }
 0x4b9   :  { %v447_v50 = vmul.f32 0.5, %v6367_v48 }
 0x4ba   :  { %v6369_v49 = vpop.eup %6368 }
 0x4bb   :  { %v448_v51 = vmul.f32 0.5, %v6369_v49  ;;  %v449_v53 = vadd.f32 0.5, %v447_v50 }
 0x4bd   :  { %v450_v52 = vadd.f32 0.5, %v448_v51  ;;  %v453_v56 = vmul.f32 %v449_v53, %v327_v29 }
 0x4bf   :  { %v452_v54 = vsel %vm53_vm2, %v6369_v49, %v450_v52 }
 0x4c0   :  { %v454_v55 = vmul.f32 %v452_v54, %v449_v53 }
 0x4c2   :  { %456 = vrot.lane.b32.xlu0 %v454_v55, %s6575_s28 }
 0x534   :  { %v457_v57 = vpop.permute.xlu0 %456 }
 0x535   :  { %v459_v58 = vadd.f32 %v457_v57, %v453_v56 }
 0x537   :  { %6370 = vtanh.f32 %v459_v58 }
 0x541   :  { %v6371_v59 = vpop.eup %6370 }
 0x542   :  { %v461_v60 = vmul.f32 %v6371_v59, %v452_v54 }
 0x544   :  { %463 = vrot.lane.b32.xlu1 %v461_v60, %s6575_s28 }
 0x5b6   :  { %v464_v61 = vpop.permute.xlu1 %463 }
 0x5b7   :  { %467 = vst.msk [vmem:[#allocation3 + $0x4] sm:$0x3] %vm201_vm3, %v464_v61  ;;  %5460 = vmatmul.mubr.msk.f32.vlgmr.msra.gmra.mrb[2].mxu1 %vm99_vm5, %v464_v61 }
 0x5b8   :  { %469 = vst.msk [vmem:[#allocation3 + $0x1a] sm:$0x3] %vm204_vm4, %v464_v61  ;;  %5666 = vmatpush1.bf16.msra.mxu1 %v6629_v8  ;;  %828 = vmatprep.mubr.f32.mxu1 %v6574_v7 }
 0x5b9   :  { %5668 = vmatprep.subr.bf16.mxu1 %v6631_v9 }
 0x5bc   :  { %5670 = vmatpush1.bf16.msra.mxu1 %v6648_v14 }
 0x5bd   :  { %5672 = vmatprep.subr.bf16.mxu1 %v6652_v15 }
 0x5c0   :  { %5674 = vmatpush1.bf16.msra.mxu1 %v6668_v20 }
 0x5c1   :  { %5676 = vmatprep.subr.bf16.mxu1 %v6672_v21 }
 0x5c4   :  { %5678 = vmatpush1.bf16.msra.mxu1 %v6682_v24 }
 0x5c5   :  { %5696 = vmatprep.subr.bf16.mxu1 %v6616_v3 }
 0x68a   :  { %v566_v5 = vpop.f32.mrb[2].mxu1 }
 0x68b   :  { %v571_v6 = vadd.f32 %v566_v5, %v496_v2  ;;  %v568_v10 = vpop.f32.mrb[3].mxu1 }
 0x68c   :  { %v572_v11 = vadd.f32 %v568_v10, %v497_v4 }
 0x68d   :  { %v573_v12 = vmul.f32 0.5, %v571_v6 }
 0x68e   :  { %v574_v13 = vmul.f32 0.5, %v572_v11 }
 0x68f   :  { %6372 = vtanh.f32 %v573_v12 }
 0x690   :  { %v576_v16 = vsel %vm53_vm2, %v572_v11, %v574_v13  ;;  %v6905_v13 = vld.sshfl [vmem:[%s8073_s0 + $0x14] sm:$0x33 pattern:$0x76325410] }
 0x691   :  { %6374 = vtanh.f32 %v576_v16  ;;  %v6910_v16 = vld.sshfl [vmem:[%s8073_s0 + $0x28] sm:$0x33 pattern:$0x76325410] }
 0x699   :  { %v6373_v17 = vpop.eup %6372 }
 0x69a   :  { %v579_v19 = vmul.f32 0.5, %v6373_v17  ;;  %v6914_v17 = vcombine.high %v6905_v13, %v6905_v13 }
 0x69b   :  { %v6375_v18 = vpop.eup %6374 }
 0x69c   :  { %v580_v22 = vmul.f32 0.5, %v6375_v18  ;;  %v581_v26 = vadd.f32 0.5, %v579_v19  ;;  %v760_v19 = vsel %vm6711_vm0, %v6905_v13, %v6910_v16 }
 0x69e   :  { %v582_v23 = vadd.f32 0.5, %v580_v22  ;;  %v585_v30 = vmul.f32 %v581_v26, %v459_v58 }
 0x6a0   :  { %v584_v28 = vsel %vm53_vm2, %v6375_v18, %v582_v23  ;;  %v6918_v18 = vcombine.high %v6910_v16, %v6910_v16 }
 0x6a1   :  { %v586_v29 = vmul.f32 %v584_v28, %v581_v26 }
 0x6a2   :  { %v761_v22 = vsel %vm6715_vm1, %v6914_v17, %v6918_v18 }
 0x6a3   :  { %588 = vrot.lane.b32.xlu0 %v586_v29, %s6575_s28 }
 0x715   :  { %v589_v31 = vpop.permute.xlu0 %588 }
 0x716   :  { %v591_v33 = vadd.f32 %v589_v31, %v585_v30 }
 0x718   :  { %6376 = vtanh.f32 %v591_v33 }
 0x722   :  { %v6377_v39 = vpop.eup %6376 }
 0x723   :  { %v593_v40 = vmul.f32 %v6377_v39, %v584_v28 }
 0x725   :  { %595 = vrot.lane.b32.xlu1 %v593_v40, %s6575_s28 }
 0x797   :  { %v596_v41 = vpop.permute.xlu1 %595 }
 0x798   :  { %599 = vst.msk [vmem:[#allocation3 + $0x6] sm:$0x3] %vm201_vm3, %v596_v41  ;;  %5465 = vmatmul.mubr.msk.f32.vlgmr.msra.gmra.mrb[4].mxu0 %vm99_vm5, %v596_v41 }
 0x799   :  { %601 = vst.msk [vmem:[#allocation3 + $0x18] sm:$0x3] %vm204_vm4, %v596_v41  ;;  %5682 = vmatpush1.bf16.msra.mxu0 %v6629_v8  ;;  %960 = vmatprep.mubr.f32.mxu0 %v6574_v7 }
 0x79a   :  { %5684 = vmatprep.subr.bf16.mxu0 %v6631_v9 }
 0x79d   :  { %5686 = vmatpush1.bf16.msra.mxu0 %v6648_v14 }
 0x79e   :  { %5688 = vmatprep.subr.bf16.mxu0 %v6652_v15 }
 0x7a1   :  { %5690 = vmatpush1.bf16.msra.mxu0 %v6668_v20 }
 0x7a2   :  { %5692 = vmatprep.subr.bf16.mxu0 %v6672_v21 }
 0x7a5   :  { %5694 = vmatpush1.bf16.msra.mxu0 %v6682_v24 }
 0x7a6   :  { %5712 = vmatprep.subr.bf16.mxu0 %v6616_v3 }
 0x86b   :  { %v698_v48 = vpop.f32.mrb[4].mxu0 }
 0x86c   :  { %v703_v49 = vadd.f32 %v698_v48, %v628_v46  ;;  %v700_v50 = vpop.f32.mrb[5].mxu0 }
 0x86d   :  { %v704_v51 = vadd.f32 %v700_v50, %v629_v47 }
 0x86e   :  { %v705_v52 = vmul.f32 0.5, %v703_v49 }
 0x86f   :  { %v706_v53 = vmul.f32 0.5, %v704_v51 }
 0x870   :  { %6378 = vtanh.f32 %v705_v52 }
 0x871   :  { %v708_v54 = vsel %vm53_vm2, %v704_v51, %v706_v53 }
 0x872   :  { %6380 = vtanh.f32 %v708_v54 }
 0x87a   :  { %v6379_v55 = vpop.eup %6378 }
 0x87b   :  { %v711_v57 = vmul.f32 0.5, %v6379_v55 }
 0x87c   :  { %v6381_v56 = vpop.eup %6380 }
 0x87d   :  { %v712_v58 = vmul.f32 0.5, %v6381_v56  ;;  %v713_v60 = vadd.f32 0.5, %v711_v57  ;;  %v6949_v57 = vld.sshfl [vmem:[%s8073_s0 + $0x18] sm:$0x33 pattern:$0x76325410] }
 0x87f   :  { %v714_v59 = vadd.f32 0.5, %v712_v58  ;;  %v717_v4 = vmul.f32 %v713_v60, %v591_v33  ;;  %v6954_v58 = vld.sshfl [vmem:[%s8073_s0 + $0x24] sm:$0x33 pattern:$0x76325410] }
 0x881   :  { %v716_v61 = vsel %vm53_vm2, %v6381_v56, %v714_v59  ;;  %v6958_v59 = vcombine.high %v6949_v57, %v6949_v57 }
 0x882   :  { %v718_v2 = vmul.f32 %v716_v61, %v713_v60  ;;  %v6962_v60 = vcombine.high %v6954_v58, %v6954_v58 }
 0x884   :  { %720 = vrot.lane.b32.xlu0 %v718_v2, %s6575_s28  ;;  %v893_v2 = vsel %vm6715_vm1, %v6958_v59, %v6962_v60 }
 0x8f6   :  { %v721_v5 = vpop.permute.xlu0 %720 }
 0x8f7   :  { %v723_v6 = vadd.f32 %v721_v5, %v717_v4 }
 0x8f9   :  { %6382 = vtanh.f32 %v723_v6 }
 0x903   :  { %v6383_v10 = vpop.eup %6382 }
 0x904   :  { %v725_v11 = vmul.f32 %v6383_v10, %v716_v61  ;;  %v892_v61 = vsel %vm6711_vm0, %v6949_v57, %v6954_v58 }
 0x906   :  { %727 = vrot.lane.b32.xlu1 %v725_v11, %s6575_s28 }
 0x978   :  { %v728_v12 = vpop.permute.xlu1 %727 }
 0x979   :  { %731 = vst.msk [vmem:[#allocation3 + $0x8] sm:$0x3] %vm201_vm3, %v728_v12  ;;  %5470 = vmatmul.mubr.msk.f32.vlgmr.msra.gmra.mrb[4].mxu1 %vm99_vm5, %v728_v12 }
 0x97a   :  { %733 = vst.msk [vmem:[#allocation3 + $0x16] sm:$0x3] %vm204_vm4, %v728_v12  ;;  %5698 = vmatpush1.bf16.msra.mxu1 %v6629_v8  ;;  %1092 = vmatprep.mubr.f32.mxu1 %v6574_v7 }
 0x97b   :  { %5700 = vmatprep.subr.bf16.mxu1 %v6631_v9 }
 0x97e   :  { %5702 = vmatpush1.bf16.msra.mxu1 %v6648_v14 }
 0x97f   :  { %5704 = vmatprep.subr.bf16.mxu1 %v6652_v15 }
 0x982   :  { %5706 = vmatpush1.bf16.msra.mxu1 %v6668_v20 }
 0x983   :  { %5708 = vmatprep.subr.bf16.mxu1 %v6672_v21 }
 0x986   :  { %5710 = vmatpush1.bf16.msra.mxu1 %v6682_v24 }
 0x987   :  { %5728 = vmatprep.subr.bf16.mxu1 %v6616_v3 }
 0xa4c   :  { %v830_v23 = vpop.f32.mrb[4].mxu1 }
 0xa4d   :  { %v835_v26 = vadd.f32 %v830_v23, %v760_v19  ;;  %v832_v28 = vpop.f32.mrb[5].mxu1 }
 0xa4e   :  { %v836_v29 = vadd.f32 %v832_v28, %v761_v22 }
 0xa4f   :  { %v837_v30 = vmul.f32 0.5, %v835_v26 }
 0xa50   :  { %v838_v31 = vmul.f32 0.5, %v836_v29 }
 0xa51   :  { %6384 = vtanh.f32 %v837_v30 }
 0xa52   :  { %v840_v33 = vsel %vm53_vm2, %v836_v29, %v838_v31 }
 0xa53   :  { %6386 = vtanh.f32 %v840_v33 }
 0xa5b   :  { %v6385_v39 = vpop.eup %6384 }
 0xa5c   :  { %v843_v41 = vmul.f32 0.5, %v6385_v39 }
 0xa5d   :  { %v6387_v40 = vpop.eup %6386 }
 0xa5e   :  { %v844_v46 = vmul.f32 0.5, %v6387_v40  ;;  %v845_v48 = vadd.f32 0.5, %v843_v41 }
 0xa60   :  { %v846_v47 = vadd.f32 0.5, %v844_v46  ;;  %v849_v51 = vmul.f32 %v845_v48, %v723_v6 }
 0xa62   :  { %v848_v49 = vsel %vm53_vm2, %v6387_v40, %v846_v47 }
 0xa63   :  { %v850_v50 = vmul.f32 %v848_v49, %v845_v48 }
 0xa65   :  { %852 = vrot.lane.b32.xlu0 %v850_v50, %s6575_s28  ;;  %v5479_v50 = vld.sshfl [vmem:[%s8073_s0 + $0x20] sm:$0x33 pattern:$0x76325410] }
 0xad7   :  { %v853_v52 = vpop.permute.xlu0 %852 }
 0xad8   :  { %v855_v53 = vadd.f32 %v853_v52, %v849_v51  ;;  %v1021_v52 = vcombine.high %v5479_v50, %v5479_v50 }
 0xada   :  { %6388 = vtanh.f32 %v855_v53 }
 0xae4   :  { %v6389_v54 = vpop.eup %6388 }
 0xae5   :  { %v857_v55 = vmul.f32 %v6389_v54, %v848_v49  ;;  %v5478_v49 = vld.sshfl [vmem:[%s8073_s0 + $0x1c] sm:$0x33 pattern:$0x76325410] }
 0xae6   :  { %v1010_v51 = vcombine.high %v5478_v49, %v5478_v49 }
 0xae7   :  { %859 = vrot.lane.b32.xlu1 %v857_v55, %s6575_s28 }
 0xae8   :  { %v1025_v54 = vsel %vm6715_vm1, %v1010_v51, %v1021_v52 }
 0xb59   :  { %v860_v56 = vpop.permute.xlu1 %859 }
 0xb5a   :  { %863 = vst.msk [vmem:[#allocation3 + $0xa] sm:$0x3] %vm201_vm3, %v860_v56  ;;  %5475 = vmatmul.mubr.msk.f32.vlgmr.msra.gmra.mrb[6].mxu0 %vm99_vm5, %v860_v56 }
 0xb5b   :  { %865 = vst.msk [vmem:[#allocation3 + $0x14] sm:$0x3] %vm204_vm4, %v860_v56  ;;  %5714 = vmatpush1.bf16.msra.mxu0 %v6629_v8  ;;  %1222 = vmatprep.mubr.f32.mxu0 %v6574_v7 }
 0xb5c   :  { %5716 = vmatprep.subr.bf16.mxu0 %v6631_v9 }
 0xb5f   :  { %5718 = vmatpush1.bf16.msra.mxu0 %v6648_v14 }
 0xb60   :  { %5720 = vmatprep.subr.bf16.mxu0 %v6652_v15 }
 0xb63   :  { %5722 = vmatpush1.bf16.msra.mxu0 %v6668_v20 }
 0xb64   :  { %5724 = vmatprep.subr.bf16.mxu0 %v6672_v21 }
 0xb67   :  { %5726 = vmatpush1.bf16.msra.mxu0 %v6682_v24 }
 0xb68   :  { %5744 = vmatprep.subr.bf16.mxu0 %v6616_v3 }
 0xc2d   :  { %v962_v4 = vpop.f32.mrb[6].mxu0 }
 0xc2e   :  { %v967_v5 = vadd.f32 %v962_v4, %v892_v61  ;;  %v964_v6 = vpop.f32.mrb[7].mxu0 }
 0xc2f   :  { %v968_v10 = vadd.f32 %v964_v6, %v893_v2 }
 0xc30   :  { %v969_v11 = vmul.f32 0.5, %v967_v5 }
 0xc31   :  { %v970_v12 = vmul.f32 0.5, %v968_v10 }
 0xc32   :  { %6390 = vtanh.f32 %v969_v11 }
 0xc33   :  { %v972_v19 = vsel %vm53_vm2, %v968_v10, %v970_v12 }
 0xc34   :  { %6392 = vtanh.f32 %v972_v19 }
 0xc3c   :  { %v6391_v22 = vpop.eup %6390 }
 0xc3d   :  { %v975_v26 = vmul.f32 0.5, %v6391_v22 }
 0xc3e   :  { %v6393_v23 = vpop.eup %6392 }
 0xc3f   :  { %v976_v28 = vmul.f32 0.5, %v6393_v23  ;;  %v977_v30 = vadd.f32 0.5, %v975_v26 }
 0xc41   :  { %v978_v29 = vadd.f32 0.5, %v976_v28  ;;  %v981_v39 = vmul.f32 %v977_v30, %v855_v53  ;;  %v1024_v53 = vsel %vm6711_vm0, %v5478_v49, %v5479_v50 }
 0xc43   :  { %v980_v31 = vsel %vm53_vm2, %v6393_v23, %v978_v29 }
 0xc44   :  { %v982_v33 = vmul.f32 %v980_v31, %v977_v30 }
 0xc46   :  { %984 = vrot.lane.b32.xlu0 %v982_v33, %s6575_s28 }
 0xcb8   :  { %v985_v40 = vpop.permute.xlu0 %984 }
 0xcb9   :  { %v987_v41 = vadd.f32 %v985_v40, %v981_v39 }
 0xcbb   :  { %6394 = vtanh.f32 %v987_v41 }
 0xcc5   :  { %v6395_v46 = vpop.eup %6394 }
 0xcc6   :  { %v989_v47 = vmul.f32 %v6395_v46, %v980_v31  ;;  %v1155_v46 = vsel %vm6715_vm1, %v1021_v52, %v1010_v51 }
 0xcc8   :  { %991 = vrot.lane.b32.xlu1 %v989_v47, %s6575_s28 }
 0xd3a   :  { %v992_v48 = vpop.permute.xlu1 %991 }
 0xd3b   :  { %995 = vst.msk [vmem:[#allocation3 + $0xc] sm:$0x3] %vm201_vm3, %v992_v48  ;;  %5480 = vmatmul.mubr.msk.f32.vlgmr.msra.gmra.mrb[6].mxu1 %vm99_vm5, %v992_v48 }
 0xd3c   :  { %997 = vst.msk [vmem:[#allocation3 + $0x12] sm:$0x3] %vm204_vm4, %v992_v48  ;;  %5730 = vmatpush1.bf16.msra.mxu1 %v6629_v8  ;;  %1350 = vmatprep.mubr.f32.mxu1 %v6574_v7 }
 0xd3d   :  { %5732 = vmatprep.subr.bf16.mxu1 %v6631_v9 }
 0xd40   :  { %5734 = vmatpush1.bf16.msra.mxu1 %v6648_v14 }
 0xd41   :  { %5736 = vmatprep.subr.bf16.mxu1 %v6652_v15 }
 0xd44   :  { %5738 = vmatpush1.bf16.msra.mxu1 %v6668_v20 }
 0xd45   :  { %5740 = vmatprep.subr.bf16.mxu1 %v6672_v21 }
 0xd48   :  { %5742 = vmatpush1.bf16.msra.mxu1 %v6682_v24 }
 0xd49   :  { %5760 = vmatprep.subr.bf16.mxu1 %v6616_v3 }
 0xe0e   :  { %v1094_v55 = vpop.f32.mrb[6].mxu1 }
 0xe0f   :  { %v1099_v56 = vadd.f32 %v1094_v55, %v1024_v53  ;;  %v1096_v61 = vpop.f32.mrb[7].mxu1 }
 0xe10   :  { %v1100_v2 = vadd.f32 %v1096_v61, %v1025_v54 }
 0xe11   :  { %v1101_v4 = vmul.f32 0.5, %v1099_v56 }
 0xe12   :  { %v1102_v5 = vmul.f32 0.5, %v1100_v2 }
 0xe13   :  { %6396 = vtanh.f32 %v1101_v4 }
 0xe14   :  { %v1104_v6 = vsel %vm53_vm2, %v1100_v2, %v1102_v5 }
 0xe15   :  { %6398 = vtanh.f32 %v1104_v6 }
 0xe1d   :  { %v6397_v10 = vpop.eup %6396 }
 0xe1e   :  { %v1107_v12 = vmul.f32 0.5, %v6397_v10 }
 0xe1f   :  { %v6399_v11 = vpop.eup %6398 }
 0xe20   :  { %v1108_v19 = vmul.f32 0.5, %v6399_v11  ;;  %v1109_v23 = vadd.f32 0.5, %v1107_v12 }
 0xe22   :  { %v1110_v22 = vadd.f32 0.5, %v1108_v19  ;;  %v1113_v29 = vmul.f32 %v1109_v23, %v987_v41  ;;  %v1154_v41 = vsel %vm6711_vm0, %v5479_v50, %v5478_v49 }
 0xe24   :  { %v1112_v26 = vsel %vm53_vm2, %v6399_v11, %v1110_v22 }
 0xe25   :  { %v1114_v28 = vmul.f32 %v1112_v26, %v1109_v23 }
 0xe27   :  { %1116 = vrot.lane.b32.xlu0 %v1114_v28, %s6575_s28  ;;  %v1283_v28 = vsel %vm6715_vm1, %v6962_v60, %v6958_v59 }
 0xe99   :  { %v1117_v30 = vpop.permute.xlu0 %1116 }
 0xe9a   :  { %v1119_v31 = vadd.f32 %v1117_v30, %v1113_v29 }
 0xe9c   :  { %6400 = vtanh.f32 %v1119_v31 }
 0xea6   :  { %v6401_v33 = vpop.eup %6400 }
 0xea7   :  { %v1121_v39 = vmul.f32 %v6401_v33, %v1112_v26  ;;  %v1282_v26 = vsel %vm6711_vm0, %v6954_v58, %v6949_v57 }
 0xea9   :  { %1123 = vrot.lane.b32.xlu1 %v1121_v39, %s6575_s28 }
 0xf1b   :  { %v1124_v40 = vpop.permute.xlu1 %1123 }
 0xf1c   :  { %1127 = vst.msk [vmem:[#allocation3 + $0xe] sm:$0x3] %vm201_vm3, %v1124_v40  ;;  %5485 = vmatmul.mubr.msk.f32.vlgmr.msra.gmra.mrb[8].mxu0 %vm99_vm5, %v1124_v40 }
 0xf1d   :  { %1129 = vst.msk [vmem:[#allocation3 + $0x10] sm:$0x3] %vm204_vm4, %v1124_v40  ;;  %5746 = vmatpush1.bf16.msra.mxu0 %v6629_v8  ;;  %1478 = vmatprep.mubr.f32.mxu0 %v6574_v7 }
 0xf1e   :  { %5748 = vmatprep.subr.bf16.mxu0 %v6631_v9 }
 0xf21   :  { %5750 = vmatpush1.bf16.msra.mxu0 %v6648_v14 }
 0xf22   :  { %5752 = vmatprep.subr.bf16.mxu0 %v6652_v15 }
 0xf25   :  { %5754 = vmatpush1.bf16.msra.mxu0 %v6668_v20 }
 0xf26   :  { %5756 = vmatprep.subr.bf16.mxu0 %v6672_v21 }
 0xf29   :  { %5758 = vmatpush1.bf16.msra.mxu0 %v6682_v24 }
 0xf2a   :  { %5776 = vmatprep.subr.bf16.mxu0 %v6616_v3 }
 0xfef   :  { %v1224_v47 = vpop.f32.mrb[8].mxu0 }
 0xff0   :  { %v1229_v48 = vadd.f32 %v1224_v47, %v1154_v41  ;;  %v1226_v53 = vpop.f32.mrb[9].mxu0 }
 0xff1   :  { %v1230_v54 = vadd.f32 %v1226_v53, %v1155_v46 }
 0xff2   :  { %v1231_v55 = vmul.f32 0.5, %v1229_v48 }
 0xff3   :  { %v1232_v56 = vmul.f32 0.5, %v1230_v54 }
 0xff4   :  { %6402 = vtanh.f32 %v1231_v55 }
 0xff5   :  { %v1234_v61 = vsel %vm53_vm2, %v1230_v54, %v1232_v56 }
 0xff6   :  { %6404 = vtanh.f32 %v1234_v61 }
 0xffe   :  { %v6403_v2 = vpop.eup %6402 }
 0xfff   :  { %v1237_v5 = vmul.f32 0.5, %v6403_v2 }
0x1000   :  { %v6405_v4 = vpop.eup %6404 }
0x1001   :  { %v1238_v6 = vmul.f32 0.5, %v6405_v4  ;;  %v1239_v49 = vadd.f32 0.5, %v1237_v5  ;;  %v1410_v5 = vsel %vm6711_vm0, %v6910_v16, %v6905_v13 }
0x1003   :  { %v1240_v10 = vadd.f32 0.5, %v1238_v6  ;;  %v1243_v52 = vmul.f32 %v1239_v49, %v1119_v31  ;;  %v1411_v6 = vsel %vm6715_vm1, %v6918_v18, %v6914_v17 }
0x1005   :  { %v1242_v50 = vsel %vm53_vm2, %v6405_v4, %v1240_v10 }
0x1006   :  { %v1244_v51 = vmul.f32 %v1242_v50, %v1239_v49 }
0x1008   :  { %1246 = vrot.lane.b32.xlu0 %v1244_v51, %s6575_s28 }
0x107a   :  { %v1247_v11 = vpop.permute.xlu0 %1246 }
0x107b   :  { %v1249_v12 = vadd.f32 %v1247_v11, %v1243_v52 }
0x107d   :  { %6406 = vtanh.f32 %v1249_v12 }
0x1087   :  { %v6407_v19 = vpop.eup %6406 }
0x1088   :  { %v1251_v22 = vmul.f32 %v6407_v19, %v1242_v50 }
0x108a   :  { %1253 = vrot.lane.b32.xlu1 %v1251_v22, %s6575_s28 }
0x10fc   :  { %v1254_v23 = vpop.permute.xlu1 %1253 }
0x10fd   :  { %1256 = vst.msk [vmem:[#allocation3 + $0x10] sm:$0x3] %vm201_vm3, %v1254_v23  ;;  %5490 = vmatmul.mubr.msk.f32.vlgmr.msra.gmra.mrb[8].mxu1 %vm99_vm5, %v1254_v23 }
0x10fe   :  { %1257 = vst.msk [vmem:[#allocation3 + $0xe] sm:$0x3] %vm204_vm4, %v1254_v23  ;;  %5762 = vmatpush1.bf16.msra.mxu1 %v6629_v8  ;;  %1606 = vmatprep.mubr.f32.mxu1 %v6574_v7 }
0x10ff   :  { %5764 = vmatprep.subr.bf16.mxu1 %v6631_v9 }
0x1102   :  { %5766 = vmatpush1.bf16.msra.mxu1 %v6648_v14 }
0x1103   :  { %5768 = vmatprep.subr.bf16.mxu1 %v6652_v15 }
0x1106   :  { %5770 = vmatpush1.bf16.msra.mxu1 %v6668_v20 }
0x1107   :  { %5772 = vmatprep.subr.bf16.mxu1 %v6672_v21 }
0x110a   :  { %5774 = vmatpush1.bf16.msra.mxu1 %v6682_v24 }
0x110b   :  { %5792 = vmatprep.subr.bf16.mxu1 %v6616_v3 }
0x11d0   :  { %v1352_v29 = vpop.f32.mrb[8].mxu1 }
0x11d1   :  { %v1357_v30 = vadd.f32 %v1352_v29, %v1282_v26  ;;  %v1354_v31 = vpop.f32.mrb[9].mxu1 }
0x11d2   :  { %v1358_v33 = vadd.f32 %v1354_v31, %v1283_v28 }
0x11d3   :  { %v1359_v39 = vmul.f32 0.5, %v1357_v30 }
0x11d4   :  { %v1360_v40 = vmul.f32 0.5, %v1358_v33 }
0x11d5   :  { %6408 = vtanh.f32 %v1359_v39 }
0x11d6   :  { %v1362_v41 = vsel %vm53_vm2, %v1358_v33, %v1360_v40  ;;  %v1538_v40 = vsel %vm6711_vm0, %v6866_v43, %v6861_v42 }
0x11d7   :  { %6410 = vtanh.f32 %v1362_v41  ;;  %v1539_v41 = vsel %vm6715_vm1, %v6874_v45, %v6870_v44 }
0x11df   :  { %v6409_v46 = vpop.eup %6408 }
0x11e0   :  { %v1365_v48 = vmul.f32 0.5, %v6409_v46 }
0x11e1   :  { %v6411_v47 = vpop.eup %6410 }
0x11e2   :  { %v1366_v57 = vmul.f32 0.5, %v6411_v47  ;;  %v1367_v53 = vadd.f32 0.5, %v1365_v48 }
0x11e4   :  { %v1368_v58 = vadd.f32 0.5, %v1366_v57  ;;  %v1371_v54 = vmul.f32 %v1367_v53, %v1249_v12 }
0x11e6   :  { %v1370_v59 = vsel %vm53_vm2, %v6411_v47, %v1368_v58 }
0x11e7   :  { %v1372_v60 = vmul.f32 %v1370_v59, %v1367_v53 }
0x11e9   :  { %1374 = vrot.lane.b32.xlu0 %v1372_v60, %s6575_s28 }
0x125b   :  { %v1375_v55 = vpop.permute.xlu0 %1374 }
0x125c   :  { %v1377_v56 = vadd.f32 %v1375_v55, %v1371_v54 }
0x125e   :  { %6412 = vtanh.f32 %v1377_v56 }
0x1268   :  { %v6413_v61 = vpop.eup %6412 }
0x1269   :  { %v1379_v2 = vmul.f32 %v6413_v61, %v1370_v59 }
0x126b   :  { %1381 = vrot.lane.b32.xlu1 %v1379_v2, %s6575_s28 }
0x12dd   :  { %v1382_v4 = vpop.permute.xlu1 %1381 }
0x12de   :  { %1384 = vst.msk [vmem:[#allocation3 + $0x12] sm:$0x3] %vm201_vm3, %v1382_v4  ;;  %5495 = vmatmul.mubr.msk.f32.vlgmr.msra.gmra.mrb[10].mxu0 %vm99_vm5, %v1382_v4 }
0x12df   :  { %1385 = vst.msk [vmem:[#allocation3 + $0xc] sm:$0x3] %vm204_vm4, %v1382_v4  ;;  %5778 = vmatpush1.bf16.msra.mxu0 %v6629_v8  ;;  %1734 = vmatprep.mubr.f32.mxu0 %v6574_v7 }
0x12e0   :  { %5780 = vmatprep.subr.bf16.mxu0 %v6631_v9 }
0x12e3   :  { %5782 = vmatpush1.bf16.msra.mxu0 %v6648_v14 }
0x12e4   :  { %5784 = vmatprep.subr.bf16.mxu0 %v6652_v15 }
0x12e7   :  { %5786 = vmatpush1.bf16.msra.mxu0 %v6668_v20 }
0x12e8   :  { %5788 = vmatprep.subr.bf16.mxu0 %v6672_v21 }
0x12eb   :  { %5790 = vmatpush1.bf16.msra.mxu0 %v6682_v24 }
0x12ec   :  { %5808 = vmatprep.subr.bf16.mxu0 %v6616_v3 }
0x13b1   :  { %v1480_v10 = vpop.f32.mrb[10].mxu0 }
0x13b2   :  { %v1485_v49 = vadd.f32 %v1480_v10, %v1410_v5  ;;  %v1482_v50 = vpop.f32.mrb[11].mxu0  ;;  %v1666_v10 = vsel %vm6711_vm0, %v6822_v63, %v6817_v62 }
0x13b3   :  { %v1486_v51 = vadd.f32 %v1482_v50, %v1411_v6 }
0x13b4   :  { %v1487_v52 = vmul.f32 0.5, %v1485_v49  ;;  %v1667_v49 = vsel %vm6715_vm1, %v6830_v1, %v6826_v0 }
0x13b5   :  { %v1488_v11 = vmul.f32 0.5, %v1486_v51 }
0x13b6   :  { %6414 = vtanh.f32 %v1487_v52 }
0x13b7   :  { %v1490_v12 = vsel %vm53_vm2, %v1486_v51, %v1488_v11 }
0x13b8   :  { %6416 = vtanh.f32 %v1490_v12 }
0x13c0   :  { %v6415_v19 = vpop.eup %6414 }
0x13c1   :  { %v1493_v23 = vmul.f32 0.5, %v6415_v19 }
0x13c2   :  { %v6417_v22 = vpop.eup %6416 }
0x13c3   :  { %v1494_v13 = vmul.f32 0.5, %v6417_v22  ;;  %v1495_v26 = vadd.f32 0.5, %v1493_v23 }
0x13c5   :  { %v1496_v16 = vadd.f32 0.5, %v1494_v13  ;;  %v1499_v28 = vmul.f32 %v1495_v26, %v1377_v56 }
0x13c7   :  { %v1498_v17 = vsel %vm53_vm2, %v6417_v22, %v1496_v16 }
0x13c8   :  { %v1500_v18 = vmul.f32 %v1498_v17, %v1495_v26 }
0x13ca   :  { %1502 = vrot.lane.b32.xlu0 %v1500_v18, %s6575_s28 }
0x143c   :  { %v1503_v29 = vpop.permute.xlu0 %1502 }
0x143d   :  { %v1505_v30 = vadd.f32 %v1503_v29, %v1499_v28 }
0x143f   :  { %6418 = vtanh.f32 %v1505_v30 }
0x1449   :  { %v6419_v31 = vpop.eup %6418 }
0x144a   :  { %v1507_v33 = vmul.f32 %v6419_v31, %v1498_v17 }
0x144c   :  { %1509 = vrot.lane.b32.xlu1 %v1507_v33, %s6575_s28  ;;  %v1794_v33 = vsel %vm6711_vm0, %v6778_v36, %v6773_v34 }
0x14be   :  { %v1510_v39 = vpop.permute.xlu1 %1509 }
0x14bf   :  { %1512 = vst.msk [vmem:[#allocation3 + $0x14] sm:$0x3] %vm201_vm3, %v1510_v39  ;;  %5500 = vmatmul.mubr.msk.f32.vlgmr.msra.gmra.mrb[10].mxu1 %vm99_vm5, %v1510_v39 }
0x14c0   :  { %1513 = vst.msk [vmem:[#allocation3 + $0xa] sm:$0x3] %vm204_vm4, %v1510_v39  ;;  %5794 = vmatpush1.bf16.msra.mxu1 %v6629_v8  ;;  %1862 = vmatprep.mubr.f32.mxu1 %v6574_v7 }
0x14c1   :  { %5796 = vmatprep.subr.bf16.mxu1 %v6631_v9 }
0x14c4   :  { %5798 = vmatpush1.bf16.msra.mxu1 %v6648_v14 }
0x14c5   :  { %5800 = vmatprep.subr.bf16.mxu1 %v6652_v15 }
0x14c8   :  { %5802 = vmatpush1.bf16.msra.mxu1 %v6668_v20 }
0x14c9   :  { %5804 = vmatprep.subr.bf16.mxu1 %v6672_v21 }
0x14cc   :  { %5806 = vmatpush1.bf16.msra.mxu1 %v6682_v24 }
0x14cd   :  { %5824 = vmatprep.subr.bf16.mxu1 %v6616_v3 }
0x1592   :  { %v1608_v46 = vpop.f32.mrb[10].mxu1 }
0x1593   :  { %v1613_v47 = vadd.f32 %v1608_v46, %v1538_v40  ;;  %v1610_v48 = vpop.f32.mrb[11].mxu1 }
0x1594   :  { %v1614_v57 = vadd.f32 %v1610_v48, %v1539_v41 }
0x1595   :  { %v1615_v58 = vmul.f32 0.5, %v1613_v47 }
0x1596   :  { %v1616_v53 = vmul.f32 0.5, %v1614_v57 }
0x1597   :  { %6420 = vtanh.f32 %v1615_v58 }
0x1598   :  { %v1618_v3 = vsel %vm53_vm2, %v1614_v57, %v1616_v53 }
0x1599   :  { %6422 = vtanh.f32 %v1618_v3 }
0x15a1   :  { %v6421_v59 = vpop.eup %6420 }
0x15a2   :  { %v1621_v54 = vmul.f32 0.5, %v6421_v59 }
0x15a3   :  { %v6423_v60 = vpop.eup %6422 }
0x15a4   :  { %v1622_v42 = vmul.f32 0.5, %v6423_v60  ;;  %v1623_v55 = vadd.f32 0.5, %v1621_v54  ;;  %v5514_v54 = vld.sshfl [vmem:[%s8073_s0 + $0x4] sm:$0x33 pattern:$0x76325410] }
0x15a6   :  { %v1624_v43 = vadd.f32 0.5, %v1622_v42  ;;  %v1627_v56 = vmul.f32 %v1623_v55, %v1505_v30 }
0x15a8   :  { %v1626_v44 = vsel %vm53_vm2, %v6423_v60, %v1624_v43  ;;  %v5513_v60 = vld.sshfl [vmem:[%s8073_s0 + $0x38] sm:$0x33 pattern:$0x76325410]  ;;  %v1919_v43 = vcombine.high %v5514_v54, %v5514_v54 }
0x15a9   :  { %v1628_v45 = vmul.f32 %v1626_v44, %v1623_v55  ;;  %v1908_v42 = vcombine.high %v5513_v60, %v5513_v60  ;;  %v1922_v55 = vsel %vm6711_vm0, %v5513_v60, %v5514_v54  ;;  %v5518_v60 = vld.sshfl [vmem:[%s8073_s0] sm:$0x33 pattern:$0x76325410] }
0x15ab   :  { %1630 = vrot.lane.b32.xlu0 %v1628_v45, %s6575_s28 }
0x161d   :  { %v1631_v61 = vpop.permute.xlu0 %1630 }
0x161e   :  { %v1633_v2 = vadd.f32 %v1631_v61, %v1627_v56 }
0x1620   :  { %6424 = vtanh.f32 %v1633_v2 }
0x162a   :  { %v6425_v4 = vpop.eup %6424 }
0x162b   :  { %v1635_v5 = vmul.f32 %v6425_v4, %v1626_v44  ;;  %v1923_v44 = vsel %vm6715_vm1, %v1908_v42, %v1919_v43  ;;  %v2047_v42 = vcombine.high %v5518_v60, %v5518_v60 }
0x162d   :  { %1637 = vrot.lane.b32.xlu1 %v1635_v5, %s6575_s28 }
0x169f   :  { %v1638_v6 = vpop.permute.xlu1 %1637 }
0x16a0   :  { %1640 = vst.msk [vmem:[#allocation3 + $0x16] sm:$0x3] %vm201_vm3, %v1638_v6  ;;  %5505 = vmatmul.mubr.msk.f32.vlgmr.msra.gmra.mrb[12].mxu0 %vm99_vm5, %v1638_v6 }
0x16a1   :  { %1641 = vst.msk [vmem:[#allocation3 + $0x8] sm:$0x3] %vm204_vm4, %v1638_v6  ;;  %5810 = vmatpush1.bf16.msra.mxu0 %v6629_v8  ;;  %1990 = vmatprep.mubr.f32.mxu0 %v6574_v7 }
0x16a2   :  { %5812 = vmatprep.subr.bf16.mxu0 %v6631_v9 }
0x16a5   :  { %5814 = vmatpush1.bf16.msra.mxu0 %v6648_v14 }
0x16a6   :  { %5816 = vmatprep.subr.bf16.mxu0 %v6652_v15 }
0x16a9   :  { %5818 = vmatpush1.bf16.msra.mxu0 %v6668_v20 }
0x16aa   :  { %5820 = vmatprep.subr.bf16.mxu0 %v6672_v21 }
0x16ad   :  { %5822 = vmatpush1.bf16.msra.mxu0 %v6682_v24 }
0x1773   :  { %v1736_v50 = vpop.f32.mrb[12].mxu0 }
0x1774   :  { %v1741_v51 = vadd.f32 %v1736_v50, %v1666_v10  ;;  %v1738_v52 = vpop.f32.mrb[13].mxu0 }
0x1775   :  { %v1742_v11 = vadd.f32 %v1738_v52, %v1667_v49 }
0x1776   :  { %v1743_v12 = vmul.f32 0.5, %v1741_v51 }
0x1777   :  { %v1744_v19 = vmul.f32 0.5, %v1742_v11 }
0x1778   :  { %6426 = vtanh.f32 %v1743_v12 }
0x1779   :  { %v1746_v22 = vsel %vm53_vm2, %v1742_v11, %v1744_v19 }
0x177a   :  { %6428 = vtanh.f32 %v1746_v22  ;;  %v2155_v22 = vld [vmem:[%s8075_s2 + $0x8] sm:$0xff] }
0x1782   :  { %v6427_v23 = vpop.eup %6426 }
0x1783   :  { %v1749_v16 = vmul.f32 0.5, %v6427_v23  ;;  %v2157_v23 = vld [vmem:[%s8075_s2 + $0x18] sm:$0xff] }
0x1784   :  { %v6429_v13 = vpop.eup %6428 }
0x1785   :  { %v1750_v62 = vmul.f32 0.5, %v6429_v13  ;;  %v1751_v26 = vadd.f32 0.5, %v1749_v16 }
0x1787   :  { %v1752_v63 = vadd.f32 0.5, %v1750_v62  ;;  %v1755_v17 = vmul.f32 %v1751_v26, %v1633_v2 }
0x1789   :  { %v1754_v0 = vsel %vm53_vm2, %v6429_v13, %v1752_v63  ;;  %v7181_v13 = vpack.c.bf16 %v2157_v23, %v2155_v22  ;;  %v2154_v63 = vld [vmem:[%s8075_s2] sm:$0xff] }
0x178a   :  { %v1756_v1 = vmul.f32 %v1754_v0, %v1751_v26  ;;  %v2156_v26 = vld [vmem:[%s8075_s2 + $0x10] sm:$0xff] }
0x178b   :  { %5840 = vmatprep.subr.bf16.mxu0 %v7181_v13 }
0x178c   :  { %1758 = vrot.lane.b32.xlu0 %v1756_v1, %s6575_s28  ;;  %v7193_v1 = vpack.c.bf16 %v2156_v26, %v2154_v63 }
0x17fe   :  { %v1759_v18 = vpop.permute.xlu0 %1758 }
0x17ff   :  { %v1761_v28 = vadd.f32 %v1759_v18, %v1755_v17  ;;  %v2159_v17 = vld [vmem:[%s8075_s2 + $0x28] sm:$0xff]  ;;  %v2161_v18 = vld [vmem:[%s8075_s2 + $0x38] sm:$0xff] }
0x1801   :  { %6430 = vtanh.f32 %v1761_v28 }
0x180b   :  { %v6431_v29 = vpop.eup %6430 }
0x180c   :  { %v1763_v30 = vmul.f32 %v6431_v29, %v1754_v0  ;;  %v2158_v29 = vld [vmem:[%s8075_s2 + $0x20] sm:$0xff] }
0x180e   :  { %1765 = vrot.lane.b32.xlu1 %v1763_v30, %s6575_s28  ;;  %v2160_v30 = vld [vmem:[%s8075_s2 + $0x30] sm:$0xff] }
0x1880   :  { %v1766_v31 = vpop.permute.xlu1 %1765 }
0x1881   :  { %1768 = vst.msk [vmem:[#allocation3 + $0x18] sm:$0x3] %vm201_vm3, %v1766_v31  ;;  %5510 = vmatmul.mubr.msk.f32.vlgmr.msra.gmra.mrb[12].mxu1 %vm99_vm5, %v1766_v31 }
0x1882   :  { %1769 = vst.msk [vmem:[#allocation3 + $0x6] sm:$0x3] %vm204_vm4, %v1766_v31  ;;  %5826 = vmatpush1.bf16.msra.mxu1 %v6629_v8  ;;  %2118 = vmatprep.mubr.f32.mxu1 %v6574_v7  ;;  %v1795_v8 = vsel %vm6715_vm1, %v6786_v38, %v6782_v37  ;;  %v7211_v31 = vpack.c.bf16 %v2160_v30, %v2158_v29 }
0x1883   :  { %5828 = vmatprep.subr.bf16.mxu1 %v6631_v9 }
0x1886   :  { %5830 = vmatpush1.bf16.msra.mxu1 %v6648_v14 }
0x1887   :  { %5832 = vmatprep.subr.bf16.mxu1 %v6652_v15 }
0x188a   :  { %5834 = vmatpush1.bf16.msra.mxu1 %v6668_v20 }
0x188b   :  { %5836 = vmatprep.subr.bf16.mxu1 %v6672_v21 }
0x188e   :  { %5838 = vmatpush1.bf16.msra.mxu1 %v6682_v24 }
0x188f   :  { %5856 = vmatprep.subr.bf16.mxu1 %v7181_v13 }
0x1954   :  { %v1864_v9 = vpop.f32.mrb[12].mxu1 }
0x1955   :  { %v1869_v14 = vadd.f32 %v1864_v9, %v1794_v33  ;;  %v1866_v39 = vpop.f32.mrb[13].mxu1  ;;  %v2163_v33 = vld [vmem:[%s8075_s2 + $0x48] sm:$0xff] }
0x1956   :  { %v1870_v15 = vadd.f32 %v1866_v39, %v1795_v8  ;;  %v2165_v8 = vld [vmem:[%s8075_s2 + $0x58] sm:$0xff]  ;;  %v2164_v39 = vld [vmem:[%s8075_s2 + $0x50] sm:$0xff] }
0x1957   :  { %v1871_v40 = vmul.f32 0.5, %v1869_v14  ;;  %v7221_v9 = vpack.c.bf16 %v2165_v8, %v2163_v33  ;;  %v2162_v14 = vld [vmem:[%s8075_s2 + $0x40] sm:$0xff] }
0x1958   :  { %v1872_v20 = vmul.f32 0.5, %v1870_v15 }
0x1959   :  { %6432 = vtanh.f32 %v1871_v40  ;;  %v2167_v40 = vld [vmem:[%s8075_s2 + $0x68] sm:$0xff] }
0x195a   :  { %v1874_v21 = vsel %vm53_vm2, %v1870_v15, %v1872_v20  ;;  %v7229_v15 = vpack.c.bf16 %v2164_v39, %v2162_v14  ;;  %v2169_v20 = vld [vmem:[%s8075_s2 + $0x78] sm:$0xff] }
0x195b   :  { %6434 = vtanh.f32 %v1874_v21 }
0x1963   :  { %v6433_v24 = vpop.eup %6432 }
0x1964   :  { %v1877_v46 = vmul.f32 0.5, %v6433_v24  ;;  %v7239_v24 = vpack.c.bf16 %v2169_v20, %v2167_v40 }
0x1965   :  { %v6435_v41 = vpop.eup %6434 }
0x1966   :  { %v1878_v34 = vmul.f32 0.5, %v6435_v41  ;;  %v1879_v47 = vadd.f32 0.5, %v1877_v46  ;;  %v2168_v46 = vld [vmem:[%s8075_s2 + $0x70] sm:$0xff] }
0x1968   :  { %v1880_v36 = vadd.f32 0.5, %v1878_v34  ;;  %v1883_v48 = vmul.f32 %v1879_v47, %v1761_v28  ;;  %v7203_v28 = vpack.c.bf16 %v2161_v18, %v2159_v17 }
0x196a   :  { %v1882_v37 = vsel %vm53_vm2, %v6435_v41, %v1880_v36  ;;  %v2166_v41 = vld [vmem:[%s8075_s2 + $0x60] sm:$0xff] }
0x196b   :  { %v1884_v38 = vmul.f32 %v1882_v37, %v1879_v47  ;;  %v7247_v36 = vpack.c.bf16 %v2168_v46, %v2166_v41 }
0x196d   :  { %1886 = vrot.lane.b32.xlu0 %v1884_v38, %s6575_s28  ;;  %v2461_v38 = vld [vmem:[#allocation3 + $0x6] sm:$0x3] }
0x19df   :  { %v1887_v57 = vpop.permute.xlu0 %1886 }
0x19e0   :  { %v1889_v58 = vadd.f32 %v1887_v57, %v1883_v48  ;;  %v2637_v48 = vld [vmem:[#allocation3 + $0xa] sm:$0x3]  ;;  %v2813_v57 = vld [vmem:[#allocation3 + $0xe] sm:$0x3] }
0x19e2   :  { %6436 = vtanh.f32 %v1889_v58 }
0x19ec   :  { %v6437_v53 = vpop.eup %6436 }
0x19ed   :  { %v1891_v3 = vmul.f32 %v6437_v53, %v1882_v37  ;;  %v3165_v53 = vld [vmem:[#allocation3 + $0x16] sm:$0x3] }
0x19ef   :  { %1893 = vrot.lane.b32.xlu1 %v1891_v3, %s6575_s28 }
0x1a61   :  { %v1894_v59 = vpop.permute.xlu1 %1893 }
0x1a62   :  { %1896 = vst.msk [vmem:[#allocation3 + $0x1a] sm:$0x3] %vm201_vm3, %v1894_v59  ;;  %5515 = vmatmul.mubr.msk.f32.vlgmr.msra.gmra.mrb[14].mxu0 %vm99_vm5, %v1894_v59 }
0x1a63   :  { %1897 = vst.msk [vmem:[#allocation3 + $0x4] sm:$0x3] %vm204_vm4, %v1894_v59  ;;  %2266 = vmatprep.mubr.f32.mxu0 %v6574_v7  ;;  %5842 = vmatpush1.bf16.msra.mxu0 %v7193_v1  ;;  %v5517_v59 = vld.sshfl [vmem:[%s8073_s0 + $0x3c] sm:$0x33 pattern:$0x76325410] }
0x1a64   :  { %5844 = vmatprep.subr.bf16.mxu0 %v7203_v28  ;;  %v2036_v54 = vcombine.high %v5517_v59, %v5517_v59  ;;  %v2050_v43 = vsel %vm6711_vm0, %v5517_v59, %v5518_v60 }
0x1a67   :  { %5846 = vmatpush1.bf16.msra.mxu0 %v7211_v31 }
0x1a68   :  { %5848 = vmatprep.subr.bf16.mxu0 %v7221_v9 }
0x1a69   :  { %v3341_v3 = vld [vmem:[#allocation3 + $0x1a] sm:$0x3] }
0x1a6b   :  { %5850 = vmatpush1.bf16.msra.mxu0 %v7229_v15 }
0x1a6c   :  { %5852 = vmatprep.subr.bf16.mxu0 %v7239_v24 }
0x1a6f   :  { %5854 = vmatpush1.bf16.msra.mxu0 %v7247_v36 }
0x1a70   :  { %5872 = vmatprep.subr.bf16.mxu0 %v7181_v13 }
0x1b35   :  { %v1992_v45 = vpop.f32.mrb[14].mxu0 }
0x1b36   :  { %v1997_v56 = vadd.f32 %v1992_v45, %v1922_v55  ;;  %v1994_v61 = vpop.f32.mrb[15].mxu0  ;;  %v2051_v55 = vsel %vm6715_vm1, %v2036_v54, %v2047_v42 }
0x1b37   :  { %v1998_v2 = vadd.f32 %v1994_v61, %v1923_v44 }
0x1b38   :  { %v1999_v4 = vmul.f32 0.5, %v1997_v56 }
0x1b39   :  { %v2000_v5 = vmul.f32 0.5, %v1998_v2 }
0x1b3a   :  { %6438 = vtanh.f32 %v1999_v4 }
0x1b3b   :  { %v2002_v6 = vsel %vm53_vm2, %v1998_v2, %v2000_v5  ;;  %v2173_v5 = vshrl.u32 %v21_v25, 7 }
0x1b3c   :  { %6440 = vtanh.f32 %v2002_v6 }
0x1b44   :  { %v6439_v10 = vpop.eup %6438 }
0x1b45   :  { %v2005_v50 = vmul.f32 0.5, %v6439_v10  ;;  %v2174_v10 = vsub.s32 0, %v2173_v5 }
0x1b46   :  { %v6441_v49 = vpop.eup %6440 }
0x1b47   :  { %v2006_v51 = vmul.f32 0.5, %v6441_v49  ;;  %v2007_v11 = vadd.f32 0.5, %v2005_v50  ;;  %v2178_v50 = vsub.s32 1, %v2173_v5 }
0x1b49   :  { %v2008_v52 = vadd.f32 0.5, %v2006_v51  ;;  %v2011_v16 = vmul.f32 %v2007_v11, %v1889_v58  ;;  %v2989_v58 = vld [vmem:[#allocation3 + $0x12] sm:$0x3] }
0x1b4b   :  { %v2010_v12 = vsel %vm53_vm2, %v6441_v49, %v2008_v52  ;;  %v2170_v49 = vld [vmem:[%s8076_s3] sm:$0x3] }
0x1b4c   :  { %v2012_v19 = vmul.f32 %v2010_v12, %v2007_v11  ;;  %v7350_v51 = vrot.slane %v2170_v49, %v2174_v10  ;;  %v7352_v52 = vrot.slane %v2170_v49, %v2178_v50  ;;  %v2183_v50 = vld [vmem:[%s8077_s4 + $0x8] sm:$0xff] }
0x1b4e   :  { %2014 = vrot.lane.b32.xlu0 %v2012_v19, %s6575_s28 }
0x1bc0   :  { %v2015_v62 = vpop.permute.xlu0 %2014 }
0x1bc1   :  { %v7191_v0 = vadd.f32 %v2015_v62, %v2011_v16 }
0x1bc3   :  { %6442 = vtanh.f32 %v7191_v0 }
0x1bcd   :  { %v6443_v21 = vpop.eup %6442 }
0x1bce   :  { %v2019_v34 = vmul.f32 %v6443_v21, %v2010_v12 }
0x1bd0   :  { %2021 = vrot.lane.b32.xlu1 %v2019_v34, %s6575_s28 }
0x1c42   :  { %v2022_v47 = vpop.permute.xlu1 %2021 }
0x1c43   :  { %2024 = vst.msk [vmem:[#allocation3 + $0x1c] sm:$0x3] %vm201_vm3, %v2022_v47  ;;  %5519 = vmatmul.mubr.msk.f32.vlgmr.msra.gmra.mrb[14].mxu1 %vm99_vm5, %v2022_v47 }
0x1c44   :  { %2025 = vst.msk [vmem:[#allocation3 + $0x2] sm:$0x3] %vm204_vm4, %v2022_v47  ;;  %5858 = vmatpush1.bf16.msra.mxu1 %v7193_v1  ;;  %2353 = vmatprep.mubr.f32.mxu1 %v6574_v7 }
0x1c45   :  { %5860 = vmatprep.subr.bf16.mxu1 %v7203_v28 }
0x1c48   :  { %5862 = vmatpush1.bf16.msra.mxu1 %v7211_v31 }
0x1c49   :  { %5864 = vmatprep.subr.bf16.mxu1 %v7221_v9 }
0x1c4b   :  { %v2285_v37 = vld [vmem:[#allocation3 + $0x2] sm:$0x3] }
0x1c4c   :  { %5866 = vmatpush1.bf16.msra.mxu1 %v7229_v15 }
0x1c4d   :  { %5868 = vmatprep.subr.bf16.mxu1 %v7239_v24 }
0x1c50   :  { %5870 = vmatpush1.bf16.msra.mxu1 %v7247_v36 }
0x1c51   :  { %5888 = vmatprep.subr.bf16.mxu1 %v7181_v13 }
0x1c53   :  { %5522 = vmatmul.mubr.msk.f32.vlgmr.msra.gmra.mrb[16].mxu1 %vm99_vm5, %v2285_v37 }
0x1c54   :  { %5890 = vmatpush1.bf16.msra.mxu1 %v7193_v1  ;;  %2529 = vmatprep.mubr.f32.mxu1 %v6574_v7 }
0x1c55   :  { %5892 = vmatprep.subr.bf16.mxu1 %v7203_v28 }
0x1c58   :  { %5894 = vmatpush1.bf16.msra.mxu1 %v7211_v31 }
0x1c59   :  { %5896 = vmatprep.subr.bf16.mxu1 %v7221_v9 }
0x1c5c   :  { %5898 = vmatpush1.bf16.msra.mxu1 %v7229_v15 }
0x1c5d   :  { %5900 = vmatprep.subr.bf16.mxu1 %v7239_v24 }
0x1c60   :  { %5902 = vmatpush1.bf16.msra.mxu1 %v7247_v36 }
0x1c61   :  { %5920 = vmatprep.subr.bf16.mxu1 %v7181_v13 }
0x1c63   :  { %5526 = vmatmul.mubr.msk.f32.vlgmr.msra.gmra.mrb[18].mxu1 %vm99_vm5, %v2461_v38 }
0x1c64   :  { %5922 = vmatpush1.bf16.msra.mxu1 %v7193_v1  ;;  %2705 = vmatprep.mubr.f32.mxu1 %v6574_v7 }
0x1c65   :  { %5924 = vmatprep.subr.bf16.mxu1 %v7203_v28 }
0x1c68   :  { %5926 = vmatpush1.bf16.msra.mxu1 %v7211_v31 }
0x1c69   :  { %5928 = vmatprep.subr.bf16.mxu1 %v7221_v9 }
0x1c6c   :  { %5930 = vmatpush1.bf16.msra.mxu1 %v7229_v15 }
0x1c6d   :  { %5932 = vmatprep.subr.bf16.mxu1 %v7239_v24 }
0x1c70   :  { %5934 = vmatpush1.bf16.msra.mxu1 %v7247_v36 }
0x1c71   :  { %5952 = vmatprep.subr.bf16.mxu1 %v7181_v13 }
0x1c73   :  { %5530 = vmatmul.mubr.msk.f32.vlgmr.msra.gmra.mrb[20].mxu1 %vm99_vm5, %v2637_v48 }
0x1c74   :  { %5954 = vmatpush1.bf16.msra.mxu1 %v7193_v1  ;;  %2881 = vmatprep.mubr.f32.mxu1 %v6574_v7 }
0x1c75   :  { %5956 = vmatprep.subr.bf16.mxu1 %v7203_v28 }
0x1c78   :  { %5958 = vmatpush1.bf16.msra.mxu1 %v7211_v31 }
0x1c79   :  { %5960 = vmatprep.subr.bf16.mxu1 %v7221_v9 }
0x1c7c   :  { %5962 = vmatpush1.bf16.msra.mxu1 %v7229_v15 }
0x1c7d   :  { %5964 = vmatprep.subr.bf16.mxu1 %v7239_v24 }
0x1c80   :  { %5966 = vmatpush1.bf16.msra.mxu1 %v7247_v36 }
0x1c81   :  { %5984 = vmatprep.subr.bf16.mxu1 %v7181_v13 }
0x1c83   :  { %5534 = vmatmul.mubr.msk.f32.vlgmr.msra.gmra.mrb[22].mxu1 %vm99_vm5, %v2813_v57 }
0x1c84   :  { %5986 = vmatpush1.bf16.msra.mxu1 %v7193_v1  ;;  %3057 = vmatprep.mubr.f32.mxu1 %v6574_v7 }
0x1c85   :  { %5988 = vmatprep.subr.bf16.mxu1 %v7203_v28 }
0x1c88   :  { %5990 = vmatpush1.bf16.msra.mxu1 %v7211_v31 }
0x1c89   :  { %5992 = vmatprep.subr.bf16.mxu1 %v7221_v9 }
0x1c8c   :  { %5994 = vmatpush1.bf16.msra.mxu1 %v7229_v15 }
0x1c8d   :  { %5996 = vmatprep.subr.bf16.mxu1 %v7239_v24 }
0x1c90   :  { %5998 = vmatpush1.bf16.msra.mxu1 %v7247_v36 }
0x1c91   :  { %6016 = vmatprep.subr.bf16.mxu1 %v7181_v13 }
0x1c93   :  { %5538 = vmatmul.mubr.msk.f32.vlgmr.msra.gmra.mrb[24].mxu1 %vm99_vm5, %v2989_v58 }
0x1c94   :  { %6018 = vmatpush1.bf16.msra.mxu1 %v7193_v1  ;;  %3233 = vmatprep.mubr.f32.mxu1 %v6574_v7 }
0x1c95   :  { %6020 = vmatprep.subr.bf16.mxu1 %v7203_v28 }
0x1c98   :  { %6022 = vmatpush1.bf16.msra.mxu1 %v7211_v31 }
0x1c99   :  { %6024 = vmatprep.subr.bf16.mxu1 %v7221_v9 }
0x1c9c   :  { %6026 = vmatpush1.bf16.msra.mxu1 %v7229_v15 }
0x1c9d   :  { %6028 = vmatprep.subr.bf16.mxu1 %v7239_v24 }
0x1ca0   :  { %6030 = vmatpush1.bf16.msra.mxu1 %v7247_v36 }
0x1ca1   :  { %6048 = vmatprep.subr.bf16.mxu1 %v7181_v13 }
0x1ca3   :  { %5542 = vmatmul.mubr.msk.f32.vlgmr.msra.gmra.mrb[26].mxu1 %vm99_vm5, %v3165_v53 }
0x1ca4   :  { %6050 = vmatpush1.bf16.msra.mxu1 %v7193_v1  ;;  %3409 = vmatprep.mubr.f32.mxu1 %v6574_v7 }
0x1ca5   :  { %6052 = vmatprep.subr.bf16.mxu1 %v7203_v28 }
0x1ca8   :  { %6054 = vmatpush1.bf16.msra.mxu1 %v7211_v31 }
0x1ca9   :  { %6056 = vmatprep.subr.bf16.mxu1 %v7221_v9 }
0x1cac   :  { %6058 = vmatpush1.bf16.msra.mxu1 %v7229_v15 }
0x1cad   :  { %6060 = vmatprep.subr.bf16.mxu1 %v7239_v24 }
0x1cb0   :  { %6062 = vmatpush1.bf16.msra.mxu1 %v7247_v36 }
0x1cb1   :  { %6080 = vmatprep.subr.bf16.mxu1 %v7181_v13 }
0x1cb3   :  { %5546 = vmatmul.mubr.msk.f32.vlgmr.msra.gmra.mrb[28].mxu1 %vm99_vm5, %v3341_v3 }
0x1cb4   :  { %6082 = vmatpush1.bf16.msra.mxu1 %v7193_v1  ;;  %3585 = vmatprep.mubr.f32.mxu1 %v6574_v7 }
0x1cb5   :  { %6084 = vmatprep.subr.bf16.mxu1 %v7203_v28 }
0x1cb8   :  { %6086 = vmatpush1.bf16.msra.mxu1 %v7211_v31 }
0x1cb9   :  { %6088 = vmatprep.subr.bf16.mxu1 %v7221_v9 }
0x1cbc   :  { %6090 = vmatpush1.bf16.msra.mxu1 %v7229_v15 }
0x1cbd   :  { %6092 = vmatprep.subr.bf16.mxu1 %v7239_v24 }
0x1cc0   :  { %6094 = vmatpush1.bf16.msra.mxu1 %v7247_v36 }
0x1d16   :  { %v2120_v44 = vpop.f32.mrb[14].mxu1 }
0x1d17   :  { %v2125_v45 = vadd.f32 %v2120_v44, %v2050_v43  ;;  %v2122_v56 = vpop.f32.mrb[15].mxu1 }
0x1d18   :  { %v2126_v61 = vadd.f32 %v2122_v56, %v2051_v55 }
0x1d19   :  { %v2127_v2 = vmul.f32 0.5, %v2125_v45 }
0x1d1a   :  { %v2128_v4 = vmul.f32 0.5, %v2126_v61 }
0x1d1b   :  { %6444 = vtanh.f32 %v2127_v2 }
0x1d1c   :  { %v2130_v6 = vsel %vm53_vm2, %v2126_v61, %v2128_v4 }
0x1d1d   :  { %6446 = vtanh.f32 %v2130_v6 }
0x1d25   :  { %v6445_v11 = vpop.eup %6444 }
0x1d26   :  { %v2355_v12 = vpop.f32.mrb[16].mxu1  ;;  %v2133_v22 = vmul.f32 0.5, %v6445_v11  ;;  %v2185_v11 = vld [vmem:[%s8077_s4 + $0x18] sm:$0xff] }
0x1d27   :  { %v6447_v19 = vpop.eup %6446  ;;  %v2356_v25 = vadd.f32 %v2355_v12, %v7350_v51  ;;  %v2357_v23 = vpop.f32.mrb[17].mxu1  ;;  %v7379_v12 = vpack.c.bf16 %v2185_v11, %v2183_v50 }
0x1d28   :  { %v2358_v16 = vadd.f32 %v2357_v23, %v7352_v52  ;;  %v2134_v62 = vmul.f32 0.5, %v6447_v19  ;;  %v2135_v17 = vadd.f32 0.5, %v2133_v22  ;;  %v2184_v22 = vld [vmem:[%s8077_s4 + $0x10] sm:$0xff]  ;;  %v2189_v23 = vld [vmem:[%s8077_s4 + $0x38] sm:$0xff] }
0x1d29   :  { %6112 = vmatprep.subr.bf16.mxu1 %v7379_v12 }
0x1d2a   :  { %v2362_v63 = vcombine.low %v2356_v25, %v2358_v16  ;;  %v2136_v26 = vadd.f32 0.5, %v2134_v62  ;;  %v2139_v4 = vmul.f32 %v2135_v17, %v7191_v0  ;;  %v2187_v25 = vld [vmem:[%s8077_s4 + $0x28] sm:$0xff] }
0x1d2c   :  { %5523 = vst.sshfl [vmem:[#allocation2 + $0x4] sm:$0x33 pattern:$0x76325410] %v2362_v63  ;;  %v2138_v18 = vsel %vm53_vm2, %v6447_v19, %v2136_v26  ;;  %v2182_v19 = vld [vmem:[%s8077_s4] sm:$0xff]  ;;  %v7402_v26 = vpack.c.bf16 %v2189_v23, %v2187_v25 }
0x1d2d   :  { %v2140_v29 = vmul.f32 %v2138_v18, %v2135_v17  ;;  %v7398_v63 = vpack.c.bf16 %v2184_v22, %v2182_v19  ;;  %v2186_v17 = vld [vmem:[%s8077_s4 + $0x20] sm:$0xff] }
0x1d2f   :  { %2142 = vrot.lane.b32.xlu0 %v2140_v29, %s6575_s28  ;;  %v2191_v29 = vld [vmem:[%s8077_s4 + $0x48] sm:$0xff] }
0x1d36   :  { %v2531_v30 = vpop.f32.mrb[18].mxu1 }
0x1d37   :  { %v2532_v33 = vadd.f32 %v2531_v30, %v7350_v51  ;;  %v2533_v8 = vpop.f32.mrb[19].mxu1  ;;  %v2193_v30 = vld [vmem:[%s8077_s4 + $0x58] sm:$0xff] }
0x1d38   :  { %v2534_v14 = vadd.f32 %v2533_v8, %v7352_v52  ;;  %v7423_v8 = vpack.c.bf16 %v2193_v30, %v2191_v29 }
0x1d3a   :  { %v2538_v39 = vcombine.low %v2532_v33, %v2534_v14  ;;  %v2190_v14 = vld [vmem:[%s8077_s4 + $0x40] sm:$0xff] }
0x1d3c   :  { %5527 = vst.sshfl [vmem:[#allocation2 + $0xc] sm:$0x33 pattern:$0x76325410] %v2538_v39  ;;  %v2192_v39 = vld [vmem:[%s8077_s4 + $0x50] sm:$0xff] }
0x1d46   :  { %v2707_v40 = vpop.f32.mrb[20].mxu1 }
0x1d47   :  { %v2708_v20 = vadd.f32 %v2707_v40, %v7350_v51  ;;  %v2709_v21 = vpop.f32.mrb[21].mxu1  ;;  %v2195_v40 = vld [vmem:[%s8077_s4 + $0x68] sm:$0xff] }
0x1d48   :  { %v2710_v41 = vadd.f32 %v2709_v21, %v7352_v52  ;;  %v7440_v21 = vpack.c.bf16 %v2192_v39, %v2190_v14 }
0x1d4a   :  { %v2714_v46 = vcombine.low %v2708_v20, %v2710_v41  ;;  %v2197_v20 = vld [vmem:[%s8077_s4 + $0x78] sm:$0xff] }
0x1d4b   :  { %v7443_v41 = vpack.c.bf16 %v2197_v20, %v2195_v40 }
0x1d4c   :  { %5531 = vst.sshfl [vmem:[#allocation2 + $0x14] sm:$0x33 pattern:$0x76325410] %v2714_v46  ;;  %v2194_v46 = vld [vmem:[%s8077_s4 + $0x60] sm:$0xff] }
0x1d56   :  { %v2883_v34 = vpop.f32.mrb[22].mxu1 }
0x1d57   :  { %v2884_v47 = vadd.f32 %v2883_v34, %v7350_v51  ;;  %v2885_v37 = vpop.f32.mrb[23].mxu1  ;;  %v2196_v34 = vld [vmem:[%s8077_s4 + $0x70] sm:$0xff] }
0x1d58   :  { %v2886_v38 = vadd.f32 %v2885_v37, %v7352_v52  ;;  %v2373_v37 = vld [vmem:[#allocation3 + $0x4] sm:$0x3] }
0x1d5a   :  { %v2890_v48 = vcombine.low %v2884_v47, %v2886_v38  ;;  %v7454_v47 = vpack.c.bf16 %v2196_v34, %v2194_v46  ;;  %v2549_v38 = vld [vmem:[#allocation3 + $0x8] sm:$0x3] }
0x1d5c   :  { %5535 = vst.sshfl [vmem:[#allocation2 + $0x1c] sm:$0x33 pattern:$0x76325410] %v2890_v48  ;;  %v2725_v48 = vld [vmem:[#allocation3 + $0xc] sm:$0x3] }
0x1d66   :  { %v3059_v57 = vpop.f32.mrb[24].mxu1 }
0x1d67   :  { %v3060_v58 = vadd.f32 %v3059_v57, %v7350_v51  ;;  %v3061_v53 = vpop.f32.mrb[25].mxu1  ;;  %v2901_v57 = vld [vmem:[#allocation3 + $0x10] sm:$0x3] }
0x1d68   :  { %v3062_v3 = vadd.f32 %v3061_v53, %v7352_v52  ;;  %v3253_v53 = vld [vmem:[#allocation3 + $0x18] sm:$0x3] }
0x1d6a   :  { %v3066_v59 = vcombine.low %v3060_v58, %v3062_v3  ;;  %v3077_v58 = vld [vmem:[#allocation3 + $0x14] sm:$0x3] }
0x1d6c   :  { %5539 = vst.sshfl [vmem:[#allocation2 + $0x24] sm:$0x33 pattern:$0x76325410] %v3066_v59 }
0x1d73   :  { %v7602_v46 = vld.sshfl [vmem:[#allocation2 + $0x24] sm:$0x33 pattern:$0x76325410] }
0x1d76   :  { %v3235_v60 = vpop.f32.mrb[26].mxu1 }
0x1d77   :  { %v3236_v54 = vadd.f32 %v3235_v60, %v7350_v51  ;;  %v3237_v42 = vpop.f32.mrb[27].mxu1 }
0x1d78   :  { %v3238_v43 = vadd.f32 %v3237_v42, %v7352_v52 }
0x1d7a   :  { %v3242_v55 = vcombine.low %v3236_v54, %v3238_v43 }
0x1d7c   :  { %5543 = vst.sshfl [vmem:[#allocation2 + $0x2c] sm:$0x33 pattern:$0x76325410] %v3242_v55 }
0x1d86   :  { %v3411_v44 = vpop.f32.mrb[28].mxu1 }
0x1d87   :  { %v3412_v45 = vadd.f32 %v3411_v44, %v7350_v51  ;;  %v3413_v56 = vpop.f32.mrb[29].mxu1 }
0x1d88   :  { %v3414_v61 = vadd.f32 %v3413_v56, %v7352_v52 }
0x1d8a   :  { %v3418_v2 = vcombine.low %v3412_v45, %v3414_v61 }
0x1d8c   :  { %5547 = vst.sshfl [vmem:[#allocation2 + $0x34] sm:$0x33 pattern:$0x76325410] %v3418_v2 }
0x1da1   :  { %v2143_v5 = vpop.permute.xlu0 %2142 }
0x1da2   :  { %v2145_v6 = vadd.f32 %v2143_v5, %v2139_v4 }
0x1da4   :  { %6448 = vtanh.f32 %v2145_v6  ;;  %v7566_v6 = vld.sshfl [vmem:[#allocation2 + $0x34] sm:$0x33 pattern:$0x76325410] }
0x1da5   :  { %v7576_v50 = vcombine.high %v7566_v6, %v7566_v6 }
0x1dae   :  { %v6449_v10 = vpop.eup %6448 }
0x1daf   :  { %v2147_v49 = vmul.f32 %v6449_v10, %v2138_v18  ;;  %v2188_v18 = vld [vmem:[%s8077_s4 + $0x30] sm:$0xff]  ;;  %s6576_s4 = smov [#allocation4]  }
0x1db0   :  { %v7420_v33 = vpack.c.bf16 %v2188_v18, %v2186_v17  ;;  %s5435_s1 = sshll.u32 %s6576_s4, 4  ;;  %s5436_s1 = int_to_ptr.vmem [resolvable:$true] %s5435_s1 }
0x1db1   :  { %2149 = vrot.lane.b32.xlu1 %v2147_v49, %s6575_s28  ;;  %s6550_s25 = scalar_lea.vmem %s5436_s1, 32  ;;  %p6555_p1 = scmp.lt.s32.totalorder %s5436_s1, %s5436_s1 }
0x1db2   :  { %p6551_p0 = scmp.ne.s32.totalorder %s5436_s1, %s6550_s25  ;;  %p6556_p2 = scmp.lt.s32.totalorder %s6550_s25, %s6550_s25 }
0x1db4   :  { %p6557_p3 = por %p6556_p2, %p6555_p1 }
0x1db6   :  { %p6558_p4 = pnand %p6557_p3, %p6551_p0 }
0x1e23   :  { %v2150_v0 = vpop.permute.xlu1 %2149 }
0x1e24   :  { %2152 = vst.msk [vmem:[#allocation3 + $0x1e] sm:$0x3] %vm201_vm3, %v2150_v0 }
0x1e25   :  { %2153 = vst.msk [vmem:[#allocation3] sm:$0x3] %vm204_vm4, %v2150_v0 }
0x1e2b   :  { %v3517_v62 = vld [vmem:[#allocation3 + $0x1e] sm:$0x3] }
0x1e2c   :  { %v2198_v16 = vld [vmem:[#allocation3] sm:$0x3]  ;;  %5550 = vmatmul.mubr.msk.f32.vlgmr.msra.gmra.mrb[30].mxu1 %vm99_vm5, %v3517_v62 }
0x1e2d   :  { %5520 = vmatmul.mubr.msk.f32.vlgmr.msra.gmra.mrb[16].mxu0 %vm99_vm5, %v2198_v16  ;;  %6114 = vmatpush1.bf16.msra.mxu1 %v7398_v63  ;;  %v7584_v16 = vld.sshfl [vmem:[#allocation2 + $0x2c] sm:$0x33 pattern:$0x76325410] }
0x1e2e   :  { %5874 = vmatpush1.bf16.msra.mxu0 %v7193_v1  ;;  %2441 = vmatprep.mubr.f32.mxu0 %v6574_v7  ;;  %v7594_v18 = vcombine.high %v7584_v16, %v7584_v16 }
0x1e2f   :  { %5876 = vmatprep.subr.bf16.mxu0 %v7203_v28  ;;  %6116 = vmatprep.subr.bf16.mxu1 %v7402_v26 }
0x1e30   :  { %3820 = vmatprep.mubr.f32.mxu1 %v6574_v7 }
0x1e31   :  { %6118 = vmatpush1.bf16.msra.mxu1 %v7420_v33 }
0x1e32   :  { %5878 = vmatpush1.bf16.msra.mxu0 %v7211_v31  ;;  %6120 = vmatprep.subr.bf16.mxu1 %v7423_v8 }
0x1e33   :  { %5880 = vmatprep.subr.bf16.mxu0 %v7221_v9 }
0x1e35   :  { %6122 = vmatpush1.bf16.msra.mxu1 %v7440_v21 }
0x1e36   :  { %5882 = vmatpush1.bf16.msra.mxu0 %v7229_v15  ;;  %6124 = vmatprep.subr.bf16.mxu1 %v7443_v41 }
0x1e37   :  { %5884 = vmatprep.subr.bf16.mxu0 %v7239_v24 }
0x1e39   :  { %6126 = vmatpush1.bf16.msra.mxu1 %v7454_v47 }
0x1e3a   :  { %5886 = vmatpush1.bf16.msra.mxu0 %v7247_v36  ;;  %6144 = vmatprep.subr.bf16.mxu1 %v7379_v12 }
0x1e3b   :  { %5904 = vmatprep.subr.bf16.mxu0 %v7181_v13 }
0x1e3d   :  { %5524 = vmatmul.mubr.msk.f32.vlgmr.msra.gmra.mrb[18].mxu0 %vm99_vm5, %v2373_v37 }
0x1e3e   :  { %5906 = vmatpush1.bf16.msra.mxu0 %v7193_v1  ;;  %2617 = vmatprep.mubr.f32.mxu0 %v6574_v7 }
0x1e3f   :  { %5908 = vmatprep.subr.bf16.mxu0 %v7203_v28 }
0x1e42   :  { %5910 = vmatpush1.bf16.msra.mxu0 %v7211_v31 }
0x1e43   :  { %5912 = vmatprep.subr.bf16.mxu0 %v7221_v9 }
0x1e46   :  { %5914 = vmatpush1.bf16.msra.mxu0 %v7229_v15 }
0x1e47   :  { %5916 = vmatprep.subr.bf16.mxu0 %v7239_v24 }
0x1e4a   :  { %5918 = vmatpush1.bf16.msra.mxu0 %v7247_v36 }
0x1e4b   :  { %5936 = vmatprep.subr.bf16.mxu0 %v7181_v13 }
0x1e4d   :  { %5528 = vmatmul.mubr.msk.f32.vlgmr.msra.gmra.mrb[20].mxu0 %vm99_vm5, %v2549_v38  ;;  %v7612_v38 = vcombine.high %v7602_v46, %v7602_v46 }
0x1e4e   :  { %5938 = vmatpush1.bf16.msra.mxu0 %v7193_v1  ;;  %2793 = vmatprep.mubr.f32.mxu0 %v6574_v7 }
0x1e4f   :  { %5940 = vmatprep.subr.bf16.mxu0 %v7203_v28 }
0x1e52   :  { %5942 = vmatpush1.bf16.msra.mxu0 %v7211_v31 }
0x1e53   :  { %5944 = vmatprep.subr.bf16.mxu0 %v7221_v9 }
0x1e56   :  { %5946 = vmatpush1.bf16.msra.mxu0 %v7229_v15 }
0x1e57   :  { %5948 = vmatprep.subr.bf16.mxu0 %v7239_v24 }
0x1e5a   :  { %5950 = vmatpush1.bf16.msra.mxu0 %v7247_v36 }
0x1e5b   :  { %5968 = vmatprep.subr.bf16.mxu0 %v7181_v13 }
0x1e5d   :  { %5532 = vmatmul.mubr.msk.f32.vlgmr.msra.gmra.mrb[22].mxu0 %vm99_vm5, %v2725_v48 }
0x1e5e   :  { %5970 = vmatpush1.bf16.msra.mxu0 %v7193_v1  ;;  %2969 = vmatprep.mubr.f32.mxu0 %v6574_v7 }
0x1e5f   :  { %5972 = vmatprep.subr.bf16.mxu0 %v7203_v28 }
0x1e62   :  { %5974 = vmatpush1.bf16.msra.mxu0 %v7211_v31 }
0x1e63   :  { %5976 = vmatprep.subr.bf16.mxu0 %v7221_v9 }
0x1e66   :  { %5978 = vmatpush1.bf16.msra.mxu0 %v7229_v15 }
0x1e67   :  { %5980 = vmatprep.subr.bf16.mxu0 %v7239_v24 }
0x1e6a   :  { %5982 = vmatpush1.bf16.msra.mxu0 %v7247_v36 }
0x1e6b   :  { %6000 = vmatprep.subr.bf16.mxu0 %v7181_v13 }
0x1e6d   :  { %5536 = vmatmul.mubr.msk.f32.vlgmr.msra.gmra.mrb[24].mxu0 %vm99_vm5, %v2901_v57 }
0x1e6e   :  { %6002 = vmatpush1.bf16.msra.mxu0 %v7193_v1  ;;  %3145 = vmatprep.mubr.f32.mxu0 %v6574_v7 }
0x1e6f   :  { %6004 = vmatprep.subr.bf16.mxu0 %v7203_v28 }
0x1e72   :  { %6006 = vmatpush1.bf16.msra.mxu0 %v7211_v31 }
0x1e73   :  { %6008 = vmatprep.subr.bf16.mxu0 %v7221_v9 }
0x1e76   :  { %6010 = vmatpush1.bf16.msra.mxu0 %v7229_v15 }
0x1e77   :  { %6012 = vmatprep.subr.bf16.mxu0 %v7239_v24 }
0x1e7a   :  { %6014 = vmatpush1.bf16.msra.mxu0 %v7247_v36 }
0x1e7b   :  { %6032 = vmatprep.subr.bf16.mxu0 %v7181_v13 }
0x1e7d   :  { %5540 = vmatmul.mubr.msk.f32.vlgmr.msra.gmra.mrb[26].mxu0 %vm99_vm5, %v3077_v58 }
0x1e7e   :  { %6034 = vmatpush1.bf16.msra.mxu0 %v7193_v1  ;;  %3321 = vmatprep.mubr.f32.mxu0 %v6574_v7 }
0x1e7f   :  { %6036 = vmatprep.subr.bf16.mxu0 %v7203_v28 }
0x1e82   :  { %6038 = vmatpush1.bf16.msra.mxu0 %v7211_v31 }
0x1e83   :  { %6040 = vmatprep.subr.bf16.mxu0 %v7221_v9 }
0x1e86   :  { %6042 = vmatpush1.bf16.msra.mxu0 %v7229_v15 }
0x1e87   :  { %6044 = vmatprep.subr.bf16.mxu0 %v7239_v24 }
0x1e8a   :  { %6046 = vmatpush1.bf16.msra.mxu0 %v7247_v36 }
0x1e8b   :  { %6064 = vmatprep.subr.bf16.mxu0 %v7181_v13  ;;  %v3429_v13 = vld [vmem:[#allocation3 + $0x1c] sm:$0x3] }
0x1e8d   :  { %5544 = vmatmul.mubr.msk.f32.vlgmr.msra.gmra.mrb[28].mxu0 %vm99_vm5, %v3253_v53 }
0x1e8e   :  { %6066 = vmatpush1.bf16.msra.mxu0 %v7193_v1  ;;  %3497 = vmatprep.mubr.f32.mxu0 %v6574_v7 }
0x1e8f   :  { %6068 = vmatprep.subr.bf16.mxu0 %v7203_v28 }
0x1e92   :  { %6070 = vmatpush1.bf16.msra.mxu0 %v7211_v31 }
0x1e93   :  { %6072 = vmatprep.subr.bf16.mxu0 %v7221_v9 }
0x1e96   :  { %6074 = vmatpush1.bf16.msra.mxu0 %v7229_v15 }
0x1e97   :  { %6076 = vmatprep.subr.bf16.mxu0 %v7239_v24 }
0x1e9a   :  { %6078 = vmatpush1.bf16.msra.mxu0 %v7247_v36 }
0x1e9b   :  { %6096 = vmatprep.subr.bf16.mxu0 %v7379_v12 }
0x1e9d   :  { %5548 = vmatmul.mubr.msk.f32.vlgmr.msra.gmra.mrb[30].mxu0 %vm99_vm5, %v3429_v13 }
0x1e9e   :  { %6098 = vmatpush1.bf16.msra.mxu0 %v7398_v63  ;;  %3695 = vmatprep.mubr.f32.mxu0 %v6574_v7 }
0x1e9f   :  { %6100 = vmatprep.subr.bf16.mxu0 %v7402_v26 }
0x1ea2   :  { %6102 = vmatpush1.bf16.msra.mxu0 %v7420_v33 }
0x1ea3   :  { %6104 = vmatprep.subr.bf16.mxu0 %v7423_v8 }
0x1ea6   :  { %6106 = vmatpush1.bf16.msra.mxu0 %v7440_v21 }
0x1ea7   :  { %6108 = vmatprep.subr.bf16.mxu0 %v7443_v41 }
0x1eaa   :  { %6110 = vmatpush1.bf16.msra.mxu0 %v7454_v47 }
0x1eab   :  { %6128 = vmatprep.subr.bf16.mxu0 %v7379_v12 }
0x1ead   :  { %3696 = vmatmul.mubr.f32.vlgmr.msra.gmra.mrb[32].mxu0 %v6574_v7 }
0x1eae   :  { %6130 = vmatpush1.bf16.msra.mxu0 %v7398_v63  ;;  %3946 = vmatprep.mubr.f32.mxu0 %v6574_v7 }
0x1eaf   :  { %6132 = vmatprep.subr.bf16.mxu0 %v7402_v26 }
0x1eb2   :  { %6134 = vmatpush1.bf16.msra.mxu0 %v7420_v33 }
0x1eb3   :  { %6136 = vmatprep.subr.bf16.mxu0 %v7423_v8 }
0x1eb6   :  { %6138 = vmatpush1.bf16.msra.mxu0 %v7440_v21 }
0x1eb7   :  { %6140 = vmatprep.subr.bf16.mxu0 %v7443_v41 }
0x1eba   :  { %6142 = vmatpush1.bf16.msra.mxu0 %v7454_v47 }
0x1ebb   :  { %6160 = vmatprep.subr.bf16.mxu0 %v7379_v12 }
0x1eff   :  { %v3587_v28 = vpop.f32.mrb[30].mxu1 }
0x1f00   :  { %v2268_v1 = vpop.f32.mrb[16].mxu0  ;;  %v3588_v9 = vadd.f32 %v3587_v28, %v7350_v51  ;;  %v3589_v24 = vpop.f32.mrb[31].mxu1  ;;  %v7620_v28 = vld.sshfl [vmem:[#allocation2 + $0x1c] sm:$0x33 pattern:$0x76325410] }
0x1f01   :  { %v2269_v31 = vadd.f32 %v2268_v1, %v7350_v51  ;;  %v2270_v15 = vpop.f32.mrb[17].mxu0  ;;  %v3590_v3 = vadd.f32 %v3589_v24, %v7352_v52 }
0x1f02   :  { %v2271_v36 = vadd.f32 %v2270_v15, %v7352_v52 }
0x1f03   :  { %v3594_v60 = vcombine.low %v3588_v9, %v3590_v3  ;;  %v7626_v9 = vcombine.high %v7620_v28, %v7620_v28 }
0x1f04   :  { %v2275_v59 = vcombine.low %v2269_v31, %v2271_v36 }
0x1f05   :  { %5551 = vst.sshfl [vmem:[#allocation2 + $0x3c] sm:$0x33 pattern:$0x76325410] %v3594_v60 }
0x1f06   :  { %5521 = vst.sshfl [vmem:[#allocation2] sm:$0x33 pattern:$0x76325410] %v2275_v59 }
0x1f0c   :  { %v7546_v42 = vld.sshfl [vmem:[#allocation2 + $0x3c] sm:$0x33 pattern:$0x76325410] }
0x1f0d   :  { %v7544_v54 = vld.sshfl [vmem:[#allocation2] sm:$0x33 pattern:$0x76325410]  ;;  %v7554_v55 = vcombine.high %v7546_v42, %v7546_v42 }
0x1f0e   :  { %v7550_v43 = vcombine.high %v7544_v54, %v7544_v54 }
0x1f10   :  { %v2443_v45 = vpop.f32.mrb[18].mxu0 }
0x1f11   :  { %v2444_v56 = vadd.f32 %v2443_v45, %v7350_v51  ;;  %v2445_v61 = vpop.f32.mrb[19].mxu0 }
0x1f12   :  { %v2446_v4 = vadd.f32 %v2445_v61, %v7352_v52 }
0x1f14   :  { %v2450_v5 = vcombine.low %v2444_v56, %v2446_v4  ;;  %v7638_v56 = vld.sshfl [vmem:[#allocation2 + $0x14] sm:$0x33 pattern:$0x76325410] }
0x1f15   :  { %v7644_v4 = vcombine.high %v7638_v56, %v7638_v56 }
0x1f16   :  { %5525 = vst.sshfl [vmem:[#allocation2 + $0x8] sm:$0x33 pattern:$0x76325410] %v2450_v5 }
0x1f1d   :  { %v7568_v10 = vld.sshfl [vmem:[#allocation2 + $0x8] sm:$0x33 pattern:$0x76325410] }
0x1f1e   :  { %v7572_v49 = vcombine.high %v7568_v10, %v7568_v10 }
0x1f20   :  { %v2619_v11 = vpop.f32.mrb[20].mxu0 }
0x1f21   :  { %v2620_v19 = vadd.f32 %v2619_v11, %v7350_v51  ;;  %v2621_v22 = vpop.f32.mrb[21].mxu0 }
0x1f22   :  { %v2622_v25 = vadd.f32 %v2621_v22, %v7352_v52 }
0x1f24   :  { %v2626_v23 = vcombine.low %v2620_v19, %v2622_v25 }
0x1f26   :  { %5529 = vst.sshfl [vmem:[#allocation2 + $0x10] sm:$0x33 pattern:$0x76325410] %v2626_v23 }
0x1f2d   :  { %v7586_v62 = vld.sshfl [vmem:[#allocation2 + $0x10] sm:$0x33 pattern:$0x76325410] }
0x1f2e   :  { %v7590_v17 = vcombine.high %v7586_v62, %v7586_v62 }
0x1f30   :  { %v2795_v29 = vpop.f32.mrb[22].mxu0  ;;  %v4914_v30 = vsel %vm6715_vm1, %v7594_v18, %v7590_v17 }
0x1f31   :  { %v2796_v14 = vadd.f32 %v2795_v29, %v7350_v51  ;;  %v2797_v39 = vpop.f32.mrb[23].mxu0 }
0x1f32   :  { %v2798_v40 = vadd.f32 %v2797_v39, %v7352_v52 }
0x1f34   :  { %v2802_v20 = vcombine.low %v2796_v14, %v2798_v40  ;;  %v7656_v14 = vld.sshfl [vmem:[#allocation2 + $0xc] sm:$0x33 pattern:$0x76325410] }
0x1f35   :  { %v7662_v40 = vcombine.high %v7656_v14, %v7656_v14 }
0x1f36   :  { %5533 = vst.sshfl [vmem:[#allocation2 + $0x18] sm:$0x33 pattern:$0x76325410] %v2802_v20 }
0x1f3d   :  { %v7604_v34 = vld.sshfl [vmem:[#allocation2 + $0x18] sm:$0x33 pattern:$0x76325410] }
0x1f3e   :  { %v7608_v37 = vcombine.high %v7604_v34, %v7604_v34 }
0x1f40   :  { %v2971_v48 = vpop.f32.mrb[24].mxu0  ;;  %v4710_v57 = vsel %vm6715_vm1, %v7612_v38, %v7608_v37 }
0x1f41   :  { %v2972_v58 = vadd.f32 %v2971_v48, %v7350_v51  ;;  %v2973_v53 = vpop.f32.mrb[25].mxu0 }
0x1f42   :  { %v2974_v13 = vadd.f32 %v2973_v53, %v7352_v52 }
0x1f44   :  { %v2978_v1 = vcombine.low %v2972_v58, %v2974_v13 }
0x1f46   :  { %5537 = vst.sshfl [vmem:[#allocation2 + $0x20] sm:$0x33 pattern:$0x76325410] %v2978_v1 }
0x1f4d   :  { %v7622_v31 = vld.sshfl [vmem:[#allocation2 + $0x20] sm:$0x33 pattern:$0x76325410] }
0x1f4e   :  { %v7630_v15 = vcombine.high %v7622_v31, %v7622_v31 }
0x1f50   :  { %v3147_v24 = vpop.f32.mrb[26].mxu0  ;;  %v4608_v36 = vsel %vm6715_vm1, %v7630_v15, %v7626_v9 }
0x1f51   :  { %v3148_v3 = vadd.f32 %v3147_v24, %v7350_v51  ;;  %v3149_v59 = vpop.f32.mrb[27].mxu0 }
0x1f52   :  { %v3150_v60 = vadd.f32 %v3149_v59, %v7352_v52 }
0x1f54   :  { %v3154_v45 = vcombine.low %v3148_v3, %v3150_v60  ;;  %v5554_v3 = vld.sshfl [vmem:[#allocation2 + $0x4] sm:$0x33 pattern:$0x76325410] }
0x1f55   :  { %v7674_v60 = vcombine.high %v5554_v3, %v5554_v3 }
0x1f56   :  { %5541 = vst.sshfl [vmem:[#allocation2 + $0x28] sm:$0x33 pattern:$0x76325410] %v3154_v45 }
0x1f5d   :  { %v7640_v61 = vld.sshfl [vmem:[#allocation2 + $0x28] sm:$0x33 pattern:$0x76325410] }
0x1f5e   :  { %v7648_v5 = vcombine.high %v7640_v61, %v7640_v61 }
0x1f60   :  { %v3323_v11 = vpop.f32.mrb[28].mxu0  ;;  %v4812_v19 = vsel %vm6715_vm1, %v7648_v5, %v7644_v4 }
0x1f61   :  { %v3324_v22 = vadd.f32 %v3323_v11, %v7350_v51  ;;  %v3325_v25 = vpop.f32.mrb[29].mxu0  ;;  %v3629_v11 = vsel %vm6711_vm0, %v7544_v54, %v7546_v42 }
0x1f62   :  { %v3326_v23 = vadd.f32 %v3325_v25, %v7352_v52  ;;  %v3630_v25 = vsel %vm6715_vm1, %v7550_v43, %v7554_v55 }
0x1f64   :  { %v3330_v29 = vcombine.low %v3324_v22, %v3326_v23 }
0x1f66   :  { %5545 = vst.sshfl [vmem:[#allocation2 + $0x30] sm:$0x33 pattern:$0x76325410] %v3330_v29 }
0x1f6d   :  { %v7658_v39 = vld.sshfl [vmem:[#allocation2 + $0x30] sm:$0x33 pattern:$0x76325410] }
0x1f6e   :  { %v7666_v20 = vcombine.high %v7658_v39, %v7658_v39 }
0x1f70   :  { %v3499_v48 = vpop.f32.mrb[30].mxu0 }
0x1f71   :  { %v3500_v53 = vadd.f32 %v3499_v48, %v7350_v51  ;;  %v3501_v13 = vpop.f32.mrb[31].mxu0 }
0x1f72   :  { %v3502_v1 = vadd.f32 %v3501_v13, %v7352_v52 }
0x1f74   :  { %v3506_v24 = vcombine.low %v3500_v53, %v3502_v1 }
0x1f76   :  { %5549 = vst.sshfl [vmem:[#allocation2 + $0x38] sm:$0x33 pattern:$0x76325410] %v3506_v24 }
0x1f7d   :  { %v5555_v59 = vld.sshfl [vmem:[#allocation2 + $0x38] sm:$0x33 pattern:$0x76325410] }
0x1f7e   :  { %v7676_v45 = vcombine.high %v5555_v59, %v5555_v59 }
0x1f80   :  { %v3697_v22 = vpop.f32.mrb[32].mxu0 }
0x1f81   :  { %v3702_v52 = vadd.f32 %v3697_v22, %v3629_v11  ;;  %v3699_v23 = vpop.f32.mrb[33].mxu0 }
0x1f82   :  { %v3703_v29 = vadd.f32 %v3699_v23, %v3630_v25 }
0x1f83   :  { %v3704_v48 = vmul.f32 0.5, %v3702_v52 }
0x1f84   :  { %v3705_v53 = vmul.f32 0.5, %v3703_v29 }
0x1f85   :  { %6450 = vtanh.f32 %v3704_v48 }
0x1f86   :  { %v3707_v13 = vsel %vm53_vm2, %v3703_v29, %v3705_v53 }
0x1f87   :  { %6452 = vtanh.f32 %v3707_v13 }
0x1f8f   :  { %v6451_v1 = vpop.eup %6450 }
0x1f90   :  { %v3710_v2 = vmul.f32 0.5, %v6451_v1 }
0x1f91   :  { %v6453_v24 = vpop.eup %6452 }
0x1f92   :  { %v3711_v44 = vmul.f32 0.5, %v6453_v24  ;;  %v3712_v11 = vadd.f32 0.5, %v3710_v2 }
0x1f94   :  { %v3713_v51 = vadd.f32 0.5, %v3711_v44  ;;  %v3716_v25 = vmul.f32 0.0, %v3712_v11  ;;  %v3749_v44 = vsel %vm6711_vm0, %v5554_v3, %v5555_v59 }
0x1f96   :  { %v3715_v22 = vsel %vm53_vm2, %v6453_v24, %v3713_v51  ;;  %v3750_v51 = vsel %vm6715_vm1, %v7674_v60, %v7676_v45 }
0x1f97   :  { %v3717_v0 = vmul.f32 %v3715_v22, %v3712_v11 }
0x1f99   :  { %3719 = vrot.lane.b32.xlu0 %v3717_v0, %s6575_s28 }
0x200b   :  { %v3720_v52 = vpop.permute.xlu0 %3719 }
0x200c   :  { %v3722_v23 = vadd.f32 %v3720_v52, %v3716_v25 }
0x200e   :  { %6454 = vtanh.f32 %v3722_v23 }
0x2018   :  { %v6455_v48 = vpop.eup %6454 }
0x2019   :  { %v7695_v58 = vmul.f32 %v6455_v48, %v3715_v22 }
0x201b   :  { %3752 = vrot.lane.b32.xlu1 %v7695_v58, %s6575_s28 }
0x208d   :  { %v3753_v29 = vpop.permute.xlu1 %3752 }
0x208e   :  { %5556 = vmatmul.mubr.msk.f32.vlgmr.msra.gmra.mrb[32].mxu1 %vm99_vm5, %v3753_v29 }
0x208f   :  { %6146 = vmatpush1.bf16.msra.mxu1 %v7398_v63  ;;  %4072 = vmatprep.mubr.f32.mxu1 %v6574_v7 }
0x2090   :  { %6148 = vmatprep.subr.bf16.mxu1 %v7402_v26 }
0x2093   :  { %6150 = vmatpush1.bf16.msra.mxu1 %v7420_v33 }
0x2094   :  { %6152 = vmatprep.subr.bf16.mxu1 %v7423_v8 }
0x2097   :  { %6154 = vmatpush1.bf16.msra.mxu1 %v7440_v21 }
0x2098   :  { %6156 = vmatprep.subr.bf16.mxu1 %v7443_v41 }
0x209b   :  { %6158 = vmatpush1.bf16.msra.mxu1 %v7454_v47 }
0x209c   :  { %6176 = vmatprep.subr.bf16.mxu1 %v7379_v12 }
0x2161   :  { %v3822_v2 = vpop.f32.mrb[32].mxu1 }
0x2162   :  { %v3827_v0 = vadd.f32 %v3822_v2, %v3749_v44  ;;  %v3824_v53 = vpop.f32.mrb[33].mxu1 }
0x2163   :  { %v3828_v13 = vadd.f32 %v3824_v53, %v3750_v51 }
0x2164   :  { %v3829_v1 = vmul.f32 0.5, %v3827_v0 }
0x2165   :  { %v3830_v24 = vmul.f32 0.5, %v3828_v13 }
0x2166   :  { %6456 = vtanh.f32 %v3829_v1 }
0x2167   :  { %v3832_v11 = vsel %vm53_vm2, %v3828_v13, %v3830_v24 }
0x2168   :  { %6458 = vtanh.f32 %v3832_v11 }
0x2170   :  { %v6457_v22 = vpop.eup %6456 }
0x2171   :  { %v3835_v52 = vmul.f32 0.5, %v6457_v22  ;;  %v3876_v22 = vsel %vm6715_vm1, %v7572_v49, %v7576_v50 }
0x2172   :  { %v6459_v25 = vpop.eup %6458 }
0x2173   :  { %v3836_v3 = vmul.f32 0.5, %v6459_v25  ;;  %v3837_v48 = vadd.f32 0.5, %v3835_v52 }
0x2175   :  { %v3838_v59 = vadd.f32 0.5, %v3836_v3  ;;  %v3841_v2 = vmul.f32 %v3837_v48, %v3722_v23  ;;  %v3875_v23 = vsel %vm6711_vm0, %v7568_v10, %v7566_v6 }
0x2177   :  { %v3840_v29 = vsel %vm53_vm2, %v6459_v25, %v3838_v59 }
0x2178   :  { %v3842_v44 = vmul.f32 %v3840_v29, %v3837_v48 }
0x217a   :  { %3844 = vrot.lane.b32.xlu0 %v3842_v44, %s6575_s28 }
0x21ec   :  { %v3845_v0 = vpop.permute.xlu0 %3844 }
0x21ed   :  { %v3847_v51 = vadd.f32 %v3845_v0, %v3841_v2 }
0x21ef   :  { %6460 = vtanh.f32 %v3847_v51 }
0x21f9   :  { %v6461_v53 = vpop.eup %6460 }
0x21fa   :  { %v3849_v1 = vmul.f32 %v6461_v53, %v3840_v29 }
0x21fc   :  { %3878 = vrot.lane.b32.xlu1 %v3849_v1, %s6575_s28 }
0x226e   :  { %v3879_v13 = vpop.permute.xlu1 %3878 }
0x226f   :  { %5559 = vmatmul.mubr.msk.f32.vlgmr.msra.gmra.mrb[34].mxu0 %vm99_vm5, %v3879_v13 }
0x2270   :  { %6162 = vmatpush1.bf16.msra.mxu0 %v7398_v63  ;;  %4198 = vmatprep.mubr.f32.mxu0 %v6574_v7 }
0x2271   :  { %6164 = vmatprep.subr.bf16.mxu0 %v7402_v26 }
0x2274   :  { %6166 = vmatpush1.bf16.msra.mxu0 %v7420_v33 }
0x2275   :  { %6168 = vmatprep.subr.bf16.mxu0 %v7423_v8 }
0x2278   :  { %6170 = vmatpush1.bf16.msra.mxu0 %v7440_v21 }
0x2279   :  { %6172 = vmatprep.subr.bf16.mxu0 %v7443_v41 }
0x227c   :  { %6174 = vmatpush1.bf16.msra.mxu0 %v7454_v47 }
0x227d   :  { %6192 = vmatprep.subr.bf16.mxu0 %v7379_v12 }
0x2342   :  { %v3948_v24 = vpop.f32.mrb[34].mxu0 }
0x2343   :  { %v3953_v11 = vadd.f32 %v3948_v24, %v3875_v23  ;;  %v3950_v25 = vpop.f32.mrb[35].mxu0 }
0x2344   :  { %v3954_v52 = vadd.f32 %v3950_v25, %v3876_v22  ;;  %v3850_v25 = vmax.f32 %v7695_v58, %v3849_v1  ;;  %v4001_v58 = vsel %vm6711_vm0, %v7656_v14, %v7658_v39 }
0x2345   :  { %v3955_v3 = vmul.f32 0.5, %v3953_v11 }
0x2346   :  { %v3956_v59 = vmul.f32 0.5, %v3954_v52 }
0x2347   :  { %6462 = vtanh.f32 %v3955_v3 }
0x2348   :  { %v3958_v48 = vsel %vm53_vm2, %v3954_v52, %v3956_v59 }
0x2349   :  { %6464 = vtanh.f32 %v3958_v48  ;;  %v4002_v48 = vsel %vm6715_vm1, %v7662_v40, %v7666_v20 }
0x2351   :  { %v6463_v29 = vpop.eup %6462 }
0x2352   :  { %v3961_v2 = vmul.f32 0.5, %v6463_v29 }
0x2353   :  { %v6465_v44 = vpop.eup %6464 }
0x2354   :  { %v3962_v6 = vmul.f32 0.5, %v6465_v44  ;;  %v3963_v0 = vadd.f32 0.5, %v3961_v2 }
0x2356   :  { %v3964_v10 = vadd.f32 0.5, %v3962_v6  ;;  %v3967_v23 = vmul.f32 %v3963_v0, %v3847_v51 }
0x2358   :  { %v3966_v53 = vsel %vm53_vm2, %v6465_v44, %v3964_v10 }
0x2359   :  { %v3968_v13 = vmul.f32 %v3966_v53, %v3963_v0 }
0x235b   :  { %3970 = vrot.lane.b32.xlu0 %v3968_v13, %s6575_s28 }
0x23cd   :  { %v3971_v24 = vpop.permute.xlu0 %3970 }
0x23ce   :  { %v3973_v11 = vadd.f32 %v3971_v24, %v3967_v23 }
0x23d0   :  { %6466 = vtanh.f32 %v3973_v11 }
0x23da   :  { %v6467_v22 = vpop.eup %6466 }
0x23db   :  { %v3975_v52 = vmul.f32 %v6467_v22, %v3966_v53 }
0x23dd   :  { %4004 = vrot.lane.b32.xlu1 %v3975_v52, %s6575_s28  ;;  %v7746_v3 = vmax.f32 %v3850_v25, %v3975_v52 }
0x244f   :  { %v4005_v59 = vpop.permute.xlu1 %4004 }
0x2450   :  { %5562 = vmatmul.mubr.msk.f32.vlgmr.msra.gmra.mrb[34].mxu1 %vm99_vm5, %v4005_v59 }
0x2451   :  { %6178 = vmatpush1.bf16.msra.mxu1 %v7398_v63  ;;  %4324 = vmatprep.mubr.f32.mxu1 %v6574_v7 }
0x2452   :  { %6180 = vmatprep.subr.bf16.mxu1 %v7402_v26 }
0x2455   :  { %6182 = vmatpush1.bf16.msra.mxu1 %v7420_v33 }
0x2456   :  { %6184 = vmatprep.subr.bf16.mxu1 %v7423_v8 }
0x2459   :  { %6186 = vmatpush1.bf16.msra.mxu1 %v7440_v21 }
0x245a   :  { %6188 = vmatprep.subr.bf16.mxu1 %v7443_v41 }
0x245d   :  { %6190 = vmatpush1.bf16.msra.mxu1 %v7454_v47 }
0x245e   :  { %6208 = vmatprep.subr.bf16.mxu1 %v7379_v12 }
0x2523   :  { %v4074_v51 = vpop.f32.mrb[34].mxu1 }
0x2524   :  { %v4079_v1 = vadd.f32 %v4074_v51, %v4001_v58  ;;  %v4076_v29 = vpop.f32.mrb[35].mxu1 }
0x2525   :  { %v4080_v44 = vadd.f32 %v4076_v29, %v4002_v48 }
0x2526   :  { %v4081_v2 = vmul.f32 0.5, %v4079_v1 }
0x2527   :  { %v4082_v6 = vmul.f32 0.5, %v4080_v44 }
0x2528   :  { %6468 = vtanh.f32 %v4081_v2 }
0x2529   :  { %v4084_v10 = vsel %vm53_vm2, %v4080_v44, %v4082_v6  ;;  %v4128_v6 = vsel %vm6715_vm1, %v7590_v17, %v7594_v18 }
0x252a   :  { %6470 = vtanh.f32 %v4084_v10 }
0x2532   :  { %v6469_v0 = vpop.eup %6468 }
0x2533   :  { %v4087_v13 = vmul.f32 0.5, %v6469_v0 }
0x2534   :  { %v6471_v53 = vpop.eup %6470 }
0x2535   :  { %v4088_v23 = vmul.f32 0.5, %v6471_v53  ;;  %v4089_v22 = vadd.f32 0.5, %v4087_v13 }
0x2537   :  { %v4090_v24 = vadd.f32 0.5, %v4088_v23  ;;  %v4093_v59 = vmul.f32 %v4089_v22, %v3973_v11  ;;  %v4127_v11 = vsel %vm6711_vm0, %v7586_v62, %v7584_v16 }
0x2539   :  { %v4092_v25 = vsel %vm53_vm2, %v6471_v53, %v4090_v24 }
0x253a   :  { %v4094_v52 = vmul.f32 %v4092_v25, %v4089_v22 }
0x253c   :  { %4096 = vrot.lane.b32.xlu0 %v4094_v52, %s6575_s28 }
0x25ae   :  { %v4097_v58 = vpop.permute.xlu0 %4096 }
0x25af   :  { %v4099_v51 = vadd.f32 %v4097_v58, %v4093_v59 }
0x25b1   :  { %6472 = vtanh.f32 %v4099_v51 }
0x25bb   :  { %v6473_v1 = vpop.eup %6472 }
0x25bc   :  { %v4101_v48 = vmul.f32 %v6473_v1, %v4092_v25 }
0x25be   :  { %4130 = vrot.lane.b32.xlu1 %v4101_v48, %s6575_s28  ;;  %v4102_v29 = vmax.f32 %v7746_v3, %v4101_v48 }
0x2630   :  { %v4131_v44 = vpop.permute.xlu1 %4130 }
0x2631   :  { %5565 = vmatmul.mubr.msk.f32.vlgmr.msra.gmra.mrb[36].mxu0 %vm99_vm5, %v4131_v44 }
0x2632   :  { %6194 = vmatpush1.bf16.msra.mxu0 %v7398_v63  ;;  %4450 = vmatprep.mubr.f32.mxu0 %v6574_v7 }
0x2633   :  { %6196 = vmatprep.subr.bf16.mxu0 %v7402_v26 }
0x2636   :  { %6198 = vmatpush1.bf16.msra.mxu0 %v7420_v33 }
0x2637   :  { %6200 = vmatprep.subr.bf16.mxu0 %v7423_v8 }
0x263a   :  { %6202 = vmatpush1.bf16.msra.mxu0 %v7440_v21 }
0x263b   :  { %6204 = vmatprep.subr.bf16.mxu0 %v7443_v41 }
0x263e   :  { %6206 = vmatpush1.bf16.msra.mxu0 %v7454_v47 }
0x263f   :  { %6224 = vmatprep.subr.bf16.mxu0 %v7379_v12 }
0x2704   :  { %v4200_v3 = vpop.f32.mrb[36].mxu0 }
0x2705   :  { %v4205_v2 = vadd.f32 %v4200_v3, %v4127_v11  ;;  %v4202_v10 = vpop.f32.mrb[37].mxu0 }
0x2706   :  { %v4206_v0 = vadd.f32 %v4202_v10, %v4128_v6 }
0x2707   :  { %v4207_v53 = vmul.f32 0.5, %v4205_v2 }
0x2708   :  { %v4208_v13 = vmul.f32 0.5, %v4206_v0 }
0x2709   :  { %6474 = vtanh.f32 %v4207_v53 }
0x270a   :  { %v4210_v23 = vsel %vm53_vm2, %v4206_v0, %v4208_v13  ;;  %v4254_v13 = vsel %vm6715_vm1, %v7644_v4, %v7648_v5 }
0x270b   :  { %6476 = vtanh.f32 %v4210_v23 }
0x2713   :  { %v6475_v24 = vpop.eup %6474 }
0x2714   :  { %v4213_v25 = vmul.f32 0.5, %v6475_v24 }
0x2715   :  { %v6477_v22 = vpop.eup %6476 }
0x2716   :  { %v4214_v52 = vmul.f32 0.5, %v6477_v22  ;;  %v4215_v58 = vadd.f32 0.5, %v4213_v25 }
0x2718   :  { %v4216_v59 = vadd.f32 0.5, %v4214_v52  ;;  %v4219_v44 = vmul.f32 %v4215_v58, %v4099_v51  ;;  %v4253_v51 = vsel %vm6711_vm0, %v7638_v56, %v7640_v61 }
0x271a   :  { %v4218_v1 = vsel %vm53_vm2, %v6477_v22, %v4216_v59 }
0x271b   :  { %v4220_v48 = vmul.f32 %v4218_v1, %v4215_v58 }
0x271d   :  { %4222 = vrot.lane.b32.xlu0 %v4220_v48, %s6575_s28 }
0x278f   :  { %v4223_v11 = vpop.permute.xlu0 %4222 }
0x2790   :  { %v4225_v3 = vadd.f32 %v4223_v11, %v4219_v44 }
0x2792   :  { %6478 = vtanh.f32 %v4225_v3 }
0x279c   :  { %v6479_v2 = vpop.eup %6478 }
0x279d   :  { %v4227_v6 = vmul.f32 %v6479_v2, %v4218_v1 }
0x279f   :  { %4256 = vrot.lane.b32.xlu1 %v4227_v6, %s6575_s28  ;;  %v7797_v10 = vmax.f32 %v4102_v29, %v4227_v6 }
0x2811   :  { %v4257_v0 = vpop.permute.xlu1 %4256 }
0x2812   :  { %5568 = vmatmul.mubr.msk.f32.vlgmr.msra.gmra.mrb[36].mxu1 %vm99_vm5, %v4257_v0 }
0x2813   :  { %6210 = vmatpush1.bf16.msra.mxu1 %v7398_v63  ;;  %4576 = vmatprep.mubr.f32.mxu1 %v6574_v7 }
0x2814   :  { %6212 = vmatprep.subr.bf16.mxu1 %v7402_v26 }
0x2817   :  { %6214 = vmatpush1.bf16.msra.mxu1 %v7420_v33 }
0x2818   :  { %6216 = vmatprep.subr.bf16.mxu1 %v7423_v8 }
0x281b   :  { %6218 = vmatpush1.bf16.msra.mxu1 %v7440_v21 }
0x281c   :  { %6220 = vmatprep.subr.bf16.mxu1 %v7443_v41 }
0x281f   :  { %6222 = vmatpush1.bf16.msra.mxu1 %v7454_v47 }
0x2820   :  { %6240 = vmatprep.subr.bf16.mxu1 %v7379_v12 }
0x28e5   :  { %v4326_v29 = vpop.f32.mrb[36].mxu1 }
0x28e6   :  { %v4331_v53 = vadd.f32 %v4326_v29, %v4253_v51  ;;  %v4328_v23 = vpop.f32.mrb[37].mxu1 }
0x28e7   :  { %v4332_v24 = vadd.f32 %v4328_v23, %v4254_v13 }
0x28e8   :  { %v4333_v22 = vmul.f32 0.5, %v4331_v53 }
0x28e9   :  { %v4334_v25 = vmul.f32 0.5, %v4332_v24 }
0x28ea   :  { %6480 = vtanh.f32 %v4333_v22 }
0x28eb   :  { %v4336_v52 = vsel %vm53_vm2, %v4332_v24, %v4334_v25  ;;  %v4380_v25 = vsel %vm6715_vm1, %v7608_v37, %v7612_v38 }
0x28ec   :  { %6482 = vtanh.f32 %v4336_v52 }
0x28f4   :  { %v6481_v59 = vpop.eup %6480 }
0x28f5   :  { %v4339_v1 = vmul.f32 0.5, %v6481_v59 }
0x28f6   :  { %v6483_v58 = vpop.eup %6482 }
0x28f7   :  { %v4340_v48 = vmul.f32 0.5, %v6483_v58  ;;  %v4341_v11 = vadd.f32 0.5, %v4339_v1 }
0x28f9   :  { %v4342_v44 = vadd.f32 0.5, %v4340_v48  ;;  %v4345_v0 = vmul.f32 %v4341_v11, %v4225_v3  ;;  %v4379_v3 = vsel %vm6711_vm0, %v7604_v34, %v7602_v46 }
0x28fb   :  { %v4344_v2 = vsel %vm53_vm2, %v6483_v58, %v4342_v44 }
0x28fc   :  { %v4346_v6 = vmul.f32 %v4344_v2, %v4341_v11 }
0x28fe   :  { %4348 = vrot.lane.b32.xlu0 %v4346_v6, %s6575_s28 }
0x2970   :  { %v4349_v51 = vpop.permute.xlu0 %4348 }
0x2971   :  { %v4351_v29 = vadd.f32 %v4349_v51, %v4345_v0 }
0x2973   :  { %6484 = vtanh.f32 %v4351_v29 }
0x297d   :  { %v6485_v53 = vpop.eup %6484 }
0x297e   :  { %v4353_v13 = vmul.f32 %v6485_v53, %v4344_v2 }
0x2980   :  { %4382 = vrot.lane.b32.xlu1 %v4353_v13, %s6575_s28  ;;  %v4354_v23 = vmax.f32 %v7797_v10, %v4353_v13 }
0x29f2   :  { %v4383_v24 = vpop.permute.xlu1 %4382 }
0x29f3   :  { %5571 = vmatmul.mubr.msk.f32.vlgmr.msra.gmra.mrb[38].mxu0 %vm99_vm5, %v4383_v24 }
0x29f4   :  { %6226 = vmatpush1.bf16.msra.mxu0 %v7398_v63  ;;  %4678 = vmatprep.mubr.f32.mxu0 %v6574_v7 }
0x29f5   :  { %6228 = vmatprep.subr.bf16.mxu0 %v7402_v26 }
0x29f8   :  { %6230 = vmatpush1.bf16.msra.mxu0 %v7420_v33 }
0x29f9   :  { %6232 = vmatprep.subr.bf16.mxu0 %v7423_v8 }
0x29fc   :  { %6234 = vmatpush1.bf16.msra.mxu0 %v7440_v21 }
0x29fd   :  { %6236 = vmatprep.subr.bf16.mxu0 %v7443_v41 }
0x2a00   :  { %6238 = vmatpush1.bf16.msra.mxu0 %v7454_v47 }
0x2a01   :  { %6256 = vmatprep.subr.bf16.mxu0 %v7379_v12 }
0x2ac6   :  { %v4452_v10 = vpop.f32.mrb[38].mxu0 }
0x2ac7   :  { %v4457_v22 = vadd.f32 %v4452_v10, %v4379_v3  ;;  %v4454_v52 = vpop.f32.mrb[39].mxu0 }
0x2ac8   :  { %v4458_v59 = vadd.f32 %v4454_v52, %v4380_v25 }
0x2ac9   :  { %v4459_v58 = vmul.f32 0.5, %v4457_v22 }
0x2aca   :  { %v4460_v1 = vmul.f32 0.5, %v4458_v59 }
0x2acb   :  { %6486 = vtanh.f32 %v4459_v58 }
0x2acc   :  { %v4462_v48 = vsel %vm53_vm2, %v4458_v59, %v4460_v1  ;;  %v4506_v1 = vsel %vm6715_vm1, %v7626_v9, %v7630_v15 }
0x2acd   :  { %6488 = vtanh.f32 %v4462_v48 }
0x2ad5   :  { %v6487_v44 = vpop.eup %6486 }
0x2ad6   :  { %v4465_v2 = vmul.f32 0.5, %v6487_v44 }
0x2ad7   :  { %v6489_v11 = vpop.eup %6488 }
0x2ad8   :  { %v4466_v6 = vmul.f32 0.5, %v6489_v11  ;;  %v4467_v51 = vadd.f32 0.5, %v4465_v2 }
0x2ada   :  { %v4468_v0 = vadd.f32 0.5, %v4466_v6  ;;  %v4471_v24 = vmul.f32 %v4467_v51, %v4351_v29  ;;  %v4505_v29 = vsel %vm6711_vm0, %v7620_v28, %v7622_v31 }
0x2adc   :  { %v4470_v53 = vsel %vm53_vm2, %v6489_v11, %v4468_v0 }
0x2add   :  { %v4472_v13 = vmul.f32 %v4470_v53, %v4467_v51 }
0x2adf   :  { %4474 = vrot.lane.b32.xlu0 %v4472_v13, %s6575_s28 }
0x2b51   :  { %v4475_v3 = vpop.permute.xlu0 %4474 }
0x2b52   :  { %v4477_v10 = vadd.f32 %v4475_v3, %v4471_v24 }
0x2b54   :  { %6490 = vtanh.f32 %v4477_v10 }
0x2b5e   :  { %v6491_v22 = vpop.eup %6490 }
0x2b5f   :  { %v4479_v25 = vmul.f32 %v6491_v22, %v4470_v53 }
0x2b61   :  { %4508 = vrot.lane.b32.xlu1 %v4479_v25, %s6575_s28  ;;  %v7848_v52 = vmax.f32 %v4354_v23, %v4479_v25 }
0x2bd3   :  { %v4509_v59 = vpop.permute.xlu1 %4508 }
0x2bd4   :  { %5574 = vmatmul.mubr.msk.f32.vlgmr.msra.gmra.mrb[38].mxu1 %vm99_vm5, %v4509_v59 }
0x2bd5   :  { %6242 = vmatpush1.bf16.msra.mxu1 %v7398_v63  ;;  %4780 = vmatprep.mubr.f32.mxu1 %v6574_v7 }
0x2bd6   :  { %6244 = vmatprep.subr.bf16.mxu1 %v7402_v26 }
0x2bd9   :  { %6246 = vmatpush1.bf16.msra.mxu1 %v7420_v33 }
0x2bda   :  { %6248 = vmatprep.subr.bf16.mxu1 %v7423_v8 }
0x2bdd   :  { %6250 = vmatpush1.bf16.msra.mxu1 %v7440_v21 }
0x2bde   :  { %6252 = vmatprep.subr.bf16.mxu1 %v7443_v41 }
0x2be1   :  { %6254 = vmatpush1.bf16.msra.mxu1 %v7454_v47 }
0x2be2   :  { %6272 = vmatprep.subr.bf16.mxu1 %v7379_v12 }
0x2ca7   :  { %v4578_v23 = vpop.f32.mrb[38].mxu1 }
0x2ca8   :  { %v4583_v58 = vadd.f32 %v4578_v23, %v4505_v29  ;;  %v4580_v48 = vpop.f32.mrb[39].mxu1 }
0x2ca9   :  { %v4584_v44 = vadd.f32 %v4580_v48, %v4506_v1 }
0x2caa   :  { %v4585_v11 = vmul.f32 0.5, %v4583_v58 }
0x2cab   :  { %v4586_v2 = vmul.f32 0.5, %v4584_v44 }
0x2cac   :  { %6492 = vtanh.f32 %v4585_v11 }
0x2cad   :  { %v4588_v6 = vsel %vm53_vm2, %v4584_v44, %v4586_v2 }
0x2cae   :  { %6494 = vtanh.f32 %v4588_v6 }
0x2cb6   :  { %v6493_v0 = vpop.eup %6492 }
0x2cb7   :  { %v4591_v53 = vmul.f32 0.5, %v6493_v0 }
0x2cb8   :  { %v6495_v51 = vpop.eup %6494 }
0x2cb9   :  { %v4592_v13 = vmul.f32 0.5, %v6495_v51  ;;  %v4593_v3 = vadd.f32 0.5, %v4591_v53 }
0x2cbb   :  { %v4594_v24 = vadd.f32 0.5, %v4592_v13  ;;  %v4597_v59 = vmul.f32 %v4593_v3, %v4477_v10  ;;  %v4607_v10 = vsel %vm6711_vm0, %v7622_v31, %v7620_v28 }
0x2cbd   :  { %v4596_v22 = vsel %vm53_vm2, %v6495_v51, %v4594_v24 }
0x2cbe   :  { %v4598_v25 = vmul.f32 %v4596_v22, %v4593_v3 }
0x2cc0   :  { %4600 = vrot.lane.b32.xlu0 %v4598_v25, %s6575_s28 }
0x2d32   :  { %v4601_v29 = vpop.permute.xlu0 %4600 }
0x2d33   :  { %v4603_v23 = vadd.f32 %v4601_v29, %v4597_v59 }
0x2d35   :  { %6496 = vtanh.f32 %v4603_v23 }
0x2d3f   :  { %v6497_v58 = vpop.eup %6496 }
0x2d40   :  { %v4605_v1 = vmul.f32 %v6497_v58, %v4596_v22 }
0x2d42   :  { %4610 = vrot.lane.b32.xlu1 %v4605_v1, %s6575_s28  ;;  %v4606_v48 = vmax.f32 %v7848_v52, %v4605_v1 }
0x2db4   :  { %v4611_v44 = vpop.permute.xlu1 %4610 }
0x2db5   :  { %5575 = vmatmul.mubr.msk.f32.vlgmr.msra.gmra.mrb[40].mxu0 %vm99_vm5, %v4611_v44 }
0x2db6   :  { %6258 = vmatpush1.bf16.msra.mxu0 %v7398_v63  ;;  %4882 = vmatprep.mubr.f32.mxu0 %v6574_v7 }
0x2db7   :  { %6260 = vmatprep.subr.bf16.mxu0 %v7402_v26 }
0x2dba   :  { %6262 = vmatpush1.bf16.msra.mxu0 %v7420_v33 }
0x2dbb   :  { %6264 = vmatprep.subr.bf16.mxu0 %v7423_v8 }
0x2dbe   :  { %6266 = vmatpush1.bf16.msra.mxu0 %v7440_v21 }
0x2dbf   :  { %6268 = vmatprep.subr.bf16.mxu0 %v7443_v41 }
0x2dc2   :  { %6270 = vmatpush1.bf16.msra.mxu0 %v7454_v47 }
0x2dc3   :  { %6288 = vmatprep.subr.bf16.mxu0 %v7379_v12 }
0x2e88   :  { %v4680_v52 = vpop.f32.mrb[40].mxu0 }
0x2e89   :  { %v4685_v11 = vadd.f32 %v4680_v52, %v4607_v10  ;;  %v4682_v2 = vpop.f32.mrb[41].mxu0 }
0x2e8a   :  { %v4686_v6 = vadd.f32 %v4682_v2, %v4608_v36 }
0x2e8b   :  { %v4687_v0 = vmul.f32 0.5, %v4685_v11 }
0x2e8c   :  { %v4688_v51 = vmul.f32 0.5, %v4686_v6 }
0x2e8d   :  { %6498 = vtanh.f32 %v4687_v0 }
0x2e8e   :  { %v4690_v53 = vsel %vm53_vm2, %v4686_v6, %v4688_v51 }
0x2e8f   :  { %6500 = vtanh.f32 %v4690_v53 }
0x2e97   :  { %v6499_v13 = vpop.eup %6498 }
0x2e98   :  { %v4693_v3 = vmul.f32 0.5, %v6499_v13 }
0x2e99   :  { %v6501_v24 = vpop.eup %6500 }
0x2e9a   :  { %v4694_v28 = vmul.f32 0.5, %v6501_v24  ;;  %v4695_v22 = vadd.f32 0.5, %v4693_v3 }
0x2e9c   :  { %v4696_v31 = vadd.f32 0.5, %v4694_v28  ;;  %v4699_v9 = vmul.f32 %v4695_v22, %v4603_v23  ;;  %v4709_v23 = vsel %vm6711_vm0, %v7602_v46, %v7604_v34 }
0x2e9e   :  { %v4698_v25 = vsel %vm53_vm2, %v6501_v24, %v4696_v31 }
0x2e9f   :  { %v4700_v59 = vmul.f32 %v4698_v25, %v4695_v22 }
0x2ea1   :  { %4702 = vrot.lane.b32.xlu0 %v4700_v59, %s6575_s28 }
0x2f13   :  { %v4703_v15 = vpop.permute.xlu0 %4702 }
0x2f14   :  { %v4705_v36 = vadd.f32 %v4703_v15, %v4699_v9  ;;  %v4811_v9 = vsel %vm6711_vm0, %v7640_v61, %v7638_v56 }
0x2f16   :  { %6502 = vtanh.f32 %v4705_v36 }
0x2f20   :  { %v6503_v29 = vpop.eup %6502 }
0x2f21   :  { %v4707_v58 = vmul.f32 %v6503_v29, %v4698_v25 }
0x2f23   :  { %4712 = vrot.lane.b32.xlu1 %v4707_v58, %s6575_s28  ;;  %v7900_v1 = vmax.f32 %v4606_v48, %v4707_v58 }
0x2f95   :  { %v4713_v44 = vpop.permute.xlu1 %4712 }
0x2f96   :  { %5576 = vmatmul.mubr.msk.f32.vlgmr.msra.gmra.mrb[40].mxu1 %vm99_vm5, %v4713_v44 }
0x2f97   :  { %6274 = vmatpush1.bf16.msra.mxu1 %v7398_v63  ;;  %4984 = vmatprep.mubr.f32.mxu1 %v6574_v7 }
0x2f98   :  { %6276 = vmatprep.subr.bf16.mxu1 %v7402_v26 }
0x2f9b   :  { %6278 = vmatpush1.bf16.msra.mxu1 %v7420_v33 }
0x2f9c   :  { %6280 = vmatprep.subr.bf16.mxu1 %v7423_v8 }
0x2f9f   :  { %6282 = vmatpush1.bf16.msra.mxu1 %v7440_v21 }
0x2fa0   :  { %6284 = vmatprep.subr.bf16.mxu1 %v7443_v41 }
0x2fa3   :  { %6286 = vmatpush1.bf16.msra.mxu1 %v7454_v47 }
0x2fa4   :  { %6304 = vmatprep.subr.bf16.mxu1 %v7379_v12 }
0x3069   :  { %v4782_v48 = vpop.f32.mrb[40].mxu1 }
0x306a   :  { %v4787_v10 = vadd.f32 %v4782_v48, %v4709_v23  ;;  %v4784_v52 = vpop.f32.mrb[41].mxu1 }
0x306b   :  { %v4788_v11 = vadd.f32 %v4784_v52, %v4710_v57 }
0x306c   :  { %v4789_v2 = vmul.f32 0.5, %v4787_v10 }
0x306d   :  { %v4790_v6 = vmul.f32 0.5, %v4788_v11 }
0x306e   :  { %6504 = vtanh.f32 %v4789_v2 }
0x306f   :  { %v4792_v0 = vsel %vm53_vm2, %v4788_v11, %v4790_v6 }
0x3070   :  { %6506 = vtanh.f32 %v4792_v0 }
0x3078   :  { %v6505_v51 = vpop.eup %6504 }
0x3079   :  { %v4795_v13 = vmul.f32 0.5, %v6505_v51 }
0x307a   :  { %v6507_v53 = vpop.eup %6506 }
0x307b   :  { %v4796_v46 = vmul.f32 0.5, %v6507_v53  ;;  %v4797_v24 = vadd.f32 0.5, %v4795_v13 }
0x307d   :  { %v4798_v34 = vadd.f32 0.5, %v4796_v46  ;;  %v4801_v37 = vmul.f32 %v4797_v24, %v4705_v36  ;;  %v4913_v46 = vsel %vm6711_vm0, %v7584_v16, %v7586_v62 }
0x307f   :  { %v4800_v3 = vsel %vm53_vm2, %v6507_v53, %v4798_v34 }
0x3080   :  { %v4802_v28 = vmul.f32 %v4800_v3, %v4797_v24 }
0x3082   :  { %4804 = vrot.lane.b32.xlu0 %v4802_v28, %s6575_s28 }
0x30f4   :  { %v4805_v38 = vpop.permute.xlu0 %4804 }
0x30f5   :  { %v4807_v57 = vadd.f32 %v4805_v38, %v4801_v37 }
0x30f7   :  { %6508 = vtanh.f32 %v4807_v57 }
0x3101   :  { %v6509_v31 = vpop.eup %6508 }
0x3102   :  { %v4809_v22 = vmul.f32 %v6509_v31, %v4800_v3 }
0x3104   :  { %4814 = vrot.lane.b32.xlu1 %v4809_v22, %s6575_s28  ;;  %v4810_v25 = vmax.f32 %v7900_v1, %v4809_v22 }
0x3176   :  { %v4815_v59 = vpop.permute.xlu1 %4814 }
0x3177   :  { %5577 = vmatmul.mubr.msk.f32.vlgmr.msra.gmra.mrb[42].mxu0 %vm99_vm5, %v4815_v59 }
0x3178   :  { %6290 = vmatpush1.bf16.msra.mxu0 %v7398_v63  ;;  %5086 = vmatprep.mubr.f32.mxu0 %v6574_v7 }
0x3179   :  { %6292 = vmatprep.subr.bf16.mxu0 %v7402_v26 }
0x317c   :  { %6294 = vmatpush1.bf16.msra.mxu0 %v7420_v33 }
0x317d   :  { %6296 = vmatprep.subr.bf16.mxu0 %v7423_v8 }
0x3180   :  { %6298 = vmatpush1.bf16.msra.mxu0 %v7440_v21 }
0x3181   :  { %6300 = vmatprep.subr.bf16.mxu0 %v7443_v41 }
0x3184   :  { %6302 = vmatpush1.bf16.msra.mxu0 %v7454_v47 }
0x3185   :  { %6320 = vmatprep.subr.bf16.mxu0 %v7379_v12 }
0x324a   :  { %v4884_v15 = vpop.f32.mrb[42].mxu0 }
0x324b   :  { %v4889_v36 = vadd.f32 %v4884_v15, %v4811_v9  ;;  %v4886_v29 = vpop.f32.mrb[43].mxu0 }
0x324c   :  { %v4890_v58 = vadd.f32 %v4886_v29, %v4812_v19 }
0x324d   :  { %v4891_v1 = vmul.f32 0.5, %v4889_v36 }
0x324e   :  { %v4892_v44 = vmul.f32 0.5, %v4890_v58 }
0x324f   :  { %6510 = vtanh.f32 %v4891_v1  ;;  %v5015_v1 = vsel %vm6711_vm0, %v7658_v39, %v7656_v14 }
0x3250   :  { %v4894_v23 = vsel %vm53_vm2, %v4890_v58, %v4892_v44 }
0x3251   :  { %6512 = vtanh.f32 %v4894_v23 }
0x3259   :  { %v6511_v48 = vpop.eup %6510 }
0x325a   :  { %v4897_v52 = vmul.f32 0.5, %v6511_v48 }
0x325b   :  { %v6513_v10 = vpop.eup %6512 }
0x325c   :  { %v4898_v56 = vmul.f32 0.5, %v6513_v10  ;;  %v4899_v11 = vadd.f32 0.5, %v4897_v52 }
0x325e   :  { %v4900_v61 = vadd.f32 0.5, %v4898_v56  ;;  %v4903_v4 = vmul.f32 %v4899_v11, %v4807_v57 }
0x3260   :  { %v4902_v2 = vsel %vm53_vm2, %v6513_v10, %v4900_v61  ;;  %v8083_v10 = vsel %vm6715_vm1, %v7666_v20, %v7662_v40 }
0x3261   :  { %v4904_v6 = vmul.f32 %v4902_v2, %v4899_v11 }
0x3263   :  { %4906 = vrot.lane.b32.xlu0 %v4904_v6, %s6575_s28 }
0x32d5   :  { %v4907_v5 = vpop.permute.xlu0 %4906 }
0x32d6   :  { %v4909_v19 = vadd.f32 %v4907_v5, %v4903_v4 }
0x32d8   :  { %6514 = vtanh.f32 %v4909_v19 }
0x32e2   :  { %v6515_v0 = vpop.eup %6514 }
0x32e3   :  { %v4911_v51 = vmul.f32 %v6515_v0, %v4902_v2 }
0x32e5   :  { %4916 = vrot.lane.b32.xlu1 %v4911_v51, %s6575_s28  ;;  %v7953_v53 = vmax.f32 %v4810_v25, %v4911_v51 }
0x3357   :  { %v4917_v13 = vpop.permute.xlu1 %4916 }
0x3358   :  { %5578 = vmatmul.mubr.msk.f32.vlgmr.msra.gmra.mrb[42].mxu1 %vm99_vm5, %v4917_v13 }
0x3359   :  { %6306 = vmatpush1.bf16.msra.mxu1 %v7398_v63  ;;  %5188 = vmatprep.mubr.f32.mxu1 %v6574_v7 }
0x335a   :  { %6308 = vmatprep.subr.bf16.mxu1 %v7402_v26 }
0x335d   :  { %6310 = vmatpush1.bf16.msra.mxu1 %v7420_v33 }
0x335e   :  { %6312 = vmatprep.subr.bf16.mxu1 %v7423_v8 }
0x3361   :  { %6314 = vmatpush1.bf16.msra.mxu1 %v7440_v21 }
0x3362   :  { %6316 = vmatprep.subr.bf16.mxu1 %v7443_v41 }
0x3365   :  { %6318 = vmatpush1.bf16.msra.mxu1 %v7454_v47 }
0x3366   :  { %6336 = vmatprep.subr.bf16.mxu1 %v7379_v12 }
0x342b   :  { %v4986_v34 = vpop.f32.mrb[42].mxu1 }
0x342c   :  { %v4991_v24 = vadd.f32 %v4986_v34, %v4913_v46  ;;  %v4988_v3 = vpop.f32.mrb[43].mxu1 }
0x342d   :  { %v4992_v28 = vadd.f32 %v4988_v3, %v4914_v30  ;;  %v6547_v3 = vld.sshfl [vmem:[#allocation2 + $0x8] sm:$0x33 pattern:$0x76325410] }
0x342e   :  { %v4993_v37 = vmul.f32 0.5, %v4991_v24  ;;  %v6546_v24 = vld.sshfl [vmem:[#allocation2 + $0x34] sm:$0x33 pattern:$0x76325410] }
0x342f   :  { %v4994_v38 = vmul.f32 0.5, %v4992_v28 }
0x3430   :  { %6516 = vtanh.f32 %v4993_v37 }
0x3431   :  { %v4996_v12 = vsel %vm53_vm2, %v4992_v28, %v4994_v38  ;;  %v5117_v28 = vsel %vm6711_vm0, %v6546_v24, %v6547_v3 }
0x3432   :  { %6518 = vtanh.f32 %v4996_v12 }
0x343a   :  { %v6517_v57 = vpop.eup %6516 }
0x343b   :  { %v4999_v22 = vmul.f32 0.5, %v6517_v57 }
0x343c   :  { %v6519_v31 = vpop.eup %6518 }
0x343d   :  { %v5000_v16 = vmul.f32 0.5, %v6519_v31  ;;  %v5001_v25 = vadd.f32 0.5, %v4999_v22 }
0x343f   :  { %v5002_v62 = vadd.f32 0.5, %v5000_v16  ;;  %v5005_v17 = vmul.f32 %v5001_v25, %v4909_v19 }
0x3441   :  { %v5004_v59 = vsel %vm53_vm2, %v6519_v31, %v5002_v62 }
0x3442   :  { %v5006_v9 = vmul.f32 %v5004_v59, %v5001_v25 }
0x3444   :  { %5008 = vrot.lane.b32.xlu0 %v5006_v9, %s6575_s28 }
0x34b6   :  { %v5009_v18 = vpop.permute.xlu0 %5008 }
0x34b7   :  { %v5011_v30 = vadd.f32 %v5009_v18, %v5005_v17 }
0x34b9   :  { %6520 = vtanh.f32 %v5011_v30 }
0x34c3   :  { %v6521_v15 = vpop.eup %6520 }
0x34c4   :  { %v5013_v36 = vmul.f32 %v6521_v15, %v5004_v59  ;;  %v6549_v15 = vld.sshfl [vmem:[#allocation2 + $0x38] sm:$0x33 pattern:$0x76325410] }
0x34c6   :  { %5018 = vrot.lane.b32.xlu1 %v5013_v36, %s6575_s28  ;;  %v5014_v29 = vmax.f32 %v7953_v53, %v5013_v36 }
0x3538   :  { %v5019_v58 = vpop.permute.xlu1 %5018 }
0x3539   :  { %5579 = vmatmul.mubr.msk.f32.vlgmr.msra.gmra.mrb[44].mxu0 %vm99_vm5, %v5019_v58 }
0x353a   :  { %6322 = vmatpush1.bf16.msra.mxu0 %v7398_v63  ;;  %5290 = vmatprep.mubr.f32.mxu0 %v6574_v7 }
0x353b   :  { %6324 = vmatprep.subr.bf16.mxu0 %v7402_v26 }
0x353e   :  { %6326 = vmatpush1.bf16.msra.mxu0 %v7420_v33 }
0x353f   :  { %6328 = vmatprep.subr.bf16.mxu0 %v7423_v8 }
0x3542   :  { %6330 = vmatpush1.bf16.msra.mxu0 %v7440_v21 }
0x3543   :  { %6332 = vmatprep.subr.bf16.mxu0 %v7443_v41 }
0x3546   :  { %6334 = vmatpush1.bf16.msra.mxu0 %v7454_v47 }
0x360c   :  { %v5088_v44 = vpop.f32.mrb[44].mxu0 }
0x360d   :  { %v5093_v23 = vadd.f32 %v5088_v44, %v5015_v1  ;;  %v5090_v48 = vpop.f32.mrb[45].mxu0  ;;  %v8085_v44 = vsel %vm6715_vm1, %v7676_v45, %v7674_v60 }
0x360e   :  { %v5094_v52 = vadd.f32 %v5090_v48, %v8083_v10 }
0x360f   :  { %v5095_v56 = vmul.f32 0.5, %v5093_v23 }
0x3610   :  { %v5096_v61 = vmul.f32 0.5, %v5094_v52 }
0x3611   :  { %6522 = vtanh.f32 %v5095_v56 }
0x3612   :  { %v5098_v11 = vsel %vm53_vm2, %v5094_v52, %v5096_v61 }
0x3613   :  { %6524 = vtanh.f32 %v5098_v11 }
0x361b   :  { %v6523_v2 = vpop.eup %6522 }
0x361c   :  { %v5101_v4 = vmul.f32 0.5, %v6523_v2 }
0x361d   :  { %v6525_v6 = vpop.eup %6524 }
0x361e   :  { %v5102_v14 = vmul.f32 0.5, %v6525_v6  ;;  %v5103_v5 = vadd.f32 0.5, %v5101_v4 }
0x3620   :  { %v5104_v39 = vadd.f32 0.5, %v5102_v14  ;;  %v5107_v40 = vmul.f32 %v5103_v5, %v5011_v30  ;;  %v6548_v30 = vld.sshfl [vmem:[#allocation2 + $0x4] sm:$0x33 pattern:$0x76325410] }
0x3621   :  { %v5219_v36 = vsel %vm6711_vm0, %v6549_v15, %v6548_v30 }
0x3622   :  { %v5106_v19 = vsel %vm53_vm2, %v6525_v6, %v5104_v39 }
0x3623   :  { %v5108_v0 = vmul.f32 %v5106_v19, %v5103_v5 }
0x3625   :  { %5110 = vrot.lane.b32.xlu0 %v5108_v0, %s6575_s28 }
0x3697   :  { %v5111_v20 = vpop.permute.xlu0 %5110 }
0x3698   :  { %v5113_v51 = vadd.f32 %v5111_v20, %v5107_v40 }
0x369a   :  { %6526 = vtanh.f32 %v5113_v51 }
0x36a4   :  { %v6527_v53 = vpop.eup %6526 }
0x36a5   :  { %v5115_v13 = vmul.f32 %v6527_v53, %v5106_v19  ;;  %v8086_v53 = vsel %vm6711_vm0, %v7546_v42, %v7544_v54 }
0x36a7   :  { %5120 = vrot.lane.b32.xlu1 %v5115_v13, %s6575_s28  ;;  %v8005_v46 = vmax.f32 %v5014_v29, %v5115_v13 }
0x3719   :  { %v5121_v34 = vpop.permute.xlu1 %5120 }
0x371a   :  { %5580 = vmatmul.mubr.msk.f32.vlgmr.msra.gmra.mrb[44].mxu1 %vm99_vm5, %v5121_v34  ;;  %v8087_v34 = vsel %vm6715_vm1, %v7554_v55, %v7550_v43 }
0x371b   :  { %6338 = vmatpush1.bf16.msra.mxu1 %v7398_v63  ;;  %5392 = vmatprep.mubr.f32.mxu1 %v6574_v7 }
0x371c   :  { %6340 = vmatprep.subr.bf16.mxu1 %v7402_v26  ;;  %v8084_v26 = vsel %vm6715_vm1, %v7576_v50, %v7572_v49 }
0x371f   :  { %6342 = vmatpush1.bf16.msra.mxu1 %v7420_v33 }
0x3720   :  { %6344 = vmatprep.subr.bf16.mxu1 %v7423_v8 }
0x3723   :  { %6346 = vmatpush1.bf16.msra.mxu1 %v7440_v21 }
0x3724   :  { %6348 = vmatprep.subr.bf16.mxu1 %v7443_v41 }
0x3727   :  { %6350 = vmatpush1.bf16.msra.mxu1 %v7454_v47 }
0x37ed   :  { %v5190_v63 = vpop.f32.mrb[44].mxu1 }
0x37ee   :  { %v5195_v37 = vadd.f32 %v5190_v63, %v5117_v28  ;;  %v5192_v7 = vpop.f32.mrb[45].mxu1 }
0x37ef   :  { %v5196_v33 = vadd.f32 %v5192_v7, %v8084_v26 }
0x37f0   :  { %v5197_v8 = vmul.f32 0.5, %v5195_v37 }
0x37f1   :  { %v5198_v21 = vmul.f32 0.5, %v5196_v33 }
0x37f2   :  { %6528 = vtanh.f32 %v5197_v8 }
0x37f3   :  { %v5200_v41 = vsel %vm53_vm2, %v5196_v33, %v5198_v21 }
0x37f4   :  { %6530 = vtanh.f32 %v5200_v41 }
0x37fc   :  { %v6529_v47 = vpop.eup %6528 }
0x37fd   :  { %v5203_v12 = vmul.f32 0.5, %v6529_v47 }
0x37fe   :  { %v6531_v38 = vpop.eup %6530 }
0x37ff   :  { %v5204_v57 = vmul.f32 0.5, %v6531_v38  ;;  %v5205_v22 = vadd.f32 0.5, %v5203_v12 }
0x3801   :  { %v5206_v31 = vadd.f32 0.5, %v5204_v57  ;;  %v5209_v49 = vmul.f32 %v5205_v22, %v5113_v51 }
0x3803   :  { %v5208_v16 = vsel %vm53_vm2, %v6531_v38, %v5206_v31 }
0x3804   :  { %v5210_v62 = vmul.f32 %v5208_v16, %v5205_v22 }
0x3806   :  { %5212 = vrot.lane.b32.xlu0 %v5210_v62, %s6575_s28 }
0x3878   :  { %v5213_v50 = vpop.permute.xlu0 %5212 }
0x3879   :  { %v5215_v25 = vadd.f32 %v5213_v50, %v5209_v49 }
0x387b   :  { %6532 = vtanh.f32 %v5215_v25 }
0x3885   :  { %v6533_v59 = vpop.eup %6532 }
0x3886   :  { %v5217_v9 = vmul.f32 %v6533_v59, %v5208_v16 }
0x3888   :  { %5222 = vrot.lane.b32.xlu1 %v5217_v9, %s6575_s28  ;;  %v5218_v17 = vmax.f32 %v8005_v46, %v5217_v9 }
0x38fa   :  { %v5223_v18 = vpop.permute.xlu1 %5222 }
0x38fb   :  { %5581 = vmatmul.mubr.msk.f32.vlgmr.msra.gmra.mrb[46].mxu0 %vm99_vm5, %v5223_v18 }
0x39ce   :  { %v5292_v29 = vpop.f32.mrb[46].mxu0 }
0x39cf   :  { %v5297_v58 = vadd.f32 %v5292_v29, %v5219_v36  ;;  %v5294_v1 = vpop.f32.mrb[47].mxu0 }
0x39d0   :  { %v5298_v23 = vadd.f32 %v5294_v1, %v8085_v44 }
0x39d1   :  { %v5299_v48 = vmul.f32 0.5, %v5297_v58 }
0x39d2   :  { %v5300_v10 = vmul.f32 0.5, %v5298_v23 }
0x39d3   :  { %6534 = vtanh.f32 %v5299_v48 }
0x39d4   :  { %v5302_v52 = vsel %vm53_vm2, %v5298_v23, %v5300_v10 }
0x39d5   :  { %6536 = vtanh.f32 %v5302_v52 }
0x39dd   :  { %v6535_v56 = vpop.eup %6534 }
0x39de   :  { %v5305_v11 = vmul.f32 0.5, %v6535_v56 }
0x39df   :  { %v6537_v61 = vpop.eup %6536 }
0x39e0   :  { %v5306_v2 = vmul.f32 0.5, %v6537_v61  ;;  %v5307_v4 = vadd.f32 0.5, %v5305_v11 }
0x39e2   :  { %v5308_v6 = vadd.f32 0.5, %v5306_v2  ;;  %v5311_v60 = vmul.f32 %v5307_v4, %v5215_v25 }
0x39e4   :  { %v5310_v14 = vsel %vm53_vm2, %v6537_v61, %v5308_v6 }
0x39e5   :  { %v5312_v39 = vmul.f32 %v5310_v14, %v5307_v4 }
0x39e7   :  { %5314 = vrot.lane.b32.xlu0 %v5312_v39, %s6575_s28 }
0x3a59   :  { %v5315_v45 = vpop.permute.xlu0 %5314 }
0x3a5a   :  { %v5317_v5 = vadd.f32 %v5315_v45, %v5311_v60 }
0x3a5c   :  { %6538 = vtanh.f32 %v5317_v5 }
0x3a66   :  { %v6539_v19 = vpop.eup %6538 }
0x3a67   :  { %v5319_v0 = vmul.f32 %v6539_v19, %v5310_v14 }
0x3a69   :  { %5324 = vrot.lane.b32.xlu1 %v5319_v0, %s6575_s28  ;;  %v5320_v40 = vmax.f32 %v5218_v17, %v5319_v0 }
0x3adb   :  { %v5325_v20 = vpop.permute.xlu1 %5324 }
0x3adc   :  { %5582 = vmatmul.mubr.msk.f32.vlgmr.msra.gmra.mrb[46].mxu1 %vm99_vm5, %v5325_v20 }
0x3baf   :  { %v5394_v51 = vpop.f32.mrb[46].mxu1 }
0x3bb0   :  { %v5399_v13 = vadd.f32 %v5394_v51, %v8086_v53  ;;  %v5396_v46 = vpop.f32.mrb[47].mxu1 }
0x3bb1   :  { %v5400_v24 = vadd.f32 %v5396_v46, %v8087_v34 }
0x3bb2   :  { %v5401_v3 = vmul.f32 0.5, %v5399_v13 }
0x3bb3   :  { %v5402_v28 = vmul.f32 0.5, %v5400_v24 }
0x3bb4   :  { %6540 = vtanh.f32 %v5401_v3 }
0x3bb5   :  { %v5404_v63 = vsel %vm53_vm2, %v5400_v24, %v5402_v28 }
0x3bb6   :  { %6542 = vtanh.f32 %v5404_v63 }
0x3bbe   :  { %v6541_v37 = vpop.eup %6540 }
0x3bbf   :  { %v5407_v7 = vmul.f32 0.5, %v6541_v37 }
0x3bc0   :  { %v6543_v32 = vpop.eup %6542 }
0x3bc1   :  { %v5408_v26 = vmul.f32 0.5, %v6543_v32  ;;  %v5409_v42 = vadd.f32 0.5, %v5407_v7 }
0x3bc3   :  { %v5410_v54 = vadd.f32 0.5, %v5408_v26  ;;  %v5413_v43 = vmul.f32 %v5409_v42, %v5317_v5 }
0x3bc5   :  { %v5412_v35 = vsel %vm53_vm2, %v6543_v32, %v5410_v54 }
0x3bc6   :  { %v5414_v33 = vmul.f32 %v5412_v35, %v5409_v42 }
0x3bc8   :  { %5416 = vrot.lane.b32.xlu0 %v5414_v33, %s6575_s28 }
0x3c3a   :  { %v5417_v55 = vpop.permute.xlu0 %5416 }
0x3c3b   :  { %v5419_v8 = vadd.f32 %v5417_v55, %v5413_v43 }
0x3c3d   :  { %6544 = vtanh.f32 %v5419_v8 }
0x3c47   :  { %v6545_v21 = vpop.eup %6544 }
0x3c48   :  { %v5421_v41 = vmul.f32 %v6545_v21, %v5412_v35 }
0x3c4a   :  { %v5422_v47 = vmax.f32 %v5320_v40, %v5421_v41 }
0x3c4c   :  { %5424 = vrot.lane.b32.xlu1 %v5422_v47, %s6575_s28 }
0x3cbe   :  { %v5425_v38 = vpop.permute.xlu1 %5424 }
0x3cbf   :  { %5428 = vst.msk [vmem:[#allocation4] sm:$0x3] %vm5427_vm6, %v5425_v38 }
0x3cc0   :  { %6561 = shalt.err (!%p6558_p4)
}
0x3cc1   :  { %s6562_s29 = scalar_lea.hbm %s8078_s5, 32 }
0x3cc2   :  { %p6563_p5 = scmp.ne.s32.totalorder %s8078_s5, %s6562_s29  ;;  %p6566_p6 = scmp.lt.u32.totalorder %s6562_s29, %s8078_s5 }
0x3cc4   :  { %p6568_p7 = pnand %p6566_p6, %p6563_p5 }
0x3cc6   :  { %6571 = shalt.err (!%p6568_p7)
}
0x3cc7   :  { %5438 = dma.vmem_to_hbm [thread:$0]  %s5436_s1, 32, %s8078_s5, [#allocation5]  }
0x3cc8   :  { %6572 = dma.done.wait [#allocation5], 32  }
0x3cc9   :  { %6573 = vsyncadd [#allocation5], 4294967264 }
0x3cca   :  { %5442 = vsyncpa [#allocation5], 1 }

</bundles_post_ra>
